<compile_context>
chip_gen: v5e
topology: v5e:2x2
jax: 0.10.0
libtpu: 0.0.40
codegen_flags: <defaults>
</compile_context>

<pallas_src>
import functools
from math import sqrt

import jax
import jax.numpy as jnp
from jax import lax
from jax.experimental import pallas as pl
from jax.experimental.pallas import tpu as pltpu


def _decoder_kernel(enc_ref,                      # VMEM (BB, S, D)    bf16
                    noise_ref,                    # VMEM (BB, S-1, S)  f32 (Gumbel or 0)
                    vl_ref, vf_ref,               # VMEM (1, D)        bf16
                    wq_ref,                       # VMEM (3D, D)       bf16  glimpse W_q
                    wk_ref, wv_ref, wo_ref,       # VMEM (D, D)        bf16  glimpse W_k/W_v/W_o
                    wp_ref,                       # VMEM (D, D)        bf16  project_k
                    raw_ref,                      # out  (BB, S-1, S)  f32   raw logits
                    logp_ref,                     # out  (BB, 1)       f32   summed cross-entropy
                    sol_ref,                      # out  (BB, S)       i32   tour
                    mask_sc, lastp_sc, firstp_sc,  # scratch: (BB,S) f32, (BB,D) f32, (BB,D) f32
                    *, n_head, C):
    enc = enc_ref[...]                             # (BB, S, D) bf16
    BB, S, D = enc.shape
    dk = D // n_head
    inv_scale = jnp.float32(1.0 / sqrt(D))
    inv_sqrt_dk = jnp.float32(1.0 / sqrt(dk))
    neg_inf = jnp.float32(float('-inf'))
    cC = jnp.float32(C)

    col_iota = lax.broadcasted_iota(jnp.int32, (BB, S), 1)

    # ---- loop-invariant projections, hoisted out of the decode loop (bf16 MXU, f32 acc) ----
    kk = jnp.dot(enc, wk_ref[...], preferred_element_type=jnp.float32).astype(jnp.bfloat16)
    vv = jnp.dot(enc, wv_ref[...], preferred_element_type=jnp.float32).astype(jnp.bfloat16)
    kp = jnp.dot(enc, wp_ref[...], preferred_element_type=jnp.float32).astype(jnp.bfloat16)

    h_hat = jnp.mean(enc.astype(jnp.float32), axis=1).astype(jnp.bfloat16)   # (BB, D)

    wq1 = wq_ref[0:D, :]          # query = cat(h_hat, last, first) @ W_q, done blockwise
    wq2 = wq_ref[D:2 * D, :]
    wq3 = wq_ref[2 * D:3 * D, :]
    wo = wo_ref[...]

    # h_hat contribution to the glimpse query never changes -> compute once.
    q_base = jnp.dot(h_hat, wq1, preferred_element_type=jnp.float32)          # (BB, D) f32

    # ---- init state: depot 0 visited, solution starts at the depot ----
    mask_sc[...] = (col_iota == 0).astype(jnp.float32)
    # keep last/first in projected form: last @ Wq2 and first @ Wq3 (f32)
    lastp_sc[...] = jnp.broadcast_to(
        jnp.dot(vl_ref[...], wq2, preferred_element_type=jnp.float32), (BB, D))
    firstp_sc[...] = jnp.broadcast_to(
        jnp.dot(vf_ref[...], wq3, preferred_element_type=jnp.float32), (BB, D))
    logp_ref[...] = jnp.zeros_like(logp_ref)
    sol_ref[...] = jnp.zeros_like(sol_ref)

    @pl.loop(1, S)                 # exactly seq_len - 1 decoding steps
    def _step(t):
        mask = mask_sc[...]                      # (BB, S) f32, 1.0 == visited
        masked = mask > 0.5
        mask3 = masked[:, None, :]               # (BB, 1, S)

        # ---------- glimpse query (all matmuls already hoisted / cached) ----------
        q = q_base + lastp_sc[...] + firstp_sc[...]                                # (BB, D) f32
        q_bf = q.astype(jnp.bfloat16)[:, None, :]                                  # (BB, 1, D)

        # ---------- glimpse multi-head attention (heads folded into W_o sublane slices) ----------
        context = jnp.zeros((BB, 1, D), jnp.float32)
        for h in range(n_head):                                    # static unrolled head loop
            sl = slice(h * dk, (h + 1) * dk)
            s_h = jnp.einsum('bqd,bkd->bqk', q_bf[:, :, sl], kk[:, :, sl],
                             preferred_element_type=jnp.float32) * inv_sqrt_dk    # (BB,1,S)
            s_h = jnp.where(mask3, neg_inf, s_h)
            a_h = jax.nn.softmax(s_h, axis=-1)
            o_h = jnp.einsum('bqk,bkd->bqd', a_h.astype(jnp.bfloat16), vv[:, :, sl],
                             preferred_element_type=jnp.float32)                  # (BB,1,dk)
            context = context + jnp.dot(o_h.astype(jnp.bfloat16), wo[sl, :],
                                        preferred_element_type=jnp.float32)       # (BB,1,D)

        # ---------- pointer logits ----------
        du = jnp.einsum('bqd,bkd->bqk', context.astype(jnp.bfloat16), kp,
                        preferred_element_type=jnp.float32)                       # (BB,1,S)
        u3 = jnp.tanh(du * inv_scale) * cC                                        # (BB,1,S)

        # raw (pre-mask) logits -> row t-1   (dynamic slice store, no full-buffer RMW)
        raw_ref[:, pl.ds(t - 1, 1), :] = u3

        u = u3[:, 0, :]                                                           # (BB, S)
        u_m = jnp.where(masked, neg_inf, u)

        # ---------- pick next city (greedy: zero noise; sample: Gumbel-max == Categorical) ----------
        g = noise_ref[:, pl.ds(t - 1, 1), :]                                      # (BB,1,S)
        scores = u_m + g[:, 0, :]
        s_max = jnp.max(scores, axis=-1, keepdims=True)                           # (BB,1)
        city = jnp.min(jnp.where(scores >= s_max, col_iota, S),
                       axis=-1, keepdims=True)                                    # (BB,1) int32

        # ---------- cross entropy accumulation: logsumexp(u_m) - u_m[city] ----------
        m0 = jnp.max(u_m, axis=-1, keepdims=True)
        lse = m0 + jnp.log(jnp.sum(jnp.exp(u_m - m0), axis=-1, keepdims=True))    # (BB,1)
        u_city = jnp.sum(jnp.where(col_iota == city, u_m, 0.0),
                         axis=-1, keepdims=True)                                  # (BB,1)
        logp_ref[...] = logp_ref[...] + (lse - u_city)

        # ---------- solution[:, t] = city ; mark city visited ----------
        sol_ref[...] = jnp.where(col_iota == t, city, sol_ref[...])
        mask_sc[...] = jnp.where(col_iota == city, 1.0, mask)

        # ---------- last = enc[b, city_b, :] via one-hot @ enc (batched MXU matmul) ----------
        onehot = (col_iota == city).astype(jnp.bfloat16)[:, None, :]              # (BB,1,S)
        last_new = jnp.einsum('bqk,bkd->bqd', onehot, enc,
                              preferred_element_type=jnp.float32)[:, 0, :]        # (BB,D) f32
        last_bf = last_new.astype(jnp.bfloat16)
        lastp_sc[...] = jnp.dot(last_bf, wq2, preferred_element_type=jnp.float32)  # cache last@Wq2

        @pl.when(t == 1)
        def _():
            firstp_sc[...] = jnp.dot(last_bf, wq3, preferred_element_type=jnp.float32)


def decoder_forward(encoded_inputs, demands, capacities, params, *,
                    n_head, decode_mode='sample', C=10, seed=0, block_batch=8):
    """Returns (raw_logits [B,S-1,S], log_probabilities [B], solution [B,S])."""
    del demands, capacities  # unpacked by the reference forward but never used
    B, S, D = encoded_inputs.shape
    BB = max(1, min(int(block_batch), 256))
    B_pad = ((B + BB - 1) // BB) * BB

    enc = jnp.zeros((B_pad, S, D), jnp.bfloat16).at[:B].set(
        encoded_inputs.astype(jnp.bfloat16))

    if decode_mode == 'sample':
        noise = jax.random.gumbel(jax.random.PRNGKey(seed), (B_pad, S - 1, S), jnp.float32)
    else:  # 'greedy' -> zero noise => plain argmax over masked logits
        noise = jnp.zeros((B_pad, S - 1, S), jnp.float32)

    bf = lambda x: x.astype(jnp.bfloat16)
    kernel = functools.partial(_decoder_kernel, n_head=n_head, C=float(C))

    # advisory cost estimate so XLA schedules around the long serial decode loop
    flops = int(B_pad * (8 * S * D * D + (S - 1) * (4 * D * D + 12 * S * D)))
    transc = int(B_pad * (S - 1) * S * (n_head + 3))
    bytes_acc = int(4 * B_pad * (2 * (S - 1) * S + 2 * S)
                    + 2 * (B_pad * S * D + 7 * D * D + 2 * D))

    grid_spec = pltpu.PrefetchScalarGridSpec(
        num_scalar_prefetch=0,
        grid=(B_pad // BB,),
        in_specs=[
            pl.BlockSpec((BB, S, D), lambda g: (g, 0, 0)),        # encoded_inputs
            pl.BlockSpec((BB, S - 1, S), lambda g: (g, 0, 0)),    # gumbel / zero noise
            pl.BlockSpec((1, D), lambda g: (0, 0)),               # vl
            pl.BlockSpec((1, D), lambda g: (0, 0)),               # vf
            pl.BlockSpec((3 * D, D), lambda g: (0, 0)),           # glimpse W_q
            pl.BlockSpec((D, D), lambda g: (0, 0)),               # glimpse W_k
            pl.BlockSpec((D, D), lambda g: (0, 0)),               # glimpse W_v
            pl.BlockSpec((D, D), lambda g: (0, 0)),               # glimpse W_o
            pl.BlockSpec((D, D), lambda g: (0, 0)),               # project_k
        ],
        out_specs=[
            pl.BlockSpec((BB, S - 1, S), lambda g: (g, 0, 0)),    # raw logits
            pl.BlockSpec((BB, 1), lambda g: (g, 0)),              # summed cross entropy
            pl.BlockSpec((BB, S), lambda g: (g, 0)),              # solution
        ],
        scratch_shapes=[
            pltpu.VMEM((BB, S), jnp.float32),     # visited mask
            pltpu.VMEM((BB, D), jnp.float32),     # last  @ Wq2 (projected)
            pltpu.VMEM((BB, D), jnp.float32),     # first @ Wq3 (projected)
        ],
    )
    raw, logp, sol = pl.pallas_call(
        kernel,
        grid_spec=grid_spec,
        out_shape=[
            jax.ShapeDtypeStruct((B_pad, S - 1, S), jnp.float32),
            jax.ShapeDtypeStruct((B_pad, 1), jnp.float32),
            jax.ShapeDtypeStruct((B_pad, S), jnp.int32),
        ],
        compiler_params=pltpu.CompilerParams(
            dimension_semantics=("parallel",)),   # batch blocks shard across v7x's 2 TCs
        cost_estimate=pl.CostEstimate(flops=flops, transcendentals=transc,
                                      bytes_accessed=bytes_acc),
    )(enc, noise, bf(params['vl']), bf(params['vf']), bf(params['wq']),
      bf(params['wk']), bf(params['wv']), bf(params['wo']), bf(params['wp']))
    return raw[:B], logp[:B, 0], sol[:B]


def init_decoder_params(key, n_head, D):
    ks = jax.random.split(key, 7)

    def u(k, shape, bound):
        return jax.random.uniform(k, shape, jnp.float32, -bound, bound)

    return {
        'vl': u(ks[0], (1, D), 1.0 / D),                    # uniform(-1/D, 1/D), as in torch init
        'vf': u(ks[1], (1, D), 1.0 / D),
        'wq': u(ks[2], (3 * D, D), 1.0 / sqrt(3 * D)),      # glimpse MHA weights (no bias)
        'wk': u(ks[3], (D, D), 1.0 / sqrt(D)),
        'wv': u(ks[4], (D, D), 1.0 / sqrt(D)),
        'wo': u(ks[5], (D, D), 1.0 / sqrt(D)),
        'wp': u(ks[6], (D, D), 1.0 / sqrt(D)),              # project_k (Linear, bias=False)
    }


if __name__ == "__main__":
    B, S, D, n_head = 2, 8, 32, 4
    key = jax.random.PRNGKey(0)
    k_enc, k_dem, k_par = jax.random.split(key, 3)

    encoded_inputs = jax.random.normal(k_enc, (B, S, D), jnp.float32)
    demands = jax.random.uniform(k_dem, (B, S), jnp.float32)
    capacities = jnp.ones((B,), jnp.float32)
    params = init_decoder_params(k_par, n_head, D)

    raw_logits, log_probabilities, solution = decoder_forward(
        encoded_inputs, demands, capacities, params,
        n_head=n_head, decode_mode='sample', C=10, seed=0)
    jax.tree_util.tree_map(jax.block_until_ready,
                           (raw_logits, log_probabilities, solution))

    assert raw_logits.shape == (B, S - 1, S)
    assert log_probabilities.shape == (B,)
    assert solution.shape == (B, S)
    # sanity: every tour starts at the depot and visits each city exactly once
    assert bool(jnp.all(solution[:, 0] == 0))
    assert bool(jnp.all(jnp.sort(solution, axis=1) == jnp.arange(S)[None, :]))
    print("KERNEL_OK")
</pallas_src>

<mosaic_0001>
module attributes {stable_mosaic.version = 11 : i64} {
  func.func @_decoder_kernel(%arg0: i32, %arg1: memref<8x8x32xbf16, #tpu.memory_space<vmem>>, %arg2: memref<8x7x8xf32, #tpu.memory_space<vmem>>, %arg3: memref<1x32xbf16, #tpu.memory_space<vmem>>, %arg4: memref<1x32xbf16, #tpu.memory_space<vmem>>, %arg5: memref<96x32xbf16, #tpu.memory_space<vmem>>, %arg6: memref<32x32xbf16, #tpu.memory_space<vmem>>, %arg7: memref<32x32xbf16, #tpu.memory_space<vmem>>, %arg8: memref<32x32xbf16, #tpu.memory_space<vmem>>, %arg9: memref<32x32xbf16, #tpu.memory_space<vmem>>, %arg10: memref<8x7x8xf32, #tpu.memory_space<vmem>>, %arg11: memref<8x1xf32, #tpu.memory_space<vmem>>, %arg12: memref<8x8xi32, #tpu.memory_space<vmem>>, %arg13: memref<8x8xf32, #tpu.memory_space<vmem>>, %arg14: memref<8x32xf32, #tpu.memory_space<vmem>>, %arg15: memref<8x32xf32, #tpu.memory_space<vmem>>) attributes {dimension_semantics = [#tpu.dimension_semantics<parallel>], iteration_bounds = array<i64: 1>, scalar_prefetch = 0 : i64, scratch_operands = 3 : i64, tpu.core_type = #tpu.core_type<tc>, window_params = [{transform_indices = @transform_0, window_bounds = array<i64: 8, 8, 32>}, {transform_indices = @transform_1, window_bounds = array<i64: 8, 7, 8>}, {pipeline_mode = #tpu.pipeline_mode<synchronous>, transform_indices = @transform_2, window_bounds = array<i64: 1, 32>}, {pipeline_mode = #tpu.pipeline_mode<synchronous>, transform_indices = @transform_3, window_bounds = array<i64: 1, 32>}, {pipeline_mode = #tpu.pipeline_mode<synchronous>, transform_indices = @transform_4, window_bounds = array<i64: 96, 32>}, {pipeline_mode = #tpu.pipeline_mode<synchronous>, transform_indices = @transform_5, window_bounds = array<i64: 32, 32>}, {pipeline_mode = #tpu.pipeline_mode<synchronous>, transform_indices = @transform_6, window_bounds = array<i64: 32, 32>}, {pipeline_mode = #tpu.pipeline_mode<synchronous>, transform_indices = @transform_7, window_bounds = array<i64: 32, 32>}, {pipeline_mode = #tpu.pipeline_mode<synchronous>, transform_indices = @transform_8, window_bounds = array<i64: 32, 32>}, {transform_indices = @transform_9, window_bounds = array<i64: 8, 7, 8>}, {transform_indices = @transform_10, window_bounds = array<i64: 8, 1>}, {transform_indices = @transform_11, window_bounds = array<i64: 8, 8>}]} {
    %c0 = arith.constant 0 : index
    %c0_0 = arith.constant 0 : index
    %c0_1 = arith.constant 0 : index
    %0 = vector.load %arg1[%c0, %c0_0, %c0_1] : memref<8x8x32xbf16, #tpu.memory_space<vmem>>, vector<8x8x32xbf16>
    %1 = tpu.iota {dimensions = array<i32: 1>} : vector<8x8xi32>
    %c0_2 = arith.constant 0 : index
    %c0_3 = arith.constant 0 : index
    %2 = vector.load %arg6[%c0_2, %c0_3] : memref<32x32xbf16, #tpu.memory_space<vmem>>, vector<32x32xbf16>
    %cst = arith.constant dense<0.000000e+00> : vector<8x8x32xf32>
    %3 = tpu.matmul %0, %2, %cst {dimension_numbers = #tpu.dot_dimension_numbers<[2], [0], [0, 1], [1], [0, 0, 0, 1, 1, 1], [], []>} : vector<8x8x32xbf16>, vector<32x32xbf16>, vector<8x8x32xf32> -> vector<8x8x32xf32>
    %4 = arith.truncf %3 : vector<8x8x32xf32> to vector<8x8x32xbf16>
    %c0_4 = arith.constant 0 : index
    %c0_5 = arith.constant 0 : index
    %5 = vector.load %arg7[%c0_4, %c0_5] : memref<32x32xbf16, #tpu.memory_space<vmem>>, vector<32x32xbf16>
    %cst_6 = arith.constant dense<0.000000e+00> : vector<8x8x32xf32>
    %6 = tpu.matmul %0, %5, %cst_6 {dimension_numbers = #tpu.dot_dimension_numbers<[2], [0], [0, 1], [1], [0, 0, 0, 1, 1, 1], [], []>} : vector<8x8x32xbf16>, vector<32x32xbf16>, vector<8x8x32xf32> -> vector<8x8x32xf32>
    %7 = arith.truncf %6 : vector<8x8x32xf32> to vector<8x8x32xbf16>
    %c0_7 = arith.constant 0 : index
    %c0_8 = arith.constant 0 : index
    %8 = vector.load %arg9[%c0_7, %c0_8] : memref<32x32xbf16, #tpu.memory_space<vmem>>, vector<32x32xbf16>
    %cst_9 = arith.constant dense<0.000000e+00> : vector<8x8x32xf32>
    %9 = tpu.matmul %0, %8, %cst_9 {dimension_numbers = #tpu.dot_dimension_numbers<[2], [0], [0, 1], [1], [0, 0, 0, 1, 1, 1], [], []>} : vector<8x8x32xbf16>, vector<32x32xbf16>, vector<8x8x32xf32> -> vector<8x8x32xf32>
    %10 = arith.truncf %9 : vector<8x8x32xf32> to vector<8x8x32xbf16>
    %11 = arith.extf %0 : vector<8x8x32xbf16> to vector<8x8x32xf32>
    %cst_10 = arith.constant dense<0.000000e+00> : vector<8x32xf32>
    %12 = vector.multi_reduction <add>, %11, %cst_10 [1] : vector<8x8x32xf32> to vector<8x32xf32>
    %cst_11 = arith.constant 8.000000e+00 : f32
    %13 = vector.broadcast %cst_11 : f32 to vector<8x32xf32>
    %14 = arith.divf %12, %13 : vector<8x32xf32>
    %15 = arith.truncf %14 : vector<8x32xf32> to vector<8x32xbf16>
    %c0_12 = arith.constant 0 : index
    %c0_13 = arith.constant 0 : index
    %16 = vector.load %arg5[%c0_12, %c0_13] : memref<96x32xbf16, #tpu.memory_space<vmem>>, vector<32x32xbf16>
    %c32 = arith.constant 32 : index
    %c0_14 = arith.constant 0 : index
    %17 = vector.load %arg5[%c32, %c0_14] : memref<96x32xbf16, #tpu.memory_space<vmem>>, vector<32x32xbf16>
    %c64 = arith.constant 64 : index
    %c0_15 = arith.constant 0 : index
    %18 = vector.load %arg5[%c64, %c0_15] : memref<96x32xbf16, #tpu.memory_space<vmem>>, vector<32x32xbf16>
    %c0_16 = arith.constant 0 : index
    %c0_17 = arith.constant 0 : index
    %19 = vector.load %arg8[%c0_16, %c0_17] : memref<32x32xbf16, #tpu.memory_space<vmem>>, vector<32x32xbf16>
    %cst_18 = arith.constant dense<0.000000e+00> : vector<8x32xf32>
    %20 = tpu.matmul %15, %16, %cst_18 {dimension_numbers = #tpu.dot_dimension_numbers<[1], [0], [0], [1], [0, 0, 1, 1], [], []>} : vector<8x32xbf16>, vector<32x32xbf16>, vector<8x32xf32> -> vector<8x32xf32>
    %c0_i32 = arith.constant 0 : i32
    %21 = vector.broadcast %c0_i32 : i32 to vector<8x8xi32>
    %22 = arith.cmpi eq, %1, %21 : vector<8x8xi32>
    %23 = arith.extui %22 : vector<8x8xi1> to vector<8x8xi32>
    %24 = arith.sitofp %23 : vector<8x8xi32> to vector<8x8xf32>
    %c0_19 = arith.constant 0 : index
    %c0_20 = arith.constant 0 : index
    %25 = vector.load %arg13[%c0_19, %c0_20] : memref<8x8xf32, #tpu.memory_space<vmem>>, vector<8x8xf32>
    tpu.vector_store %arg13[%c0_19, %c0_20], %24 {strides = array<i32>} : memref<8x8xf32, #tpu.memory_space<vmem>>, vector<8x8xf32>,
    %c0_21 = arith.constant 0 : index
    %c0_22 = arith.constant 0 : index
    %26 = vector.load %arg3[%c0_21, %c0_22] : memref<1x32xbf16, #tpu.memory_space<vmem>>, vector<1x32xbf16>
    %cst_23 = arith.constant dense<0.000000e+00> : vector<1x32xf32>
    %27 = tpu.matmul %26, %17, %cst_23 {dimension_numbers = #tpu.dot_dimension_numbers<[1], [0], [0], [1], [0, 0, 1, 1], [], []>} : vector<1x32xbf16>, vector<32x32xbf16>, vector<1x32xf32> -> vector<1x32xf32>
    %28 = vector.shape_cast %27 : vector<1x32xf32> to vector<1x32xf32>
    %29 = vector.broadcast %28 : vector<1x32xf32> to vector<8x32xf32>
    %c0_24 = arith.constant 0 : index
    %c0_25 = arith.constant 0 : index
    %30 = vector.load %arg14[%c0_24, %c0_25] : memref<8x32xf32, #tpu.memory_space<vmem>>, vector<8x32xf32>
    tpu.vector_store %arg14[%c0_24, %c0_25], %29 {strides = array<i32>} : memref<8x32xf32, #tpu.memory_space<vmem>>, vector<8x32xf32>,
    %c0_26 = arith.constant 0 : index
    %c0_27 = arith.constant 0 : index
    %31 = vector.load %arg4[%c0_26, %c0_27] : memref<1x32xbf16, #tpu.memory_space<vmem>>, vector<1x32xbf16>
    %cst_28 = arith.constant dense<0.000000e+00> : vector<1x32xf32>
    %32 = tpu.matmul %31, %18, %cst_28 {dimension_numbers = #tpu.dot_dimension_numbers<[1], [0], [0], [1], [0, 0, 1, 1], [], []>} : vector<1x32xbf16>, vector<32x32xbf16>, vector<1x32xf32> -> vector<1x32xf32>
    %33 = vector.shape_cast %32 : vector<1x32xf32> to vector<1x32xf32>
    %34 = vector.broadcast %33 : vector<1x32xf32> to vector<8x32xf32>
    %c0_29 = arith.constant 0 : index
    %c0_30 = arith.constant 0 : index
    %35 = vector.load %arg15[%c0_29, %c0_30] : memref<8x32xf32, #tpu.memory_space<vmem>>, vector<8x32xf32>
    tpu.vector_store %arg15[%c0_29, %c0_30], %34 {strides = array<i32>} : memref<8x32xf32, #tpu.memory_space<vmem>>, vector<8x32xf32>,
    %cst_31 = arith.constant 0.000000e+00 : f32
    %36 = vector.broadcast %cst_31 : f32 to vector<8x1xf32>
    %c0_32 = arith.constant 0 : index
    %c0_33 = arith.constant 0 : index
    %37 = vector.load %arg11[%c0_32, %c0_33] : memref<8x1xf32, #tpu.memory_space<vmem>>, vector<8x1xf32>
    tpu.vector_store %arg11[%c0_32, %c0_33], %36 {strides = array<i32>} : memref<8x1xf32, #tpu.memory_space<vmem>>, vector<8x1xf32>,
    %c0_i32_34 = arith.constant 0 : i32
    %38 = vector.broadcast %c0_i32_34 : i32 to vector<8x8xi32>
    %c0_35 = arith.constant 0 : index
    %c0_36 = arith.constant 0 : index
    %39 = vector.load %arg12[%c0_35, %c0_36] : memref<8x8xi32, #tpu.memory_space<vmem>>, vector<8x8xi32>
    tpu.vector_store %arg12[%c0_35, %c0_36], %38 {strides = array<i32>} : memref<8x8xi32, #tpu.memory_space<vmem>>, vector<8x8xi32>,
    %cst_37 = arith.constant 0.353553385 : f32
    %cst_38 = arith.constant 0xFF800000 : f32
    %cst_39 = arith.constant 0.176776692 : f32
    %cst_40 = arith.constant 1.000000e+01 : f32
    %c0_i32_41 = arith.constant 0 : i32
    %c7_i32 = arith.constant 7 : i32
    %40 = arith.addi %c0_i32_41, %c7_i32 : i32
    %c1_i32 = arith.constant 1 : i32
    scf.for %arg16 = %c0_i32_41 to %40 step %c1_i32  : i32 {
      %c1_i32_43 = arith.constant 1 : i32
      %41 = arith.muli %arg16, %c1_i32_43 : i32
      %c1_i32_44 = arith.constant 1 : i32
      %42 = arith.addi %c1_i32_44, %41 : i32
      %c0_45 = arith.constant 0 : index
      %c0_46 = arith.constant 0 : index
      %43 = vector.load %arg13[%c0_45, %c0_46] : memref<8x8xf32, #tpu.memory_space<vmem>>, vector<8x8xf32>
      %cst_47 = arith.constant 5.000000e-01 : f32
      %44 = vector.broadcast %cst_47 : f32 to vector<8x8xf32>
      %45 = arith.cmpf ogt, %43, %44 : vector<8x8xf32>
      %46 = vector.shape_cast %45 : vector<8x8xi1> to vector<8x1x8xi1>
      %c0_48 = arith.constant 0 : index
      %c0_49 = arith.constant 0 : index
      %47 = vector.load %arg14[%c0_48, %c0_49] : memref<8x32xf32, #tpu.memory_space<vmem>>, vector<8x32xf32>
      %48 = arith.addf %20, %47 : vector<8x32xf32>
      %c0_50 = arith.constant 0 : index
      %c0_51 = arith.constant 0 : index
      %49 = vector.load %arg15[%c0_50, %c0_51] : memref<8x32xf32, #tpu.memory_space<vmem>>, vector<8x32xf32>
      %50 = arith.addf %48, %49 : vector<8x32xf32>
      %51 = arith.truncf %50 : vector<8x32xf32> to vector<8x32xbf16>
      %52 = vector.shape_cast %51 : vector<8x32xbf16> to vector<8x1x32xbf16>
      %cst_52 = arith.constant 0.000000e+00 : f32
      %53 = vector.broadcast %cst_52 : f32 to vector<8x1x32xf32>
      %54 = vector.extract_strided_slice %52 {offsets = [0, 0, 0], sizes = [8, 1, 8], strides = [1, 1, 1]} : vector<8x1x32xbf16> to vector<8x1x8xbf16>
      %55 = vector.extract_strided_slice %4 {offsets = [0, 0, 0], sizes = [8, 8, 8], strides = [1, 1, 1]} : vector<8x8x32xbf16> to vector<8x8x8xbf16>
      "tpu.trace_start"() <{level = 10 : i32, message = "bqd,bkd->bqk"}> : () -> ()
      %cst_53 = arith.constant dense<0.000000e+00> : vector<8x1x8xf32>
      %56 = tpu.matmul %54, %55, %cst_53 {dimension_numbers = #tpu.dot_dimension_numbers<[2], [2], [1], [1], [0, 0, 0, 1, 1, 1], [0], [0]>} : vector<8x1x8xbf16>, vector<8x8x8xbf16>, vector<8x1x8xf32> -> vector<8x1x8xf32>
      "tpu.trace_stop"() : () -> ()
      %57 = vector.broadcast %cst_37 : f32 to vector<8x1x8xf32>
      %58 = arith.mulf %56, %57 : vector<8x1x8xf32>
      %59 = vector.broadcast %cst_38 : f32 to vector<8x1x8xf32>
      %60 = arith.select %46, %59, %58 : vector<8x1x8xi1>, vector<8x1x8xf32>
      %cst_54 = arith.constant dense<0xFF800000> : vector<8x1xf32>
      %61 = vector.multi_reduction <maximumf>, %60, %cst_54 [2] : vector<8x1x8xf32> to vector<8x1xf32>
      %cst_55 = arith.constant 0xFF800000 : f32
      %62 = vector.broadcast %cst_55 : f32 to vector<8x1xf32>
      %63 = arith.maximumf %62, %61 : vector<8x1xf32>
      %64 = vector.shape_cast %63 : vector<8x1xf32> to vector<8x1x1xf32>
      %65 = vector.broadcast %64 : vector<8x1x1xf32> to vector<8x1x8xf32>
      %66 = arith.subf %60, %65 : vector<8x1x8xf32>
      %67 = math.exp %66 : vector<8x1x8xf32>
      %cst_56 = arith.constant dense<0.000000e+00> : vector<8x1xf32>
      %68 = vector.multi_reduction <add>, %67, %cst_56 [2] : vector<8x1x8xf32> to vector<8x1xf32>
      %69 = vector.shape_cast %68 : vector<8x1xf32> to vector<8x1x1xf32>
      %70 = vector.broadcast %69 : vector<8x1x1xf32> to vector<8x1x8xf32>
      %71 = arith.divf %67, %70 : vector<8x1x8xf32>
      %72 = arith.truncf %71 : vector<8x1x8xf32> to vector<8x1x8xbf16>
      %73 = vector.extract_strided_slice %7 {offsets = [0, 0, 0], sizes = [8, 8, 8], strides = [1, 1, 1]} : vector<8x8x32xbf16> to vector<8x8x8xbf16>
      "tpu.trace_start"() <{level = 10 : i32, message = "bqk,bkd->bqd"}> : () -> ()
      %cst_57 = arith.constant dense<0.000000e+00> : vector<8x1x8xf32>
      %74 = tpu.matmul %72, %73, %cst_57 {dimension_numbers = #tpu.dot_dimension_numbers<[2], [1], [1], [2], [0, 0, 0, 1, 1, 2], [0], [0]>} : vector<8x1x8xbf16>, vector<8x8x8xbf16>, vector<8x1x8xf32> -> vector<8x1x8xf32>
      "tpu.trace_stop"() : () -> ()
      %75 = arith.truncf %74 : vector<8x1x8xf32> to vector<8x1x8xbf16>
      %76 = vector.extract_strided_slice %19 {offsets = [0, 0], sizes = [8, 32], strides = [1, 1]} : vector<32x32xbf16> to vector<8x32xbf16>
      %cst_58 = arith.constant dense<0.000000e+00> : vector<8x1x32xf32>
      %77 = tpu.matmul %75, %76, %cst_58 {dimension_numbers = #tpu.dot_dimension_numbers<[2], [0], [0, 1], [1], [0, 0, 0, 1, 1, 1], [], []>} : vector<8x1x8xbf16>, vector<8x32xbf16>, vector<8x1x32xf32> -> vector<8x1x32xf32>
      %78 = arith.addf %53, %77 : vector<8x1x32xf32>
      %79 = vector.extract_strided_slice %52 {offsets = [0, 0, 8], sizes = [8, 1, 8], strides = [1, 1, 1]} : vector<8x1x32xbf16> to vector<8x1x8xbf16>
      %80 = vector.extract_strided_slice %4 {offsets = [0, 0, 8], sizes = [8, 8, 8], strides = [1, 1, 1]} : vector<8x8x32xbf16> to vector<8x8x8xbf16>
      "tpu.trace_start"() <{level = 10 : i32, message = "bqd,bkd->bqk"}> : () -> ()
      %cst_59 = arith.constant dense<0.000000e+00> : vector<8x1x8xf32>
      %81 = tpu.matmul %79, %80, %cst_59 {dimension_numbers = #tpu.dot_dimension_numbers<[2], [2], [1], [1], [0, 0, 0, 1, 1, 1], [0], [0]>} : vector<8x1x8xbf16>, vector<8x8x8xbf16>, vector<8x1x8xf32> -> vector<8x1x8xf32>
      "tpu.trace_stop"() : () -> ()
      %82 = vector.broadcast %cst_37 : f32 to vector<8x1x8xf32>
      %83 = arith.mulf %81, %82 : vector<8x1x8xf32>
      %84 = vector.broadcast %cst_38 : f32 to vector<8x1x8xf32>
      %85 = arith.select %46, %84, %83 : vector<8x1x8xi1>, vector<8x1x8xf32>
      %cst_60 = arith.constant dense<0xFF800000> : vector<8x1xf32>
      %86 = vector.multi_reduction <maximumf>, %85, %cst_60 [2] : vector<8x1x8xf32> to vector<8x1xf32>
      %cst_61 = arith.constant 0xFF800000 : f32
      %87 = vector.broadcast %cst_61 : f32 to vector<8x1xf32>
      %88 = arith.maximumf %87, %86 : vector<8x1xf32>
      %89 = vector.shape_cast %88 : vector<8x1xf32> to vector<8x1x1xf32>
      %90 = vector.broadcast %89 : vector<8x1x1xf32> to vector<8x1x8xf32>
      %91 = arith.subf %85, %90 : vector<8x1x8xf32>
      %92 = math.exp %91 : vector<8x1x8xf32>
      %cst_62 = arith.constant dense<0.000000e+00> : vector<8x1xf32>
      %93 = vector.multi_reduction <add>, %92, %cst_62 [2] : vector<8x1x8xf32> to vector<8x1xf32>
      %94 = vector.shape_cast %93 : vector<8x1xf32> to vector<8x1x1xf32>
      %95 = vector.broadcast %94 : vector<8x1x1xf32> to vector<8x1x8xf32>
      %96 = arith.divf %92, %95 : vector<8x1x8xf32>
      %97 = arith.truncf %96 : vector<8x1x8xf32> to vector<8x1x8xbf16>
      %98 = vector.extract_strided_slice %7 {offsets = [0, 0, 8], sizes = [8, 8, 8], strides = [1, 1, 1]} : vector<8x8x32xbf16> to vector<8x8x8xbf16>
      "tpu.trace_start"() <{level = 10 : i32, message = "bqk,bkd->bqd"}> : () -> ()
      %cst_63 = arith.constant dense<0.000000e+00> : vector<8x1x8xf32>
      %99 = tpu.matmul %97, %98, %cst_63 {dimension_numbers = #tpu.dot_dimension_numbers<[2], [1], [1], [2], [0, 0, 0, 1, 1, 2], [0], [0]>} : vector<8x1x8xbf16>, vector<8x8x8xbf16>, vector<8x1x8xf32> -> vector<8x1x8xf32>
      "tpu.trace_stop"() : () -> ()
      %100 = arith.truncf %99 : vector<8x1x8xf32> to vector<8x1x8xbf16>
      %101 = vector.extract_strided_slice %19 {offsets = [8, 0], sizes = [8, 32], strides = [1, 1]} : vector<32x32xbf16> to vector<8x32xbf16>
      %cst_64 = arith.constant dense<0.000000e+00> : vector<8x1x32xf32>
      %102 = tpu.matmul %100, %101, %cst_64 {dimension_numbers = #tpu.dot_dimension_numbers<[2], [0], [0, 1], [1], [0, 0, 0, 1, 1, 1], [], []>} : vector<8x1x8xbf16>, vector<8x32xbf16>, vector<8x1x32xf32> -> vector<8x1x32xf32>
      %103 = arith.addf %78, %102 : vector<8x1x32xf32>
      %104 = vector.extract_strided_slice %52 {offsets = [0, 0, 16], sizes = [8, 1, 8], strides = [1, 1, 1]} : vector<8x1x32xbf16> to vector<8x1x8xbf16>
      %105 = vector.extract_strided_slice %4 {offsets = [0, 0, 16], sizes = [8, 8, 8], strides = [1, 1, 1]} : vector<8x8x32xbf16> to vector<8x8x8xbf16>
      "tpu.trace_start"() <{level = 10 : i32, message = "bqd,bkd->bqk"}> : () -> ()
      %cst_65 = arith.constant dense<0.000000e+00> : vector<8x1x8xf32>
      %106 = tpu.matmul %104, %105, %cst_65 {dimension_numbers = #tpu.dot_dimension_numbers<[2], [2], [1], [1], [0, 0, 0, 1, 1, 1], [0], [0]>} : vector<8x1x8xbf16>, vector<8x8x8xbf16>, vector<8x1x8xf32> -> vector<8x1x8xf32>
      "tpu.trace_stop"() : () -> ()
      %107 = vector.broadcast %cst_37 : f32 to vector<8x1x8xf32>
      %108 = arith.mulf %106, %107 : vector<8x1x8xf32>
      %109 = vector.broadcast %cst_38 : f32 to vector<8x1x8xf32>
      %110 = arith.select %46, %109, %108 : vector<8x1x8xi1>, vector<8x1x8xf32>
      %cst_66 = arith.constant dense<0xFF800000> : vector<8x1xf32>
      %111 = vector.multi_reduction <maximumf>, %110, %cst_66 [2] : vector<8x1x8xf32> to vector<8x1xf32>
      %cst_67 = arith.constant 0xFF800000 : f32
      %112 = vector.broadcast %cst_67 : f32 to vector<8x1xf32>
      %113 = arith.maximumf %112, %111 : vector<8x1xf32>
      %114 = vector.shape_cast %113 : vector<8x1xf32> to vector<8x1x1xf32>
      %115 = vector.broadcast %114 : vector<8x1x1xf32> to vector<8x1x8xf32>
      %116 = arith.subf %110, %115 : vector<8x1x8xf32>
      %117 = math.exp %116 : vector<8x1x8xf32>
      %cst_68 = arith.constant dense<0.000000e+00> : vector<8x1xf32>
      %118 = vector.multi_reduction <add>, %117, %cst_68 [2] : vector<8x1x8xf32> to vector<8x1xf32>
      %119 = vector.shape_cast %118 : vector<8x1xf32> to vector<8x1x1xf32>
      %120 = vector.broadcast %119 : vector<8x1x1xf32> to vector<8x1x8xf32>
      %121 = arith.divf %117, %120 : vector<8x1x8xf32>
      %122 = arith.truncf %121 : vector<8x1x8xf32> to vector<8x1x8xbf16>
      %123 = vector.extract_strided_slice %7 {offsets = [0, 0, 16], sizes = [8, 8, 8], strides = [1, 1, 1]} : vector<8x8x32xbf16> to vector<8x8x8xbf16>
      "tpu.trace_start"() <{level = 10 : i32, message = "bqk,bkd->bqd"}> : () -> ()
      %cst_69 = arith.constant dense<0.000000e+00> : vector<8x1x8xf32>
      %124 = tpu.matmul %122, %123, %cst_69 {dimension_numbers = #tpu.dot_dimension_numbers<[2], [1], [1], [2], [0, 0, 0, 1, 1, 2], [0], [0]>} : vector<8x1x8xbf16>, vector<8x8x8xbf16>, vector<8x1x8xf32> -> vector<8x1x8xf32>
      "tpu.trace_stop"() : () -> ()
      %125 = arith.truncf %124 : vector<8x1x8xf32> to vector<8x1x8xbf16>
      %126 = vector.extract_strided_slice %19 {offsets = [16, 0], sizes = [8, 32], strides = [1, 1]} : vector<32x32xbf16> to vector<8x32xbf16>
      %cst_70 = arith.constant dense<0.000000e+00> : vector<8x1x32xf32>
      %127 = tpu.matmul %125, %126, %cst_70 {dimension_numbers = #tpu.dot_dimension_numbers<[2], [0], [0, 1], [1], [0, 0, 0, 1, 1, 1], [], []>} : vector<8x1x8xbf16>, vector<8x32xbf16>, vector<8x1x32xf32> -> vector<8x1x32xf32>
      %128 = arith.addf %103, %127 : vector<8x1x32xf32>
      %129 = vector.extract_strided_slice %52 {offsets = [0, 0, 24], sizes = [8, 1, 8], strides = [1, 1, 1]} : vector<8x1x32xbf16> to vector<8x1x8xbf16>
      %130 = vector.extract_strided_slice %4 {offsets = [0, 0, 24], sizes = [8, 8, 8], strides = [1, 1, 1]} : vector<8x8x32xbf16> to vector<8x8x8xbf16>
      "tpu.trace_start"() <{level = 10 : i32, message = "bqd,bkd->bqk"}> : () -> ()
      %cst_71 = arith.constant dense<0.000000e+00> : vector<8x1x8xf32>
      %131 = tpu.matmul %129, %130, %cst_71 {dimension_numbers = #tpu.dot_dimension_numbers<[2], [2], [1], [1], [0, 0, 0, 1, 1, 1], [0], [0]>} : vector<8x1x8xbf16>, vector<8x8x8xbf16>, vector<8x1x8xf32> -> vector<8x1x8xf32>
      "tpu.trace_stop"() : () -> ()
      %132 = vector.broadcast %cst_37 : f32 to vector<8x1x8xf32>
      %133 = arith.mulf %131, %132 : vector<8x1x8xf32>
      %134 = vector.broadcast %cst_38 : f32 to vector<8x1x8xf32>
      %135 = arith.select %46, %134, %133 : vector<8x1x8xi1>, vector<8x1x8xf32>
      %cst_72 = arith.constant dense<0xFF800000> : vector<8x1xf32>
      %136 = vector.multi_reduction <maximumf>, %135, %cst_72 [2] : vector<8x1x8xf32> to vector<8x1xf32>
      %cst_73 = arith.constant 0xFF800000 : f32
      %137 = vector.broadcast %cst_73 : f32 to vector<8x1xf32>
      %138 = arith.maximumf %137, %136 : vector<8x1xf32>
      %139 = vector.shape_cast %138 : vector<8x1xf32> to vector<8x1x1xf32>
      %140 = vector.broadcast %139 : vector<8x1x1xf32> to vector<8x1x8xf32>
      %141 = arith.subf %135, %140 : vector<8x1x8xf32>
      %142 = math.exp %141 : vector<8x1x8xf32>
      %cst_74 = arith.constant dense<0.000000e+00> : vector<8x1xf32>
      %143 = vector.multi_reduction <add>, %142, %cst_74 [2] : vector<8x1x8xf32> to vector<8x1xf32>
      %144 = vector.shape_cast %143 : vector<8x1xf32> to vector<8x1x1xf32>
      %145 = vector.broadcast %144 : vector<8x1x1xf32> to vector<8x1x8xf32>
      %146 = arith.divf %142, %145 : vector<8x1x8xf32>
      %147 = arith.truncf %146 : vector<8x1x8xf32> to vector<8x1x8xbf16>
      %148 = vector.extract_strided_slice %7 {offsets = [0, 0, 24], sizes = [8, 8, 8], strides = [1, 1, 1]} : vector<8x8x32xbf16> to vector<8x8x8xbf16>
      "tpu.trace_start"() <{level = 10 : i32, message = "bqk,bkd->bqd"}> : () -> ()
      %cst_75 = arith.constant dense<0.000000e+00> : vector<8x1x8xf32>
      %149 = tpu.matmul %147, %148, %cst_75 {dimension_numbers = #tpu.dot_dimension_numbers<[2], [1], [1], [2], [0, 0, 0, 1, 1, 2], [0], [0]>} : vector<8x1x8xbf16>, vector<8x8x8xbf16>, vector<8x1x8xf32> -> vector<8x1x8xf32>
      "tpu.trace_stop"() : () -> ()
      %150 = arith.truncf %149 : vector<8x1x8xf32> to vector<8x1x8xbf16>
      %151 = vector.extract_strided_slice %19 {offsets = [24, 0], sizes = [8, 32], strides = [1, 1]} : vector<32x32xbf16> to vector<8x32xbf16>
      %cst_76 = arith.constant dense<0.000000e+00> : vector<8x1x32xf32>
      %152 = tpu.matmul %150, %151, %cst_76 {dimension_numbers = #tpu.dot_dimension_numbers<[2], [0], [0, 1], [1], [0, 0, 0, 1, 1, 1], [], []>} : vector<8x1x8xbf16>, vector<8x32xbf16>, vector<8x1x32xf32> -> vector<8x1x32xf32>
      %153 = arith.addf %128, %152 : vector<8x1x32xf32>
      %154 = arith.truncf %153 : vector<8x1x32xf32> to vector<8x1x32xbf16>
      "tpu.trace_start"() <{level = 10 : i32, message = "bqd,bkd->bqk"}> : () -> ()
      %cst_77 = arith.constant dense<0.000000e+00> : vector<8x1x8xf32>
      %155 = tpu.matmul %154, %10, %cst_77 {dimension_numbers = #tpu.dot_dimension_numbers<[2], [2], [1], [1], [0, 0, 0, 1, 1, 1], [0], [0]>} : vector<8x1x32xbf16>, vector<8x8x32xbf16>, vector<8x1x8xf32> -> vector<8x1x8xf32>
      "tpu.trace_stop"() : () -> ()
      %156 = vector.broadcast %cst_39 : f32 to vector<8x1x8xf32>
      %157 = arith.mulf %155, %156 : vector<8x1x8xf32>
      %158 = math.tanh %157 : vector<8x1x8xf32>
      %159 = vector.broadcast %cst_40 : f32 to vector<8x1x8xf32>
      %160 = arith.mulf %158, %159 : vector<8x1x8xf32>
      %c1_i32_78 = arith.constant 1 : i32
      %161 = arith.subi %42, %c1_i32_78 : i32
      %c0_79 = arith.constant 0 : index
      %162 = arith.index_cast %161 : i32 to index
      %c0_80 = arith.constant 0 : index
      %163 = vector.load %arg10[%c0_79, %162, %c0_80] : memref<8x7x8xf32, #tpu.memory_space<vmem>>, vector<8x1x8xf32>
      tpu.vector_store %arg10[%c0_79, %162, %c0_80], %160 {strides = array<i32>} : memref<8x7x8xf32, #tpu.memory_space<vmem>>, vector<8x1x8xf32>,
      %164 = vector.shape_cast %160 : vector<8x1x8xf32> to vector<8x8xf32>
      %165 = vector.broadcast %cst_38 : f32 to vector<8x8xf32>
      %166 = arith.select %45, %165, %164 : vector<8x8xi1>, vector<8x8xf32>
      %c1_i32_81 = arith.constant 1 : i32
      %167 = arith.subi %42, %c1_i32_81 : i32
      %c0_82 = arith.constant 0 : index
      %168 = arith.index_cast %167 : i32 to index
      %c0_83 = arith.constant 0 : index
      %169 = vector.load %arg2[%c0_82, %168, %c0_83] : memref<8x7x8xf32, #tpu.memory_space<vmem>>, vector<8x1x8xf32>
      %170 = vector.shape_cast %169 : vector<8x1x8xf32> to vector<8x8xf32>
      %171 = arith.addf %166, %170 : vector<8x8xf32>
      %cst_84 = arith.constant dense<0xFF800000> : vector<8xf32>
      %172 = vector.multi_reduction <maximumf>, %171, %cst_84 [1] : vector<8x8xf32> to vector<8xf32>
      %173 = vector.shape_cast %172 : vector<8xf32> to vector<8x1xf32>
      %174 = vector.broadcast %173 : vector<8x1xf32> to vector<8x8xf32>
      %175 = arith.cmpf oge, %171, %174 : vector<8x8xf32>
      %c8_i32 = arith.constant 8 : i32
      %176 = vector.broadcast %c8_i32 : i32 to vector<8x8xi32>
      %177 = arith.select %175, %1, %176 : vector<8x8xi1>, vector<8x8xi32>
      %cst_85 = arith.constant dense<2147483647> : vector<8xi32>
      %178 = vector.multi_reduction <minsi>, %177, %cst_85 [1] : vector<8x8xi32> to vector<8xi32>
      %179 = vector.shape_cast %178 : vector<8xi32> to vector<8x1xi32>
      %cst_86 = arith.constant dense<0xFF800000> : vector<8xf32>
      %180 = vector.multi_reduction <maximumf>, %166, %cst_86 [1] : vector<8x8xf32> to vector<8xf32>
      %181 = vector.shape_cast %180 : vector<8xf32> to vector<8x1xf32>
      %182 = vector.broadcast %181 : vector<8x1xf32> to vector<8x8xf32>
      %183 = arith.subf %166, %182 : vector<8x8xf32>
      %184 = math.exp %183 : vector<8x8xf32>
      %cst_87 = arith.constant dense<0.000000e+00> : vector<8xf32>
      %185 = vector.multi_reduction <add>, %184, %cst_87 [1] : vector<8x8xf32> to vector<8xf32>
      %186 = vector.shape_cast %185 : vector<8xf32> to vector<8x1xf32>
      %187 = math.log %186 : vector<8x1xf32>
      %188 = arith.addf %181, %187 : vector<8x1xf32>
      %189 = vector.broadcast %179 : vector<8x1xi32> to vector<8x8xi32>
      %190 = arith.cmpi eq, %1, %189 : vector<8x8xi32>
      %cst_88 = arith.constant 0.000000e+00 : f32
      %191 = vector.broadcast %cst_88 : f32 to vector<8x8xf32>
      %192 = arith.select %190, %166, %191 : vector<8x8xi1>, vector<8x8xf32>
      %cst_89 = arith.constant dense<0.000000e+00> : vector<8xf32>
      %193 = vector.multi_reduction <add>, %192, %cst_89 [1] : vector<8x8xf32> to vector<8xf32>
      %194 = vector.shape_cast %193 : vector<8xf32> to vector<8x1xf32>
      %c0_90 = arith.constant 0 : index
      %c0_91 = arith.constant 0 : index
      %195 = vector.load %arg11[%c0_90, %c0_91] : memref<8x1xf32, #tpu.memory_space<vmem>>, vector<8x1xf32>
      %196 = arith.subf %188, %194 : vector<8x1xf32>
      %197 = arith.addf %195, %196 : vector<8x1xf32>
      %c0_92 = arith.constant 0 : index
      %c0_93 = arith.constant 0 : index
      %198 = vector.load %arg11[%c0_92, %c0_93] : memref<8x1xf32, #tpu.memory_space<vmem>>, vector<8x1xf32>
      tpu.vector_store %arg11[%c0_92, %c0_93], %197 {strides = array<i32>} : memref<8x1xf32, #tpu.memory_space<vmem>>, vector<8x1xf32>,
      %199 = vector.broadcast %42 : i32 to vector<8x8xi32>
      %200 = arith.cmpi eq, %1, %199 : vector<8x8xi32>
      %c0_94 = arith.constant 0 : index
      %c0_95 = arith.constant 0 : index
      %201 = vector.load %arg12[%c0_94, %c0_95] : memref<8x8xi32, #tpu.memory_space<vmem>>, vector<8x8xi32>
      %202 = vector.shape_cast %179 : vector<8x1xi32> to vector<8x1xi32>
      %203 = vector.broadcast %202 : vector<8x1xi32> to vector<8x8xi32>
      %204 = arith.select %200, %203, %201 : vector<8x8xi1>, vector<8x8xi32>
      %c0_96 = arith.constant 0 : index
      %c0_97 = arith.constant 0 : index
      %205 = vector.load %arg12[%c0_96, %c0_97] : memref<8x8xi32, #tpu.memory_space<vmem>>, vector<8x8xi32>
      tpu.vector_store %arg12[%c0_96, %c0_97], %204 {strides = array<i32>} : memref<8x8xi32, #tpu.memory_space<vmem>>, vector<8x8xi32>,
      %206 = vector.broadcast %179 : vector<8x1xi32> to vector<8x8xi32>
      %207 = arith.cmpi eq, %1, %206 : vector<8x8xi32>
      %cst_98 = arith.constant 1.000000e+00 : f32
      %208 = vector.broadcast %cst_98 : f32 to vector<8x8xf32>
      %209 = arith.select %207, %208, %43 : vector<8x8xi1>, vector<8x8xf32>
      %c0_99 = arith.constant 0 : index
      %c0_100 = arith.constant 0 : index
      %210 = vector.load %arg13[%c0_99, %c0_100] : memref<8x8xf32, #tpu.memory_space<vmem>>, vector<8x8xf32>
      tpu.vector_store %arg13[%c0_99, %c0_100], %209 {strides = array<i32>} : memref<8x8xf32, #tpu.memory_space<vmem>>, vector<8x8xf32>,
      %211 = vector.broadcast %179 : vector<8x1xi32> to vector<8x8xi32>
      %212 = arith.cmpi eq, %1, %211 : vector<8x8xi32>
      %213 = arith.extui %212 : vector<8x8xi1> to vector<8x8xi32>
      %214 = arith.sitofp %213 : vector<8x8xi32> to vector<8x8xf32>
      %215 = arith.truncf %214 : vector<8x8xf32> to vector<8x8xbf16>
      %216 = vector.shape_cast %215 : vector<8x8xbf16> to vector<8x1x8xbf16>
      "tpu.trace_start"() <{level = 10 : i32, message = "bqk,bkd->bqd"}> : () -> ()
      %cst_101 = arith.constant dense<0.000000e+00> : vector<8x1x32xf32>
      %217 = tpu.matmul %216, %0, %cst_101 {dimension_numbers = #tpu.dot_dimension_numbers<[2], [1], [1], [2], [0, 0, 0, 1, 1, 2], [0], [0]>} : vector<8x1x8xbf16>, vector<8x8x32xbf16>, vector<8x1x32xf32> -> vector<8x1x32xf32>
      "tpu.trace_stop"() : () -> ()
      %218 = vector.shape_cast %217 : vector<8x1x32xf32> to vector<8x32xf32>
      %219 = arith.truncf %218 : vector<8x32xf32> to vector<8x32xbf16>
      %cst_102 = arith.constant dense<0.000000e+00> : vector<8x32xf32>
      %220 = tpu.matmul %219, %17, %cst_102 {dimension_numbers = #tpu.dot_dimension_numbers<[1], [0], [0], [1], [0, 0, 1, 1], [], []>} : vector<8x32xbf16>, vector<32x32xbf16>, vector<8x32xf32> -> vector<8x32xf32>
      %c0_103 = arith.constant 0 : index
      %c0_104 = arith.constant 0 : index
      %221 = vector.load %arg14[%c0_103, %c0_104] : memref<8x32xf32, #tpu.memory_space<vmem>>, vector<8x32xf32>
      tpu.vector_store %arg14[%c0_103, %c0_104], %220 {strides = array<i32>} : memref<8x32xf32, #tpu.memory_space<vmem>>, vector<8x32xf32>,
      %c1_i32_105 = arith.constant 1 : i32
      %222 = arith.cmpi eq, %42, %c1_i32_105 : i32
      %223 = arith.extui %222 : i1 to i32
      %c0_i32_106 = arith.constant 0 : i32
      %224 = arith.cmpi ne, %223, %c0_i32_106 : i32
      scf.if %224 {
        %cst_107 = arith.constant dense<0.000000e+00> : vector<8x32xf32>
        %225 = tpu.matmul %219, %18, %cst_107 {dimension_numbers = #tpu.dot_dimension_numbers<[1], [0], [0], [1], [0, 0, 1, 1], [], []>} : vector<8x32xbf16>, vector<32x32xbf16>, vector<8x32xf32> -> vector<8x32xf32>
        %c0_108 = arith.constant 0 : index
        %c0_109 = arith.constant 0 : index
        %226 = vector.load %arg15[%c0_108, %c0_109] : memref<8x32xf32, #tpu.memory_space<vmem>>, vector<8x32xf32>
        tpu.vector_store %arg15[%c0_108, %c0_109], %225 {strides = array<i32>} : memref<8x32xf32, #tpu.memory_space<vmem>>, vector<8x32xf32>,
      } else {
      }
    }
    %c7_i32_42 = arith.constant 7 : i32
    return
  }
  func.func @transform_0(%arg0: i32) -> (i32, i32, i32) {
    %c0_i32 = arith.constant 0 : i32
    %c0_i32_0 = arith.constant 0 : i32
    %c0_i32_1 = arith.constant 0 : i32
    return %arg0, %c0_i32, %c0_i32_0 : i32, i32, i32
  }
  func.func @transform_1(%arg0: i32) -> (i32, i32, i32) {
    %c0_i32 = arith.constant 0 : i32
    %c0_i32_0 = arith.constant 0 : i32
    %c0_i32_1 = arith.constant 0 : i32
    return %arg0, %c0_i32, %c0_i32_0 : i32, i32, i32
  }
  func.func @transform_2(%arg0: i32) -> (i32, i32) {
    %c0_i32 = arith.constant 0 : i32
    %c0_i32_0 = arith.constant 0 : i32
    %c0_i32_1 = arith.constant 0 : i32
    return %c0_i32, %c0_i32_0 : i32, i32
  }
  func.func @transform_3(%arg0: i32) -> (i32, i32) {
    %c0_i32 = arith.constant 0 : i32
    %c0_i32_0 = arith.constant 0 : i32
    %c0_i32_1 = arith.constant 0 : i32
    return %c0_i32, %c0_i32_0 : i32, i32
  }
  func.func @transform_4(%arg0: i32) -> (i32, i32) {
    %c0_i32 = arith.constant 0 : i32
    %c0_i32_0 = arith.constant 0 : i32
    %c0_i32_1 = arith.constant 0 : i32
    return %c0_i32, %c0_i32_0 : i32, i32
  }
  func.func @transform_5(%arg0: i32) -> (i32, i32) {
    %c0_i32 = arith.constant 0 : i32
    %c0_i32_0 = arith.constant 0 : i32
    %c0_i32_1 = arith.constant 0 : i32
    return %c0_i32, %c0_i32_0 : i32, i32
  }
  func.func @transform_6(%arg0: i32) -> (i32, i32) {
    %c0_i32 = arith.constant 0 : i32
    %c0_i32_0 = arith.constant 0 : i32
    %c0_i32_1 = arith.constant 0 : i32
    return %c0_i32, %c0_i32_0 : i32, i32
  }
  func.func @transform_7(%arg0: i32) -> (i32, i32) {
    %c0_i32 = arith.constant 0 : i32
    %c0_i32_0 = arith.constant 0 : i32
    %c0_i32_1 = arith.constant 0 : i32
    return %c0_i32, %c0_i32_0 : i32, i32
  }
  func.func @transform_8(%arg0: i32) -> (i32, i32) {
    %c0_i32 = arith.constant 0 : i32
    %c0_i32_0 = arith.constant 0 : i32
    %c0_i32_1 = arith.constant 0 : i32
    return %c0_i32, %c0_i32_0 : i32, i32
  }
  func.func @transform_9(%arg0: i32) -> (i32, i32, i32) {
    %c0_i32 = arith.constant 0 : i32
    %c0_i32_0 = arith.constant 0 : i32
    %c0_i32_1 = arith.constant 0 : i32
    return %arg0, %c0_i32, %c0_i32_0 : i32, i32, i32
  }
  func.func @transform_10(%arg0: i32) -> (i32, i32) {
    %c0_i32 = arith.constant 0 : i32
    %c0_i32_0 = arith.constant 0 : i32
    return %arg0, %c0_i32 : i32, i32
  }
  func.func @transform_11(%arg0: i32) -> (i32, i32) {
    %c0_i32 = arith.constant 0 : i32
    %c0_i32_0 = arith.constant 0 : i32
    return %arg0, %c0_i32 : i32, i32
  }
}

</mosaic_0001>

<bundles_post_ra>
// kernel: tpu_custom_call.1
= control target key start
LH: loop header
LB: loop body
LE: loop exit
PB: predicated region body
PF: predicated region fallthrough
CT: control target
= control target key end

     0   :  { %17 = vsyncpa [#allocation6], 0  ;;  %vm5703_vm0 = vcmask 261120   ;;  %v45_v12 = vlaneseq  ;;  %v4193_v18 = vmov 8.0   ;;  %vm345_vm1 = vcmask 64512   ;;  %s4551_s15 = smov 0   ;;  %s5664_s0 = inlined_call_operand.vmem [shape: bf16[8,8,32], index: 0, kind: input, shape index: {}]   ;;  %s5665_s1 = inlined_call_operand.vmem [shape: f32[8,7,8], index: 1, kind: input, shape index: {}]   ;;  %s5666_s2 = inlined_call_operand.vmem [shape: bf16[1,32], index: 2, kind: input, shape index: {}]   ;;  %s5667_s3 = inlined_call_operand.vmem [shape: bf16[1,32], index: 3, kind: input, shape index: {}]   ;;  %s5668_s4 = inlined_call_operand.vmem [shape: bf16[96,32], index: 4, kind: input, shape index: {}]   ;;  %s5669_s5 = inlined_call_operand.vmem [shape: bf16[32,32], index: 5, kind: input, shape index: {}]   ;;  %s5670_s6 = inlined_call_operand.vmem [shape: bf16[32,32], index: 6, kind: input, shape index: {}]   ;;  %s5671_s7 = inlined_call_operand.vmem [shape: bf16[32,32], index: 7, kind: input, shape index: {}]   ;;  %s5672_s8 = inlined_call_operand.vmem [shape: bf16[32,32], index: 8, kind: input, shape index: {}]   ;;  %s5673_s9 = inlined_call_operand.vmem [shape: f32[8,7,8], index: 9, kind: output, shape index: {0}]   ;;  %s5674_s10 = inlined_call_operand.vmem [shape: f32[8,1], index: 10, kind: output, shape index: {1}]   ;;  %s5675_s11 = inlined_call_operand.hbm [shape: s32[8,8], index: 11, kind: output, shape index: {2}]  }
   0x1   :  { %v3980_v0 = vld [vmem:[%s5669_s5 + $0x8] sm:$0xff]  ;;  %v3979_v3 = vld [vmem:[%s5669_s5] sm:$0xff]  ;;  %v4305_v13 = vld [vmem:[%s5664_s0 + $0x10] sm:$0xf]  ;;  %4008 = vrcp.f32 %v4193_v18  ;;  %vm5699_vm4 = vcmask 7168  }
   0x2   :  { %v3982_v1 = vld [vmem:[%s5670_s6 + $0x8] sm:$0xff]  ;;  %102 = vmatpush.bf16.msra.mxu0 %v3980_v0  ;;  %v3981_v4 = vld [vmem:[%s5670_s6] sm:$0xff]  ;;  %5754 = vst [vmem:[#allocation12_spill] sm:$0xff] %v4305_v13  ;;  %v4310_v14 = vld [vmem:[%s5664_s0 + $0x14] sm:$0xf]  ;;  %v243_v21 = vunpack.c.l.bf16 %v4305_v13 }
   0x3   :  { %v3984_v2 = vld [vmem:[%s5672_s8 + $0x8] sm:$0xff]  ;;  %155 = vmatpush.bf16.msra.mxu1 %v3982_v1  ;;  %v4280_v5 = vld [vmem:[%s5664_s0] sm:$0xf]  ;;  %v4285_v6 = vld [vmem:[%s5664_s0 + $0x4] sm:$0xf]  ;;  %5755 = vst [vmem:[#allocation13_spill] sm:$0xff] %v4310_v14  ;;  %v244_v22 = vunpack.c.l.bf16 %v4310_v14 }
   0x4   :  { %5750 = vst [vmem:[#allocation8_spill] sm:$0xff] %v4280_v5  ;;  %208 = vmatpush.bf16.msra.mxu2 %v3984_v2  ;;  %v3983_v7 = vld [vmem:[%s5672_s8] sm:$0xff]  ;;  %v4293_v8 = vld [vmem:[%s5664_s0 + $0x8] sm:$0xf]  ;;  %v4298_v9 = vld [vmem:[%s5664_s0 + $0xc] sm:$0xf]  ;;  %v239_v10 = vunpack.c.l.bf16 %v4280_v5  ;;  %v240_v11 = vunpack.c.l.bf16 %v4285_v6 }
   0x5   :  { %5751 = vst [vmem:[#allocation9_spill] sm:$0xff] %v4285_v6  ;;  %v4315_v15 = vld [vmem:[%s5664_s0 + $0x18] sm:$0xf]  ;;  %v241_v16 = vunpack.c.l.bf16 %v4293_v8  ;;  %v242_v17 = vunpack.c.l.bf16 %v4298_v9  ;;  %v3975_v19 = vld [vmem:[%s5664_s0] sm:$0xff]  ;;  %v4325_v20 = vld [vmem:[%s5664_s0 + $0x1c] sm:$0xf] }
   0x6   :  { %5752 = vst [vmem:[#allocation10_spill] sm:$0xff] %v4293_v8  ;;  %v245_v23 = vunpack.c.l.bf16 %v4315_v15  ;;  %v247_v24 = vsel %vm5703_vm0, %v239_v10, 0.0  ;;  %v4334_v25 = vld [vmem:[%s5668_s4] sm:$0xf]  ;;  %103 = vmatpush.bf16.msra.mxu0 %v3979_v3  ;;  %v246_v26 = vunpack.c.l.bf16 %v4325_v20  ;;  %v254_v28 = vsel %vm5703_vm0, %v240_v11, 0.0 }
   0x7   :  { %5753 = vst [vmem:[#allocation11_spill] sm:$0xff] %v4298_v9  ;;  %156 = vmatpush.bf16.msra.mxu1 %v3981_v4  ;;  %v248_v27 = vrot.slane %v247_v24, 4  ;;  %v261_v29 = vsel %vm5703_vm0, %v241_v16, 0.0  ;;  %v4342_v30 = vld [vmem:[%s5668_s4] sm:$0xf0]  ;;  %v255_v31 = vrot.slane %v254_v28, 4  ;;  %v4360_v45 = vpop.eup %4008 }
   0x8   :  { %5756 = vst [vmem:[#allocation14_spill] sm:$0xff] %v4315_v15  ;;  %209 = vmatpush.bf16.msra.mxu2 %v3983_v7  ;;  %v262_v32 = vrot.slane %v261_v29, 4  ;;  %v268_v33 = vsel %vm5703_vm0, %v242_v17, 0.0  ;;  %v275_v34 = vsel %vm5703_vm0, %v243_v21, 0.0  ;;  %v4349_v35 = vld [vmem:[%s5668_s4 + $0x8] sm:$0xf]  ;;  %vm308_vm3 = vweird.f32 %v4360_v45 }
   0x9   :  { %5757 = vst [vmem:[#allocation15_spill] sm:$0xff] %v4325_v20  ;;  %v249_v36 = vadd.f32 %v248_v27, %v247_v24  ;;  %v269_v37 = vrot.slane %v268_v33, 4  ;;  %v276_v38 = vrot.slane %v275_v34, 4  ;;  %v282_v39 = vsel %vm5703_vm0, %v244_v22, 0.0  ;;  %v4355_v40 = vld [vmem:[%s5668_s4 + $0x8] sm:$0xf0]  ;;  %3791 = vmatmul.msk.bf16.vlgmr.msra.gmra.mxu0 %vm5703_vm0, %v3975_v19 }
   0xa   :  { %5758 = vst [vmem:[#allocation16_spill] sm:$0xff] %v4334_v25  ;;  %v256_v41 = vadd.f32 %v255_v31, %v254_v28  ;;  %v263_v42 = vadd.f32 %v262_v32, %v261_v29  ;;  %v283_v43 = vrot.slane %v282_v39, 4  ;;  %v289_v44 = vsel %vm5703_vm0, %v245_v23, 0.0  ;;  %3803 = vmatmul.msk.bf16.vlgmr.msra.gmra.mxu1 %vm5703_vm0, %v3975_v19  ;;  %v4366_v50 = vld [vmem:[%s5671_s7] sm:$0xf] }
   0xb   :  { %5759 = vst [vmem:[#allocation17_spill] sm:$0xff] %v4342_v30  ;;  %v250_v46 = vrot.slane %v249_v36, 2  ;;  %v270_v47 = vadd.f32 %v269_v37, %v268_v33  ;;  %v277_v48 = vadd.f32 %v276_v38, %v275_v34  ;;  %v290_v49 = vrot.slane %v289_v44, 4  ;;  %3815 = vmatmul.msk.bf16.vlgmr.msra.gmra.mxu2 %vm5703_vm0, %v3975_v19  ;;  %v4371_v51 = vld [vmem:[%s5671_s7 + $0x4] sm:$0xf]  ;;  %v3976_v37 = vld [vmem:[%s5664_s0 + $0x8] sm:$0xff] }
   0xc   :  { %5760 = vst [vmem:[#allocation18_spill] sm:$0xff] %v4349_v35  ;;  %v257_v52 = vrot.slane %v256_v41, 2  ;;  %v264_v53 = vrot.slane %v263_v42, 2  ;;  %v284_v54 = vadd.f32 %v283_v43, %v282_v39  ;;  %v296_v55 = vsel %vm5703_vm0, %v246_v26, 0.0  ;;  %v4377_v56 = vld [vmem:[%s5671_s7 + $0x8] sm:$0xf] }
   0xd   :  { %5761 = vst [vmem:[#allocation19_spill] sm:$0xff] %v4355_v40  ;;  %v271_v57 = vrot.slane %v270_v47, 2  ;;  %v278_v58 = vrot.slane %v277_v48, 2  ;;  %v291_v59 = vadd.f32 %v290_v49, %v289_v44  ;;  %v4382_v60 = vld [vmem:[%s5671_s7 + $0xc] sm:$0xf]  ;;  %v251_v61 = vadd.f32 %v250_v46, %v249_v36 }
   0xe   :  { %5762 = vst [vmem:[#allocation20_spill] sm:$0xff] %v4366_v50  ;;  %v285_v62 = vrot.slane %v284_v54, 2  ;;  %v297_v63 = vrot.slane %v296_v55, 4  ;;  %v258_v0 = vadd.f32 %v257_v52, %v256_v41  ;;  %v265_v1 = vadd.f32 %v264_v53, %v263_v42  ;;  %v3826_v19 = vld [vmem:[%s5668_s4 + $0x18] sm:$0xf]  ;;  %v4406_v42 = vld [vmem:[%s5668_s4 + $0x10] sm:$0xff] }
   0xf   :  { %5763 = vst [vmem:[#allocation21_spill] sm:$0xff] %v4371_v51  ;;  %v272_v2 = vadd.f32 %v271_v57, %v270_v47  ;;  %v292_v3 = vrot.slane %v291_v59, 2  ;;  %v4384_v4 = vand.u32 127, %v45_v12  ;;  %v279_v7 = vadd.f32 %v278_v58, %v277_v48  ;;  %v3988_v21 = vld [vmem:[%s5668_s4 + $0x18] sm:$0xf0]  ;;  %v4412_v47 = vld [vmem:[%s5668_s4 + $0x28] sm:$0xff] }
  0x10   :  { %5764 = vst [vmem:[#allocation22_spill] sm:$0xff] %v4377_v56  ;;  %v286_v10 = vadd.f32 %v285_v62, %v284_v54  ;;  %v298_v11 = vadd.f32 %v297_v63, %v296_v55  ;;  %v252_v17 = vrot.slane %v251_v61, 1  ;;  %v259_v22 = vrot.slane %v258_v0, 1  ;;  %v347_v55 = vld [vmem:[%s5666_s2] sm:$0x1] }
  0x11   :  { %5765 = vst [vmem:[#allocation23_spill] sm:$0xff] %v4382_v60  ;;  %v293_v16 = vadd.f32 %v292_v3, %v291_v59  ;;  %v266_v23 = vrot.slane %v265_v1, 1  ;;  %v273_v24 = vrot.slane %v272_v2, 1  ;;  %v304_v12 = vmul.f32 8.0, %v4360_v45 }
  0x12   :  { %5766 = vst [vmem:[#allocation24_spill] sm:$0xff] %v4384_v4  ;;  %v299_v18 = vrot.slane %v298_v11, 2  ;;  %v280_v26 = vrot.slane %v279_v7, 1  ;;  %v287_v27 = vrot.slane %v286_v10, 1  ;;  %vm342_vm2 = vcmp.eq.s32.totalorder %v4384_v4, 0 }
  0x13   :  { %v294_v29 = vrot.slane %v293_v16, 1  ;;  %v305_v31 = vsub.f32 1.0, %v304_v12  ;;  %v4194_v32 = vmov 0.0   ;;  %v4395_v34 = vor.u32 %v3988_v21, %v3826_v19  ;;  %5768 = vst [vmem:[#allocation26_spill] sm:$0xff] %v4406_v42  ;;  %v3977_v19 = vld [vmem:[%s5664_s0 + $0x10] sm:$0xff] }
  0x14   :  { %v300_v28 = vadd.f32 %v299_v18, %v298_v11  ;;  %v3819_v33 = vsel %vm342_vm2, 1.0, %v4194_v32  ;;  %v253_v38 = vadd.f32 %v252_v17, %v251_v61  ;;  %v260_v39 = vadd.f32 %v259_v22, %v258_v0  ;;  %5769 = vst [vmem:[#allocation27_spill] sm:$0xff] %v4412_v47  ;;  %v378_v21 = vld [vmem:[%s5667_s3] sm:$0x1]  ;;  %v3978_v22 = vld [vmem:[%s5664_s0 + $0x18] sm:$0xff] }
  0x15   :  { %5767 = vst [vmem:[#allocation25_spill] sm:$0xff] %v4395_v34  ;;  %v306_v41 = vmul.f32 %v4360_v45, %v305_v31  ;;  %369 = vmatpush.bf16.msra.mxu3 %v4395_v34  ;;  %v267_v43 = vadd.f32 %v266_v23, %v265_v1  ;;  %v274_v44 = vadd.f32 %v273_v24, %v272_v2 }
  0x16   :  { %v301_v36 = vrot.slane %v300_v28, 1  ;;  %346 = vst.msk [vmem:[#allocation2] sm:$0xff] %vm345_vm1, %v3819_v33  ;;  %v281_v46 = vadd.f32 %v280_v26, %v279_v7  ;;  %v288_v48 = vadd.f32 %v287_v27, %v286_v10  ;;  %v295_v49 = vadd.f32 %v294_v29, %v293_v16 }
  0x17   :  { %v307_v53 = vadd.f32 %v4360_v45, %v306_v41  ;;  %410 = vst.msk [vmem:[%s5674_s10] sm:$0xff] %vm5699_vm4, %v4194_v32 }
  0x18   :  { %v302_v52 = vadd.f32 %v301_v36, %v300_v28 }
  0x19   :  { %3792 = vmatmul.msk.bf16.gmra.mxu0 %vm5703_vm0, %v3976_v37  ;;  %v309_v54 = vsel %vm308_vm3, %v4360_v45, %v307_v53  ;;  %370 = vmatpush.bf16.msra.mxu3 %v4406_v42  ;;  %v4435_v45 = vld [vmem:[%s5668_s4 + $0x20] sm:$0xff] }
  0x1a   :  { %3804 = vmatmul.msk.bf16.gmra.mxu1 %vm5703_vm0, %v3976_v37  ;;  %v4423_v57 = vmul.f32 %v309_v54, %v253_v38  ;;  %v4425_v58 = vmul.f32 %v309_v54, %v260_v39  ;;  %v4427_v59 = vmul.f32 %v309_v54, %v267_v43  ;;  %v4429_v61 = vmul.f32 %v309_v54, %v274_v44 }
  0x1b   :  { %3816 = vmatmul.msk.bf16.gmra.mxu2 %vm5703_vm0, %v3976_v37  ;;  %5774 = vst [vmem:[#allocation32_spill] sm:$0xff] %v4435_v45  ;;  %v4437_v62 = vmul.f32 %v309_v54, %v281_v46  ;;  %v4439_v63 = vmul.f32 %v309_v54, %v288_v48  ;;  %v4441_v0 = vmul.f32 %v309_v54, %v295_v49 }
  0x1c   :  { %5770 = vst [vmem:[#allocation28_spill] sm:$0xff] %v4423_v57  ;;  %v4443_v1 = vmul.f32 %v309_v54, %v302_v52  ;;  %3828 = vmatmul.msk.bf16.vlgmr.msra.gmra.mxu3 %vm5703_vm0, %v347_v55 }
  0x1d   :  { %5771 = vst [vmem:[#allocation29_spill] sm:$0xff] %v4425_v58  ;;  %400 = vmatpush.bf16.msrb.mxu3 %v4412_v47 }
  0x1e   :  { %5772 = vst [vmem:[#allocation30_spill] sm:$0xff] %v4427_v59 }
  0x1f   :  { %5773 = vst [vmem:[#allocation31_spill] sm:$0xff] %v4429_v61 }
  0x20   :  { %5775 = vst [vmem:[#allocation33_spill] sm:$0xff] %v4437_v62 }
  0x21   :  { %5776 = vst [vmem:[#allocation34_spill] sm:$0xff] %v4439_v63  ;;  %401 = vmatpush.bf16.msrb.mxu3 %v4435_v45 }
  0x22   :  { %5777 = vst [vmem:[#allocation35_spill] sm:$0xff] %v4441_v0 }
  0x23   :  { %5778 = vst [vmem:[#allocation36_spill] sm:$0xff] %v4443_v1 }
  0x29   :  { %3793 = vmatmul.msk.bf16.gmra.mxu0 %vm5703_vm0, %v3977_v19 }
  0x2a   :  { %3805 = vmatmul.msk.bf16.gmra.mxu1 %vm5703_vm0, %v3977_v19 }
  0x2b   :  { %3817 = vmatmul.msk.bf16.gmra.mxu2 %vm5703_vm0, %v3977_v19 }
  0x2c   :  { %3837 = vmatmul.msk.bf16.vlgmr.msrb.gmra.mxu3 %vm5703_vm0, %v378_v21 }
  0x39   :  { %3794 = vmatmul.msk.bf16.gmra.mxu0 %vm5703_vm0, %v3978_v22 }
  0x3a   :  { %3806 = vmatmul.msk.bf16.gmra.mxu1 %vm5703_vm0, %v3978_v22 }
  0x3b   :  { %3818 = vmatmul.msk.bf16.gmra.mxu2 %vm5703_vm0, %v3978_v22 }
  0x86   :  { %v105_v23 = vpop.f32.mrf.mxu0 }
  0x87   :  { %v158_v24 = vpop.f32.mrf.mxu1  ;;  %v4479_v12 = vpack.c.bf16 %v105_v23, %v105_v23 }
  0x88   :  { %v4481_v26 = vpack.c.bf16 %v158_v24, %v158_v24 }
  0x89   :  { %5779 = vst [vmem:[#allocation37_spill] sm:$0xff] %v4479_v12 }
  0x8a   :  { %5780 = vst [vmem:[#allocation38_spill] sm:$0xff] %v4481_v26 }
  0x8e   :  { %v4483_v27 = vpop.f32.mrf.mxu2  ;;  %v107_v29 = vpop.f32.mrf.mxu0 }
  0x8f   :  { %5781 = vst [vmem:[#allocation39_spill] sm:$0xff] %v4483_v27  ;;  %v160_v31 = vpop.f32.mrf.mxu1  ;;  %v4487_v33 = vpack.c.bf16 %v107_v29, %v107_v29 }
  0x90   :  { %v4489_v36 = vpack.c.bf16 %v160_v31, %v160_v31 }
  0x91   :  { %5782 = vst [vmem:[#allocation40_spill] sm:$0xff] %v4487_v33 }
  0x96   :  { %v4491_v37 = vpop.f32.mrf.mxu2  ;;  %v110_v39 = vpop.f32.mrf.mxu0 }
  0x97   :  { %5783 = vst [vmem:[#allocation41_spill] sm:$0xff] %v4491_v37  ;;  %v163_v41 = vpop.f32.mrf.mxu1  ;;  %v4495_v43 = vpack.c.bf16 %v110_v39, %v110_v39  ;;  %v4195_v39 = vmov 0  }
  0x98   :  { %v4497_v44 = vpack.c.bf16 %v163_v41, %v163_v41  ;;  %411 = vst.msk [vmem:[#allocation5] sm:$0xff] %vm345_vm1, %v4195_v39 }
  0x99   :  { %5784 = vst [vmem:[#allocation42_spill] sm:$0xff] %v4495_v43 }
  0x9e   :  { %v4499_v46 = vpop.f32.mrf.mxu2  ;;  %v112_v49 = vpop.f32.mrf.mxu0 }
  0x9f   :  { %5785 = vst [vmem:[#allocation43_spill] sm:$0xff] %v4499_v46  ;;  %v165_v52 = vpop.f32.mrf.mxu1  ;;  %v4503_v53 = vpack.c.bf16 %v112_v49, %v112_v49  ;;  %v372_v55 = vpop.f32.mrf.mxu3 }
  0xa0   :  { %v4505_v54 = vpack.c.bf16 %v165_v52, %v165_v52  ;;  %v376_v19 = vperm.slane %v372_v55, 0 }
  0xa1   :  { %5786 = vst [vmem:[#allocation44_spill] sm:$0xff] %v4503_v53 }
  0xa2   :  { %377 = vst.msk [vmem:[#allocation3] sm:$0xff] %vm5703_vm0, %v376_v19 }
  0xa6   :  { %v4508_v21 = vpop.f32.mrf.mxu2  ;;  %v115_v23 = vpop.f32.mrf.mxu0 }
  0xa7   :  { %5787 = vst [vmem:[#allocation45_spill] sm:$0xff] %v4508_v21  ;;  %v168_v24 = vpop.f32.mrf.mxu1  ;;  %v4517_v29 = vpack.c.bf16 %v115_v23, %v115_v23  ;;  %v374_v41 = vpop.f32.mrf.mxu3 }
  0xa8   :  { %v4519_v31 = vpack.c.bf16 %v168_v24, %v168_v24 }
  0xa9   :  { %5788 = vst [vmem:[#allocation46_spill] sm:$0xff] %v4517_v29 }
  0xaa   :  { %5789 = vst [vmem:[#allocation47_spill] sm:$0xff] %v4519_v31 }
  0xae   :  { %v4522_v49 = vpop.f32.mrf.mxu2  ;;  %v117_v55 = vpop.f32.mrf.mxu0 }
  0xaf   :  { %5790 = vst [vmem:[#allocation48_spill] sm:$0xff] %v4522_v49  ;;  %v170_v19 = vpop.f32.mrf.mxu1  ;;  %v4526_v22 = vpack.c.bf16 %v117_v55, %v117_v55  ;;  %v403_v32 = vpop.f32.mrf.mxu3 }
  0xb0   :  { %v4528_v48 = vpack.c.bf16 %v170_v19, %v170_v19  ;;  %v407_v23 = vperm.slane %v403_v32, 0 }
  0xb1   :  { %5791 = vst [vmem:[#allocation49_spill] sm:$0xff] %v4526_v22 }
  0xb2   :  { %408 = vst.msk [vmem:[#allocation4] sm:$0xff] %vm5703_vm0, %v407_v23 }
  0xb6   :  { %v4531_v24 = vpop.f32.mrf.mxu2  ;;  %v120_v41 = vpop.f32.mrf.mxu0 }
  0xb7   :  { %5792 = vst [vmem:[#allocation50_spill] sm:$0xff] %v4531_v24  ;;  %v173_v38 = vpop.f32.mrf.mxu1  ;;  %v4535_v28 = vpack.c.bf16 %v120_v41, %v120_v41  ;;  %v405_v18 = vpop.f32.mrf.mxu3 }
  0xb8   :  { %v4537_v52 = vpack.c.bf16 %v173_v38, %v173_v38 }
  0xb9   :  { %5793 = vst [vmem:[#allocation51_spill] sm:$0xff] %v4535_v28 }
  0xbe   :  { %v4539_v55 = vpop.f32.mrf.mxu2  ;;  %v122_v32 = vpop.f32.mrf.mxu0 }
  0xbf   :  { %5794 = vst [vmem:[#allocation52_spill] sm:$0xff] %v4539_v55  ;;  %v175_v17 = vpop.f32.mrf.mxu1  ;;  %v4543_v23 = vpack.c.bf16 %v122_v32, %v122_v32 }
  0xc0   :  { %v4545_v16 = vpack.c.bf16 %v175_v17, %v175_v17 }
  0xc1   :  { %5795 = vst [vmem:[#allocation53_spill] sm:$0xff] %v4543_v23 }
  0xc2   :  { %5796 = vst [vmem:[#allocation54_spill] sm:$0xff] %v4545_v16 }
  0xc6   :  { %v4547_v11 = vpop.f32.mrf.mxu2 }
  0xc7   :  { %5797 = vst [vmem:[#allocation55_spill] sm:$0xff] %v4547_v11 }
  0xc8 LB: > { %v5798_v31 = vld [vmem:[#allocation47_spill] sm:$0xff]  ;;  %v5799_v26 = vld [vmem:[#allocation38_spill] sm:$0xff]  ;;  %v5801_v53 = vld [vmem:[#allocation44_spill] sm:$0xff]  ;;  %vm5745_vm5 = vcmask 1041409   ;;  %vm5744_vm6 = vcmask 1042434   ;;  %vm5735_vm7 = vcmask 1043459   ;;  %s5536_s20 = scalar_lea.vmem %s5673_s9, %s4191_s15  ;;  %s5542_s22 = scalar_lea.vmem %s5665_s1, %s4191_s15  ;;  %s4191_s15 = sphi %s4551_s15, %s5611_s15  }
  0xc9   : > { %v5800_v16 = vld [vmem:[#allocation54_spill] sm:$0xff]  ;;  %v5803_v28 = vld [vmem:[#allocation51_spill] sm:$0xff]  ;;  %v5804_v23 = vld [vmem:[#allocation53_spill] sm:$0xff]  ;;  %vm5727_vm8 = vcmask 1044484   ;;  %vm5723_vm9 = vcmask 1045509   ;;  %vm5721_vm10 = vcmask 1046534  }
  0xca   : > { %v5802_v29 = vld [vmem:[#allocation46_spill] sm:$0xff]  ;;  %v5805_v22 = vld [vmem:[#allocation49_spill] sm:$0xff]  ;;  %v5807_v33 = vld [vmem:[#allocation40_spill] sm:$0xff]  ;;  %vm5716_vm11 = vcmask 1047559   ;;  %vm5829_vm0 = vcmask 261120   ;;  %vm5701_vm12 = vcmask 1040384  }
  0xcb   : > { %v5806_v12 = vld [vmem:[#allocation37_spill] sm:$0xff]  ;;  %v5808_v63 = vld [vmem:[#allocation34_spill] sm:$0xff]  ;;  %v5810_v61 = vld [vmem:[#allocation31_spill] sm:$0xff]  ;;  %s4196_s16 = smov 120   ;;  %vm5734_vm14 = vcmask 57344   ;;  %s4198_s17 = smov 112  }
  0xcc   : > { %v5809_v62 = vld [vmem:[#allocation33_spill] sm:$0xff]  ;;  %v5811_v59 = vld [vmem:[#allocation30_spill] sm:$0xff]  ;;  %v5813_v57 = vld [vmem:[#allocation28_spill] sm:$0xff]  ;;  %v5822_v10 = vpack.c.bf16 %v5810_v61, %v5810_v61  ;;  %s4199_s8 = smov 104   ;;  %s5611_s15 = sadd.s32 1, %s4191_s15  }
  0xcd   : > { %v5812_v58 = vld [vmem:[#allocation29_spill] sm:$0xff]  ;;  %v5814_v43 = vld [vmem:[#allocation42_spill] sm:$0xff]  ;;  %v5815_v1 = vld [vmem:[#allocation36_spill] sm:$0xff]  ;;  %v5819_v2 = vpack.c.bf16 %v5813_v57, %v5813_v57  ;;  %v5821_v7 = vpack.c.bf16 %v5811_v59, %v5811_v59  ;;  %v5825_v39 = vpack.c.bf16 %v5809_v62, %v5809_v62  ;;  %p3973_p0 = scmp.ne.s32.totalorder %s5611_s15, 1 }
  0xce   : > { %v5816_v0 = vld [vmem:[#allocation35_spill] sm:$0xff]  ;;  %v5817_v35 = vld [vmem:[#allocation18_spill] sm:$0xff]  ;;  %v5820_v3 = vpack.c.bf16 %v5812_v58, %v5812_v58  ;;  %v448_v41 = vunpack.c.l.b16 %v5822_v10  ;;  %v5823_v25 = vld [vmem:[#allocation16_spill] sm:$0xff] }
  0xcf   : > { %v5818_v40 = vld [vmem:[#allocation19_spill] sm:$0xff]  ;;  %v445_v17 = vunpack.c.l.b16 %v5819_v2  ;;  %v447_v32 = vunpack.c.l.b16 %v5821_v7  ;;  %v5824_v30 = vld [vmem:[#allocation17_spill] sm:$0xff]  ;;  %v449_v2 = vunpack.c.l.b16 %v5825_v39  ;;  %v5828_v39 = vpack.c.bf16 %v5815_v1, %v5815_v1 }
  0xd0   : > { %v3845_v18 = vor.u32 %v5818_v40, %v5817_v35  ;;  %v446_v38 = vunpack.c.l.b16 %v5820_v3  ;;  %v3841_v19 = vor.u32 %v5824_v30, %v5823_v25  ;;  %v5826_v3 = vpack.c.bf16 %v5808_v63, %v5808_v63 }
  0xd1   : > { %v452_v30 = vunpack.c.l.b16 %v5828_v39 }
  0xd2   : > { %489 = vmatpush.bf16.msra.mxu0 %v3845_v18  ;;  %v450_v35 = vunpack.c.l.b16 %v5826_v3  ;;  %v454_v7 = vsel %vm5745_vm5, %v446_v38, %v445_v17  ;;  %v5827_v18 = vpack.c.bf16 %v5816_v0, %v5816_v0 }
  0xd3   : > { %v456_v25 = vsel %vm5744_vm6, %v447_v32, %v454_v7  ;;  %v529_v7 = vsel %vm345_vm1, %v5806_v12, 0  ;;  %v496_v32 = vld [vmem:[#allocation4] sm:$0xff] }
  0xd4   : > { %v451_v10 = vunpack.c.l.b16 %v5827_v18  ;;  %v458_v40 = vsel %vm5735_vm7, %v448_v41, %v456_v25  ;;  %538 = vmatpush.bf16.xpose.msra.mxu1 %v529_v7  ;;  %v550_v25 = vsel %vm345_vm1, %v5807_v33, 0 }
  0xd5   : > { %v460_v3 = vsel %vm5727_vm8, %v449_v2, %v458_v40  ;;  %v571_v40 = vsel %vm345_vm1, %v5814_v43, 0  ;;  %559 = vmatpush.bf16.xpose.msra.mxu2 %v550_v25  ;;  %v655_v2 = vsel %vm345_vm1, %v5803_v28, 0 }
  0xd6   : > { %490 = vmatpush.bf16.msra.mxu0 %v3841_v19  ;;  %v462_v17 = vsel %vm5723_vm9, %v450_v35, %v460_v3  ;;  %v592_v35 = vsel %vm345_vm1, %v5801_v53, 0  ;;  %580 = vmatpush.bf16.xpose.msra.mxu3 %v571_v40  ;;  %v436_v19 = vld [vmem:[#allocation3] sm:$0xff]  ;;  %v1124_v3 = vunpack.c.l.b16 %v5814_v43 }
  0xd7   : > { %v464_v38 = vsel %vm5721_vm10, %v451_v10, %v462_v17  ;;  %v676_v10 = vsel %vm345_vm1, %v5804_v23, 0 }
  0xd8   : > { %v466_v18 = vsel %vm5716_vm11, %v452_v30, %v464_v38  ;;  %v613_v30 = vsel %vm345_vm1, %v5802_v29, 0  ;;  %v4609_v38 = vpack.c.b16 %v1124_v3, %v1124_v3  ;;  %vm5746_vm11 = vcmask 1043456  }
  0xd9   : > { %v467_v0 = vpack.c.b16 %v466_v18, %v466_v18 }
  0xda   : > { %601 = vmatpush.bf16.xpose.msrb.mxu0 %v592_v35  ;;  %1126 = vrot.lane.b32.xlu2 %v4609_v38, %s4196_s16 }
  0xdb   : > { %3846 = vmatmul.msk.bf16.vlgmr.msra.gmra.mxu0 %vm5829_vm0, %v467_v0  ;;  %v634_v0 = vsel %vm345_vm1, %v5805_v22, 0 }
  0xdc   : > { %622 = vmatpush.bf16.xpose.msrb.mxu1 %v613_v30 }
  0xdd   : > { %643 = vmatpush.bf16.xpose.msrb.mxu2 %v634_v0 }
  0xde   : > { %664 = vmatpush.bf16.xpose.msrb.mxu3 %v655_v2 }
  0xe2   : > { %685 = vmatpush.bf16.xpose.msra.mxu0 %v676_v10 }
 0x134   : > { %v4724_v4 = vpop.permute.xlu2 %1126 }
 0x158   : > { %v492_v41 = vpop.f32.mrf.mxu0 }
 0x159   : > { %v493_v39 = vadd.f32 %v492_v41, %v436_v19 }
 0x15b   : > { %v497_v17 = vadd.f32 %v496_v32, %v493_v39 }
 0x15d   : > { %v498_v18 = vpack.c.bf16 %v497_v17, %v497_v17 }
 0x15f   : > { %v500_v7 = vrot.slane %v498_v18, 3 }
 0x160   : > { %v494_v25 = vpop.f32.mrf.mxu0 }
 0x161   : > { %v504_v40 = vsel %vm5701_vm12, %v498_v18, %v500_v7  ;;  %v506_v35 = vsel %vm5745_vm5, %v498_v18, %v500_v7  ;;  %v509_v25 = vsel %vm5744_vm6, %v498_v18, %v500_v7 }
 0x162   : > { %v3847_v30 = vpack.i.b16 %v504_v40, %v504_v40  ;;  %v516_v0 = vunpack.i.h.s16 %v504_v40  ;;  %v508_v2 = vrot.slane %v506_v35, 1  ;;  %v512_v35 = vsel %vm5735_vm7, %v498_v18, %v500_v7  ;;  %v4649_v7 = vld [vmem:[#allocation2] sm:$0xff] }
 0x163   : > { %vm5706_vm13 = vcmp.gt.f32.partialorder %v4649_v7, 0.5 }
 0x164   : > { %v4615_v10 = vperm.slane %v3847_v30, 0  ;;  %v544_v19 = vpack.i.b16 %v516_v0, %v516_v0  ;;  %v3850_v41 = vpack.i.b16 %v508_v2, %v508_v2  ;;  %v518_v32 = vunpack.i.h.s16 %v508_v2 }
 0x165   : > { %v511_v30 = vrot.slane %v509_v25, 2  ;;  %v514_v0 = vrot.slane %v512_v35, 3  ;;  %v4197_v25 = vmov 0  }
 0x166   : > { %3848 = vmatmul.msk.bf16.vlgmr.msra.gmra.mxu1 %vm345_vm1, %v4615_v10  ;;  %v4619_v39 = vperm.slane %v544_v19, 0  ;;  %v4621_v3 = vperm.slane %v3850_v41, 0  ;;  %v586_v17 = vpack.i.b16 %v518_v32, %v518_v32 }
 0x167   : > { %v520_v2 = vunpack.i.h.s16 %v511_v30  ;;  %v3853_v19 = vpack.i.b16 %v511_v30, %v511_v30  ;;  %v522_v41 = vunpack.i.h.s16 %v514_v0  ;;  %v3856_v1 = vpack.i.b16 %v514_v0, %v514_v0 }
 0x168   : > { %3849 = vmatmul.msk.bf16.vlgmr.msra.gmra.mxu2 %vm345_vm1, %v4619_v39  ;;  %3851 = vmatmul.msk.bf16.vlgmr.msra.gmra.mxu3 %vm345_vm1, %v4621_v3  ;;  %v4628_v40 = vperm.slane %v586_v17, 0 }
 0x169   : > { %v628_v32 = vpack.i.b16 %v520_v2, %v520_v2  ;;  %v4633_v43 = vperm.slane %v3853_v19, 0  ;;  %v670_v57 = vpack.i.b16 %v522_v41, %v522_v41  ;;  %v4639_v58 = vperm.slane %v3856_v1, 0 }
 0x16a   : > { %3852 = vmatmul.msk.bf16.vlgmr.msrb.gmra.mxu0 %vm345_vm1, %v4628_v40  ;;  %v421_v1 = vsel %vm5706_vm13, 1, %v4197_v25 }
 0x16b   : > { %v4637_v17 = vperm.slane %v628_v32, 0  ;;  %v4645_v18 = vperm.slane %v670_v57, 0  ;;  %v424_v0 = vrot.slane %v421_v1, 3  ;;  %v422_v41 = vrot.slane %v421_v1, 1 }
 0x16c   : > { %v423_v45 = vrot.slane %v421_v1, 2  ;;  %v428_v34 = vrot.slane %v421_v1, 7 }
 0x16d   : > { %5830 = vst [vmem:[#allocation56_spill] sm:$0xff] %v4637_v17  ;;  %vm4660_vm15 = vcmp.ne.s32.totalorder %v424_v0, 0  ;;  %vm4664_vm2 = vcmp.ne.s32.totalorder %v422_v41, 0 }
 0x16e   : > { %5831 = vst [vmem:[#allocation57_spill] sm:$0xff] %v4645_v18  ;;  %vm4674_vm3 = vcmp.ne.s32.totalorder %v423_v45, 0  ;;  %vm4681_vm4 = vcmp.ne.s32.totalorder %v428_v34, 0 }
 0x176   : > { %3854 = vmatmul.msk.bf16.vlgmr.msrb.gmra.mxu1 %vm345_vm1, %v4633_v43 }
 0x178   : > { %3855 = vmatmul.msk.bf16.vlgmr.msrb.gmra.mxu2 %vm345_vm1, %v4637_v17  ;;  %3857 = vmatmul.msk.bf16.vlgmr.msrb.gmra.mxu3 %vm345_vm1, %v4639_v58 }
 0x17a   : > { %3858 = vmatmul.msk.bf16.vlgmr.msra.gmra.mxu0 %vm345_vm1, %v4645_v18 }
 0x1e3   : > { %v540_v35 = vpop.f32.mrf.mxu1 }
 0x1e4   : > { %v691_v30 = vmul.f32 0.35355338, %v540_v35 }
 0x1e6   : > { %v4656_v2 = vsel %vm5706_vm13, -inf, %v691_v30 }
 0x1e7   : > { %v603_v57 = vpop.f32.mrf.mxu0  ;;  %v708_v19 = vsel %vm5734_vm14, %v4656_v2, -inf }
 0x1e8   : > { %v694_v32 = vmul.f32 0.35355338, %v603_v57  ;;  %709 = vmax.xlane.f32.xlu1 %v708_v19 }
 0x1ea   : > { %v702_v63 = vsel %vm4660_vm15, -inf, %v694_v32 }
 0x1eb   : > { %v542_v25 = vpop.f32.mrf.mxu1  ;;  %v561_v61 = vpop.f32.mrf.mxu2  ;;  %v717_v0 = vsel %vm5734_vm14, %v702_v63, -inf }
 0x1ec   : > { %v692_v62 = vmul.f32 0.35355338, %v561_v61  ;;  %v582_v30 = vpop.f32.mrf.mxu3 }
 0x1ed   : > { %v693_v25 = vmul.f32 0.35355338, %v582_v30 }
 0x1ee   : > { %v700_v57 = vsel %vm4664_vm2, -inf, %v692_v62  ;;  %v425_v62 = vrot.slane %v421_v1, 4 }
 0x1ef   : > { %v605_v19 = vpop.f32.mrf.mxu0  ;;  %v711_v47 = vsel %vm5734_vm14, %v700_v57, -inf  ;;  %v701_v20 = vsel %vm4674_vm3, -inf, %v693_v25 }
 0x1f0   : > { %718 = vmax.xlane.f32.xlu1 %v717_v0  ;;  %712 = vmax.xlane.f32.xlu0 %v711_v47  ;;  %v714_v15 = vsel %vm5734_vm14, %v701_v20, -inf  ;;  %v426_v47 = vrot.slane %v421_v1, 5  ;;  %vm4685_vm12 = vcmp.ne.s32.totalorder %v425_v62, 0 }
 0x1f2   : > { %vm4692_vm0 = vcmp.ne.s32.totalorder %v426_v47, 0 }
 0x1f3   : > { %v563_v61 = vpop.f32.mrf.mxu2  ;;  %v624_v42 = vpop.f32.mrf.mxu1 }
 0x1f4   : > { %v584_v32 = vpop.f32.mrf.mxu3  ;;  %v695_v45 = vmul.f32 0.35355338, %v624_v42  ;;  %v427_v42 = vrot.slane %v421_v1, 6 }
 0x1f6   : > { %vm4705_vm13 = vcmp.ne.s32.totalorder %v427_v42, 0 }
 0x1f7   : > { %v687_v19 = vpop.f32.mrf.mxu0 }
 0x1f8   : > { %v698_v30 = vmul.f32 0.35355338, %v687_v19  ;;  %715 = vmax.xlane.f32.xlu0 %v714_v15  ;;  %v4698_v15 = vsel %vm4685_vm12, -inf, %v695_v45 }
 0x1f9   : > { %v720_v47 = vsel %vm5734_vm14, %v4698_v15, -inf }
 0x1fa   : > { %v706_v61 = vsel %vm4681_vm4, -inf, %v698_v30 }
 0x1fb   : > { %v626_v25 = vpop.f32.mrf.mxu1  ;;  %v645_v32 = vpop.f32.mrf.mxu2  ;;  %v729_v13 = vsel %vm5734_vm14, %v706_v61, -inf }
 0x1fc   : > { %v696_v9 = vmul.f32 0.35355338, %v645_v32  ;;  %v666_v8 = vpop.f32.mrf.mxu3  ;;  %730 = vmax.xlane.f32.xlu1 %v729_v13 }
 0x1fd   : > { %v697_v25 = vmul.f32 0.35355338, %v666_v8 }
 0x1fe   : > { %v704_v62 = vsel %vm4692_vm0, -inf, %v696_v9 }
 0x1ff   : > { %v689_v19 = vpop.f32.mrf.mxu0  ;;  %v723_v30 = vsel %vm5734_vm14, %v704_v62, -inf  ;;  %v705_v1 = vsel %vm4705_vm13, -inf, %v697_v25 }
 0x200   : > { %724 = vmax.xlane.f32.xlu2 %v723_v30  ;;  %721 = vmax.xlane.f32.xlu0 %v720_v47  ;;  %v726_v9 = vsel %vm5734_vm14, %v705_v1, -inf  ;;  %v1098_v19 = vunpack.c.l.b16 %v5807_v33 }
 0x202   : > { %v4713_v6 = vpack.c.b16 %v1098_v19, %v1098_v19 }
 0x203   : > { %v647_v13 = vpop.f32.mrf.mxu2 }
 0x204   : > { %v668_v45 = vpop.f32.mrf.mxu3 }
 0x208   : > { %727 = vmax.xlane.f32.xlu2 %v726_v9 }
 0x214   : > { %1095 = vrot.lane.b32.xlu0 %v4619_v39, %s4196_s16 }
 0x215   : > { %1100 = vrot.lane.b32.xlu1 %v4713_v6, %s4196_s16 }
 0x25b   : > { %v710_v8 = vpop.xlane.xlu1 %709 }
 0x25c   : > { %v732_v42 = vsub.f32 %v4656_v2, %v710_v8 }
 0x25e   : > { %v740_v30 = vmul.f32 1.442695, %v732_v42 }
 0x260   : > { %4010 = vpow2.f32 %v740_v30 }
 0x263   : > { %v719_v47 = vpop.xlane.xlu1 %718  ;;  %v713_v25 = vpop.xlane.xlu0 %712 }
 0x264   : > { %v735_v13 = vsub.f32 %v702_v63, %v719_v47  ;;  %v733_v33 = vsub.f32 %v700_v57, %v713_v25 }
 0x266   : > { %v4720_v45 = vpop.eup %4010  ;;  %v746_v9 = vmul.f32 1.442695, %v735_v13  ;;  %v742_v5 = vmul.f32 1.442695, %v733_v33 }
 0x267   : > { %v756_v19 = vsel %vm5734_vm14, %v4720_v45, 0.0 }
 0x268   : > { %4012 = vpow2.f32 %v746_v9  ;;  %757 = vadd.xlane.f32.xlu1 %v756_v19 }
 0x269   : > { %4014 = vpow2.f32 %v742_v5 }
 0x26b   : > { %v716_v11 = vpop.xlane.xlu0 %715 }
 0x26c   : > { %v734_v55 = vsub.f32 %v701_v20, %v716_v11 }
 0x26e   : > { %v4726_v2 = vpop.eup %4012  ;;  %v744_v8 = vmul.f32 1.442695, %v734_v55 }
 0x26f   : > { %v731_v42 = vpop.xlane.xlu1 %730  ;;  %v765_v63 = vsel %vm5734_vm14, %v4726_v2, 0.0  ;;  %v4730_v25 = vpop.eup %4014 }
 0x270   : > { %4016 = vpow2.f32 %v744_v8  ;;  %v739_v57 = vsub.f32 %v706_v61, %v731_v42  ;;  %766 = vadd.xlane.f32.xlu2 %v765_v63  ;;  %v759_v20 = vsel %vm5734_vm14, %v4730_v25, 0.0 }
 0x272   : > { %v754_v30 = vmul.f32 1.442695, %v739_v57 }
 0x273   : > { %v725_v47 = vpop.xlane.xlu2 %724 }
 0x274   : > { %4018 = vpow2.f32 %v754_v30  ;;  %v737_v13 = vsub.f32 %v704_v62, %v725_v47  ;;  %v1072_v47 = vunpack.c.l.b16 %v5806_v12 }
 0x276   : > { %v4732_v33 = vpop.eup %4016  ;;  %v750_v11 = vmul.f32 1.442695, %v737_v13  ;;  %v4758_v13 = vpack.c.b16 %v1072_v47, %v1072_v47  ;;  %v913_v47 = vsel %vm5746_vm11, %v5799_v26, 0 }
 0x277   : > { %v762_v5 = vsel %vm5734_vm14, %v4732_v33, 0.0  ;;  %922 = vmatpush.bf16.msra.mxu1 %v913_v47  ;;  %v1008_v47 = vsel %vm5746_vm11, %v4528_v48, 0 }
 0x278   : > { %760 = vadd.xlane.f32.xlu2 %v759_v20  ;;  %763 = vadd.xlane.f32.xlu0 %v762_v5  ;;  %4020 = vpow2.f32 %v750_v11  ;;  %v1228_v20 = vunpack.c.l.b16 %v5803_v28  ;;  %v722_v5 = vpop.xlane.xlu0 %721 }
 0x27a   : > { %v4738_v61 = vpop.eup %4018  ;;  %v4765_v11 = vpack.c.b16 %v1228_v20, %v1228_v20 }
 0x27b   : > { %v728_v55 = vpop.xlane.xlu2 %727  ;;  %v777_v8 = vsel %vm5734_vm14, %v4738_v61, 0.0 }
 0x27c   : > { %v738_v9 = vsub.f32 %v705_v1, %v728_v55  ;;  %v1150_v1 = vunpack.c.l.b16 %v5801_v53  ;;  %v736_v55 = vsub.f32 %v4698_v15, %v722_v5  ;;  %v970_v5 = vsel %vm5746_vm11, %v4505_v54, 0 }
 0x27d   : > { %979 = vmatpush.bf16.msrb.mxu0 %v970_v5  ;;  %v1027_v5 = vsel %vm5746_vm11, %v4537_v52, 0 }
 0x27e   : > { %v752_v19 = vmul.f32 1.442695, %v738_v9  ;;  %v4742_v62 = vpop.eup %4020  ;;  %v4753_v30 = vpack.c.b16 %v1150_v1, %v1150_v1  ;;  %v748_v9 = vmul.f32 1.442695, %v736_v55  ;;  %v1176_v55 = vunpack.c.l.b16 %v5802_v29 }
 0x27f   : > { %v771_v57 = vsel %vm5734_vm14, %v4742_v62, 0.0 }
 0x280   : > { %4022 = vpow2.f32 %v752_v19  ;;  %778 = vadd.xlane.f32.xlu0 %v777_v8  ;;  %v1254_v19 = vunpack.c.l.b16 %v5804_v23 }
 0x281   : > { %4024 = vpow2.f32 %v748_v9 }
 0x286   : > { %v4744_v42 = vpop.eup %4022 }
 0x287   : > { %v774_v63 = vsel %vm5734_vm14, %v4744_v42, 0.0  ;;  %v4777_v8 = vpop.eup %4024  ;;  %v4792_v20 = vpop.permute.xlu1 %1100 }
 0x288   : > { %775 = vadd.xlane.f32.xlu1 %v774_v63  ;;  %772 = vadd.xlane.f32.xlu0 %v771_v57  ;;  %v4779_v63 = vpack.c.b16 %v1254_v19, %v1254_v19  ;;  %v768_v15 = vsel %vm5734_vm14, %v4777_v8, 0.0  ;;  %v1202_v57 = vunpack.c.l.b16 %v5805_v22  ;;  %v4799_v19 = vpack.c.b16 %v1176_v55, %v1176_v55  ;;  %v4811_v55 = vpop.permute.xlu0 %1095 }
 0x28a   : > { %v4786_v1 = vpack.c.b16 %v1202_v57, %v1202_v57  ;;  %v951_v57 = vsel %vm5746_vm11, %v4497_v44, 0 }
 0x28b   : > { %960 = vmatpush.bf16.msra.mxu3 %v951_v57 }
 0x28f   : > { %1036 = vmatpush.bf16.msrb.mxu3 %v1027_v5 }
 0x290   : > { %1121 = vrot.lane.b32.xlu2 %v4621_v3, %s4196_s16 }
 0x29c   : > { %1152 = vrot.lane.b32.xlu0 %v4753_v30, %s4196_s16 }
 0x2a1   : > { %1074 = vrot.lane.b32.xlu1 %v4758_v13, %s4196_s16 }
 0x2a4   : > { %1069 = vrot.lane.b32.xlu0 %v4615_v10, %s4196_s16 }
 0x2a9   : > { %1230 = vrot.lane.b32.xlu1 %v4765_v11, %s4196_s16 }
 0x2ac   : > { %1225 = vrot.lane.b32.xlu0 %v4639_v58, %s4196_s16 }
 0x2b1   : > { %1199 = vrot.lane.b32.xlu1 %v4637_v17, %s4196_s16 }
 0x2b4   : > { %1173 = vrot.lane.b32.xlu0 %v4633_v43, %s4196_s16 }
 0x2b9   : > { %769 = vadd.xlane.f32.xlu2 %v768_v15  ;;  %1256 = vrot.lane.b32.xlu1 %v4779_v63, %s4196_s16  ;;  %v932_v15 = vsel %vm5746_vm11, %v4489_v36, 0 }
 0x2ba   : > { %941 = vmatpush.bf16.msra.mxu2 %v932_v15 }
 0x2be   : > { %1017 = vmatpush.bf16.msrb.mxu2 %v1008_v47  ;;  %v1046_v47 = vsel %vm5746_vm11, %v5800_v16, 0 }
 0x2bf   : > { %1055 = vmatpush.bf16.msra.mxu0 %v1046_v47 }
 0x2d1   : > { %1204 = vrot.lane.b32.xlu2 %v4786_v1, %s4196_s16 }
 0x2d9   : > { %1147 = vrot.lane.b32.xlu2 %v4628_v40, %s4196_s16 }
 0x2db   : > { %v758_v9 = vpop.xlane.xlu1 %757 }
 0x2dc   : > { %4026 = vrcp.f32 %v758_v9  ;;  %v791_v57 = vand.u32 2147483648, %v758_v9  ;;  %vm785_vm9 = vweird.f32 %v758_v9  ;;  %v789_v53 = vand.u32 2147483647, %v758_v9 }
 0x2de   : > { %vm790_vm14 = vcmp.eq.f32.partialorder %v789_v53, 8.507059e+37 }
 0x2e1   : > { %1178 = vrot.lane.b32.xlu2 %v4799_v19, %s4196_s16 }
 0x2e2   : > { %v4027_v12 = vpop.eup %4026 }
 0x2e3   : > { %v781_v22 = vmul.f32 %v4027_v12, %v758_v9  ;;  %v767_v23 = vpop.xlane.xlu2 %766  ;;  %vm786_vm10 = vweird.f32 %v4027_v12 }
 0x2e4   : > { %4028 = vrcp.f32 %v767_v23  ;;  %vm787_vm8 = vmor %vm785_vm9, %vm786_vm10  ;;  %v836_v37 = vand.u32 2147483648, %v767_v23  ;;  %v834_v60 = vand.u32 2147483647, %v767_v23  ;;  %vm830_vm9 = vweird.f32 %v767_v23 }
 0x2e5   : > { %v782_v28 = vsub.f32 1.0, %v781_v22  ;;  %v792_v22 = vor.u32 1.1754944e-38, %v791_v57 }
 0x2e7   : > { %v783_v15 = vmul.f32 %v4027_v12, %v782_v28 }
 0x2e9   : > { %v784_v29 = vadd.f32 %v4027_v12, %v783_v15  ;;  %1251 = vrot.lane.b32.xlu2 %v4645_v18, %s4196_s16 }
 0x2ea   : > { %v4029_v24 = vpop.eup %4028 }
 0x2eb   : > { %v826_v5 = vmul.f32 %v4029_v24, %v767_v23  ;;  %v761_v49 = vpop.xlane.xlu2 %760  ;;  %v764_v21 = vpop.xlane.xlu0 %763  ;;  %v788_v46 = vsel %vm787_vm8, %v4027_v12, %v784_v29  ;;  %vm831_vm7 = vweird.f32 %v4029_v24  ;;  %v837_v12 = vor.u32 1.1754944e-38, %v836_v37 }
 0x2ec   : > { %4030 = vrcp.f32 %v761_v49  ;;  %v793_v15 = vsel %vm790_vm14, %v792_v22, %v788_v46  ;;  %vm832_vm10 = vmor %vm830_vm9, %vm831_vm7  ;;  %vm835_vm8 = vcmp.eq.f32.partialorder %v834_v60, 8.507059e+37  ;;  %vm800_vm7 = vweird.f32 %v761_v49 }
 0x2ed   : > { %v827_v28 = vsub.f32 1.0, %v826_v5  ;;  %4032 = vrcp.f32 %v764_v21  ;;  %v794_v27 = vmul.f32 %v4720_v45, %v793_v15  ;;  %v804_v37 = vand.u32 2147483647, %v761_v49 }
 0x2ee   : > { %v819_v18 = vand.u32 2147483647, %v764_v21  ;;  %v821_v60 = vand.u32 2147483648, %v764_v21 }
 0x2ef   : > { %v828_v9 = vmul.f32 %v4029_v24, %v827_v28  ;;  %v900_v51 = vpack.c.bf16 %v794_v27, %v794_v27  ;;  %v806_v27 = vand.u32 2147483648, %v761_v49  ;;  %vm805_vm6 = vcmp.eq.f32.partialorder %v804_v37, 8.507059e+37 }
 0x2f1   : > { %v829_v56 = vadd.f32 %v4029_v24, %v828_v9  ;;  %3859 = vmatmul.msk.bf16.vlgmr.msra.gmra.mxu1 %vm345_vm1, %v900_v51 }
 0x2f2   : > { %v4031_v17 = vpop.eup %4030 }
 0x2f3   : > { %v4033_v50 = vpop.eup %4032  ;;  %v796_v29 = vmul.f32 %v4031_v17, %v761_v49  ;;  %v779_v53 = vpop.xlane.xlu0 %778  ;;  %v833_v57 = vsel %vm832_vm10, %v4029_v24, %v829_v56  ;;  %vm801_vm14 = vweird.f32 %v4031_v17 }
 0x2f4   : > { %v811_v46 = vmul.f32 %v4033_v50, %v764_v21  ;;  %4034 = vrcp.f32 %v779_v53  ;;  %v838_v5 = vsel %vm835_vm8, %v837_v12, %v833_v57  ;;  %vm4820_vm9 = vmor %vm800_vm7, %vm801_vm14  ;;  %vm816_vm10 = vweird.f32 %v4033_v50 }
 0x2f5   : > { %v797_v47 = vsub.f32 1.0, %v796_v29  ;;  %v839_v45 = vmul.f32 %v4726_v2, %v838_v5  ;;  %vm815_vm8 = vweird.f32 %v764_v21  ;;  %vm820_vm14 = vcmp.eq.f32.partialorder %v819_v18, 8.507059e+37 }
 0x2f6   : > { %v812_v22 = vsub.f32 1.0, %v811_v46  ;;  %v807_v46 = vor.u32 1.1754944e-38, %v806_v27  ;;  %vm817_vm7 = vmor %vm815_vm8, %vm816_vm10  ;;  %v894_v5 = vand.u32 2147483647, %v779_v53 }
 0x2f7   : > { %v798_v28 = vmul.f32 %v4031_v17, %v797_v47  ;;  %v903_v15 = vpack.c.bf16 %v839_v45, %v839_v45  ;;  %v822_v47 = vor.u32 1.1754944e-38, %v821_v60 }
 0x2f8   : > { %v813_v23 = vmul.f32 %v4033_v50, %v812_v22  ;;  %v896_v22 = vand.u32 2147483648, %v779_v53  ;;  %vm895_vm8 = vcmp.eq.f32.partialorder %v894_v5, 8.507059e+37 }
 0x2f9   : > { %v799_v9 = vadd.f32 %v4031_v17, %v798_v28  ;;  %3862 = vmatmul.msk.bf16.vlgmr.msrb.gmra.mxu0 %vm345_vm1, %v903_v15 }
 0x2fa   : > { %v4035_v51 = vpop.eup %4034  ;;  %v814_v24 = vadd.f32 %v4033_v50, %v813_v23  ;;  %v897_v37 = vor.u32 1.1754944e-38, %v896_v22 }
 0x2fb   : > { %v886_v2 = vmul.f32 %v4035_v51, %v779_v53  ;;  %v776_v12 = vpop.xlane.xlu1 %775  ;;  %v4825_v29 = vpop.xlane.xlu0 %772  ;;  %v803_v57 = vsel %vm4820_vm9, %v4031_v17, %v799_v9  ;;  %vm891_vm5 = vweird.f32 %v4035_v51  ;;  %vm890_vm9 = vweird.f32 %v779_v53 }
 0x2fc   : > { %4036 = vrcp.f32 %v776_v12  ;;  %v808_v45 = vsel %vm805_vm6, %v807_v46, %v803_v57  ;;  %v818_v15 = vsel %vm817_vm7, %v4033_v50, %v814_v24  ;;  %v1106_v9 = vsel %vm345_vm1, %v4792_v20, 0  ;;  %vm892_vm10 = vmor %vm890_vm9, %vm891_vm5 }
 0x2fd   : > { %v887_v49 = vsub.f32 1.0, %v886_v2  ;;  %4038 = vrcp.f32 %v4825_v29  ;;  %v809_v23 = vmul.f32 %v4730_v25, %v808_v45  ;;  %v823_v56 = vsel %vm820_vm14, %v822_v47, %v818_v15 }
 0x2fe   : > { %v824_v27 = vmul.f32 %v4732_v33, %v823_v56  ;;  %v1132_v33 = vsel %vm345_vm1, %v4724_v4, 0  ;;  %v879_v46 = vand.u32 2147483647, %v776_v12  ;;  %vm875_vm14 = vweird.f32 %v776_v12 }
 0x2ff   : > { %v888_v28 = vmul.f32 %v4035_v51, %v887_v49  ;;  %v901_v21 = vpack.c.bf16 %v809_v23, %v809_v23  ;;  %v881_v49 = vand.u32 2147483648, %v776_v12  ;;  %vm860_vm9 = vweird.f32 %v4825_v29 }
 0x300   : > { %v902_v57 = vpack.c.bf16 %v824_v27, %v824_v27 }
 0x301   : > { %v889_v17 = vadd.f32 %v4035_v51, %v888_v28  ;;  %3860 = vmatmul.msk.bf16.vlgmr.msra.gmra.mxu2 %vm345_vm1, %v901_v21  ;;  %v864_v28 = vand.u32 2147483647, %v4825_v29  ;;  %v882_v4 = vor.u32 1.1754944e-38, %v881_v49 }
 0x302   : > { %v4037_v18 = vpop.eup %4036  ;;  %1115 = vmatpush.bf16.xpose.msra.mxu2 %v1106_v9  ;;  %3861 = vmatmul.msk.bf16.vlgmr.msra.gmra.mxu3 %vm345_vm1, %v902_v57 }
 0x303   : > { %v4039_v60 = vpop.eup %4038  ;;  %v871_v2 = vmul.f32 %v4037_v18, %v776_v12  ;;  %v893_v25 = vsel %vm892_vm10, %v4035_v51, %v889_v17  ;;  %1141 = vmatpush.bf16.xpose.msra.mxu3 %v1132_v33  ;;  %vm876_vm5 = vweird.f32 %v4037_v18  ;;  %v866_v51 = vand.u32 2147483648, %v4825_v29 }
 0x304   : > { %v856_v50 = vmul.f32 %v4039_v60, %v4825_v29  ;;  %v898_v53 = vsel %vm895_vm8, %v897_v37, %v893_v25  ;;  %vm861_vm6 = vweird.f32 %v4039_v60  ;;  %vm877_vm7 = vmor %vm875_vm14, %vm876_vm5  ;;  %vm880_vm10 = vcmp.eq.f32.partialorder %v879_v46, 8.507059e+37 }
 0x305   : > { %v872_v24 = vsub.f32 1.0, %v871_v2  ;;  %v899_v20 = vmul.f32 %v4738_v61, %v898_v53  ;;  %vm862_vm8 = vmor %vm860_vm9, %vm861_vm6  ;;  %v867_v61 = vor.u32 1.1754944e-38, %v866_v51  ;;  %vm865_vm11 = vcmp.eq.f32.partialorder %v864_v28, 8.507059e+37  ;;  %v1122_v53 = vpop.permute.xlu2 %1121 }
 0x306   : > { %v857_v47 = vsub.f32 1.0, %v856_v50  ;;  %vm5849_vm9 = vcmask 1041409  }
 0x307   : > { %v873_v5 = vmul.f32 %v4037_v18, %v872_v24  ;;  %v907_v22 = vpack.c.bf16 %v899_v20, %v899_v20 }
 0x308   : > { %v858_v45 = vmul.f32 %v4039_v60, %v857_v47 }
 0x309   : > { %v874_v23 = vadd.f32 %v4037_v18, %v873_v5  ;;  %3866 = vmatmul.msk.bf16.vlgmr.msra.gmra.mxu0 %vm345_vm1, %v907_v22 }
 0x30a   : > { %v859_v15 = vadd.f32 %v4039_v60, %v858_v45 }
 0x30b   : > { %v878_v56 = vsel %vm877_vm7, %v4037_v18, %v874_v23 }
 0x30c   : > { %v863_v17 = vsel %vm862_vm8, %v4039_v60, %v859_v15  ;;  %v883_v21 = vsel %vm880_vm10, %v882_v4, %v878_v56  ;;  %vm5850_vm10 = vcmask 1042434   ;;  %vm5851_vm8 = vcmask 1043459  }
 0x30d   : > { %v868_v27 = vsel %vm865_vm11, %v867_v61, %v863_v17  ;;  %v884_v9 = vmul.f32 %v4744_v42, %v883_v21  ;;  %vm5848_vm11 = vcmask 1043456  }
 0x30e   : > { %v1153_v37 = vpop.permute.xlu0 %1152  ;;  %v869_v12 = vmul.f32 %v4742_v62, %v868_v27  ;;  %v989_v42 = vsel %vm5848_vm11, %v5798_v31, 0  ;;  %vm5852_vm11 = vcmask 57344  }
 0x30f   : > { %v1158_v2 = vsel %vm345_vm1, %v1153_v37, 0  ;;  %v906_v29 = vpack.c.bf16 %v884_v9, %v884_v9  ;;  %998 = vmatpush.bf16.msrb.mxu1 %v989_v42 }
 0x310   : > { %v905_v57 = vpack.c.bf16 %v869_v12, %v869_v12  ;;  %1167 = vmatpush.bf16.xpose.msrb.mxu0 %v1158_v2 }
 0x312   : > { %3864 = vmatmul.msk.bf16.vlgmr.msrb.gmra.mxu2 %vm345_vm1, %v905_v57  ;;  %3865 = vmatmul.msk.bf16.vlgmr.msrb.gmra.mxu3 %vm345_vm1, %v906_v29 }
 0x313   : > { %v1075_v25 = vpop.permute.xlu1 %1074 }
 0x314   : > { %v1080_v60 = vsel %vm345_vm1, %v1075_v25, 0 }
 0x315   : > { %1089 = vmatpush.bf16.xpose.msra.mxu1 %v1080_v60 }
 0x316   : > { %v1070_v33 = vpop.permute.xlu0 %1069 }
 0x31b   : > { %v1231_v18 = vpop.permute.xlu1 %1230 }
 0x31c   : > { %v1236_v50 = vsel %vm345_vm1, %v1231_v18, 0 }
 0x31d   : > { %1245 = vmatpush.bf16.xpose.msrb.mxu3 %v1236_v50 }
 0x31e   : > { %v1226_v47 = vpop.permute.xlu0 %1225 }
 0x322   : > { %3868 = vmatmul.msk.bf16.vlgmr.msra.gmra.mxu2 %vm345_vm1, %v4811_v55  ;;  %3869 = vmatmul.msk.bf16.vlgmr.msra.gmra.mxu3 %vm345_vm1, %v1122_v53 }
 0x323   : > { %v1200_v62 = vpop.permute.xlu1 %1199 }
 0x326   : > { %v1174_v2 = vpop.permute.xlu0 %1173 }
 0x32b   : > { %v1257_v24 = vpop.permute.xlu1 %1256 }
 0x32c   : > { %v770_v20 = vpop.xlane.xlu2 %769  ;;  %v1262_v46 = vsel %vm345_vm1, %v1257_v24, 0 }
 0x32d   : > { %4040 = vrcp.f32 %v770_v20  ;;  %1271 = vmatpush.bf16.xpose.msra.mxu0 %v1262_v46  ;;  %v851_v45 = vand.u32 2147483648, %v770_v20  ;;  %v849_v23 = vand.u32 2147483647, %v770_v20  ;;  %vm845_vm6 = vweird.f32 %v770_v20 }
 0x32f   : > { %v852_v15 = vor.u32 1.1754944e-38, %v851_v45  ;;  %vm850_vm7 = vcmp.eq.f32.partialorder %v849_v23, 8.507059e+37 }
 0x332   : > { %3873 = vmatmul.msk.bf16.vlgmr.msrb.gmra.mxu3 %vm345_vm1, %v1226_v47 }
 0x333   : > { %v4041_v49 = vpop.eup %4040 }
 0x334   : > { %v841_v5 = vmul.f32 %v4041_v49, %v770_v20  ;;  %v1205_v51 = vpop.permute.xlu2 %1204  ;;  %vm846_vm5 = vweird.f32 %v4041_v49 }
 0x335   : > { %v1210_v22 = vsel %vm345_vm1, %v1205_v51, 0  ;;  %vm847_vm14 = vmor %vm845_vm6, %vm846_vm5 }
 0x336   : > { %v842_v55 = vsub.f32 1.0, %v841_v5  ;;  %1219 = vmatpush.bf16.xpose.msrb.mxu2 %v1210_v22  ;;  %vm5853_vm5 = vmmov %vm5852_vm11 }
 0x337   : > { %vm5854_vm6 = vmmov %vm5853_vm5 }
 0x338   : > { %v843_v28 = vmul.f32 %v4041_v49, %v842_v55 }
 0x33a   : > { %v844_v4 = vadd.f32 %v4041_v49, %v843_v28 }
 0x33c   : > { %v1148_v61 = vpop.permute.xlu2 %1147  ;;  %v848_v56 = vsel %vm847_vm14, %v4041_v49, %v844_v4  ;;  %vm5855_vm14 = vcmask 1044484  }
 0x33d   : > { %3870 = vmatmul.msk.bf16.vlgmr.msrb.gmra.mxu0 %vm345_vm1, %v1148_v61  ;;  %3872 = vmatmul.msk.bf16.vlgmr.msrb.gmra.mxu2 %vm345_vm1, %v1200_v62  ;;  %v853_v17 = vsel %vm850_vm7, %v852_v15, %v848_v56  ;;  %vm5856_vm7 = vcmask 1045509  }
 0x33e   : > { %v854_v21 = vmul.f32 %v4777_v8, %v853_v17 }
 0x340   : > { %v904_v27 = vpack.c.bf16 %v854_v21, %v854_v21 }
 0x342   : > { %3863 = vmatmul.msk.bf16.vlgmr.msrb.gmra.mxu1 %vm345_vm1, %v904_v27 }
 0x344   : > { %v1179_v9 = vpop.permute.xlu2 %1178 }
 0x345   : > { %v1184_v37 = vsel %vm345_vm1, %v1179_v9, 0 }
 0x346   : > { %1193 = vmatpush.bf16.xpose.msrb.mxu1 %v1184_v37 }
 0x34c   : > { %v1252_v12 = vpop.permute.xlu2 %1251 }
 0x34d   : > { %3874 = vmatmul.msk.bf16.vlgmr.msra.gmra.mxu0 %vm345_vm1, %v1252_v12 }
 0x352   : > { %3867 = vmatmul.msk.bf16.vlgmr.msra.gmra.mxu1 %vm345_vm1, %v1070_v33 }
 0x362   : > { %3871 = vmatmul.msk.bf16.vlgmr.msrb.gmra.mxu1 %vm345_vm1, %v1174_v2 }
 0x36e   : > { %v924_v57 = vpop.f32.mrf.mxu1 }
 0x36f   : > { %v1061_v60 = vpack.c.bf16 %v924_v57, %v924_v57 }
 0x371   : > { %v1767_v20 = vunpack.c.l.b16 %v1061_v60 }
 0x373   : > { %v3892_v51 = vunpack.i.l.s16 %v1767_v20 }
 0x376   : > { %v981_v29 = vpop.f32.mrf.mxu0  ;;  %v926_v25 = vpop.f32.mrf.mxu1 }
 0x377   : > { %v1064_v8 = vpack.c.bf16 %v981_v29, %v981_v29 }
 0x379   : > { %v1770_v53 = vunpack.c.l.b16 %v1064_v8 }
 0x37b   : > { %v3895_v33 = vunpack.i.l.s16 %v1770_v53 }
 0x37d   : > { %v1795_v15 = vrot.slane %v3895_v33, 5 }
 0x37e   : > { %v983_v18 = vpop.f32.mrf.mxu0 }
 0x384   : > { %v943_v50 = vpop.f32.mrf.mxu2 }
 0x385   : > { %v1062_v42 = vpack.c.bf16 %v943_v50, %v943_v50  ;;  %v962_v24 = vpop.f32.mrf.mxu3 }
 0x386   : > { %v1057_v62 = vpop.f32.mrf.mxu0  ;;  %v1063_v49 = vpack.c.bf16 %v962_v24, %v962_v24 }
 0x387   : > { %v1768_v46 = vunpack.c.l.b16 %v1062_v42  ;;  %v1068_v20 = vpack.c.bf16 %v1057_v62, %v1057_v62 }
 0x388   : > { %v1769_v5 = vunpack.c.l.b16 %v1063_v49 }
 0x389   : > { %v3893_v47 = vunpack.i.l.s16 %v1768_v46 }
 0x38a   : > { %v3894_v55 = vunpack.i.l.s16 %v1769_v5 }
 0x38b   : > { %v1791_v22 = vrot.slane %v3893_v47, 7 }
 0x38c   : > { %v945_v45 = vpop.f32.mrf.mxu2  ;;  %v1793_v23 = vrot.slane %v3894_v55, 6 }
 0x38d   : > { %v1792_v28 = vsel %vm5849_vm9, %v1791_v22, %v3892_v51  ;;  %v964_v61 = vpop.f32.mrf.mxu3  ;;  %vm5857_vm9 = vcmask 1046534  }
 0x38e   : > { %v1059_v4 = vpop.f32.mrf.mxu0  ;;  %v1794_v56 = vsel %vm5850_vm10, %v1793_v23, %v1792_v28  ;;  %v1774_v28 = vunpack.c.l.b16 %v1068_v20  ;;  %vm5858_vm10 = vcmask 1047559  }
 0x38f   : > { %v1796_v17 = vsel %vm5851_vm8, %v1795_v15, %v1794_v56  ;;  %vm5859_vm8 = vmmov %vm5853_vm5 }
 0x395   : > { %v1019_v21 = vpop.f32.mrf.mxu2  ;;  %v1038_v27 = vpop.f32.mrf.mxu3 }
 0x396   : > { %v1066_v42 = vpack.c.bf16 %v1019_v21, %v1019_v21  ;;  %v1067_v24 = vpack.c.bf16 %v1038_v27, %v1038_v27  ;;  %v3899_v21 = vunpack.i.l.s16 %v1774_v28 }
 0x398   : > { %v1772_v47 = vunpack.c.l.b16 %v1066_v42  ;;  %v1773_v51 = vunpack.c.l.b16 %v1067_v24 }
 0x39a   : > { %v3897_v15 = vunpack.i.l.s16 %v1772_v47  ;;  %v3898_v61 = vunpack.i.l.s16 %v1773_v51 }
 0x39d   : > { %v1021_v9 = vpop.f32.mrf.mxu2  ;;  %v1040_v37 = vpop.f32.mrf.mxu3 }
 0x39e   : > { %v1799_v37 = vrot.slane %v3897_v15, 3 }
 0x3a5   : > { %v1117_v12 = vpop.f32.mrf.mxu2  ;;  %v1143_v2 = vpop.f32.mrf.mxu3 }
 0x3a6   : > { %v1279_v57 = vmul.f32 0.35355338, %v1143_v2  ;;  %v1278_v5 = vmul.f32 0.35355338, %v1117_v12  ;;  %v1801_v2 = vrot.slane %v3898_v61, 2 }
 0x3a8   : > { %v4872_v29 = vsel %vm4674_vm3, -inf, %v1279_v57  ;;  %v1286_v62 = vsel %vm4664_vm2, -inf, %v1278_v5 }
 0x3a9   : > { %v1299_v25 = vsel %vm5852_vm11, %v4872_v29, -inf  ;;  %v1296_v9 = vsel %vm5854_vm6, %v1286_v62, -inf  ;;  %vm5860_vm11 = vcmp.gt.f32.partialorder %v4649_v7, 0.5  ;;  %vm5861_vm6 = vmmov %vm5853_vm5 }
 0x3aa   : > { %1300 = vmax.xlane.f32.xlu0 %v1299_v25 }
 0x3ad   : > { %v1119_v18 = vpop.f32.mrf.mxu2  ;;  %v1145_v8 = vpop.f32.mrf.mxu3 }
 0x3ae   : > { %v1803_v18 = vrot.slane %v3899_v21, 1 }
 0x3b5   : > { %v1247_v60 = vpop.f32.mrf.mxu3 }
 0x3b6   : > { %v1283_v28 = vmul.f32 0.35355338, %v1247_v60 }
 0x3ba   : > { %v1169_v50 = vpop.f32.mrf.mxu0 }
 0x3bb   : > { %v1280_v53 = vmul.f32 0.35355338, %v1169_v50 }
 0x3bd   : > { %v4878_v46 = vsel %vm4660_vm15, -inf, %v1280_v53  ;;  %v1249_v22 = vpop.f32.mrf.mxu3 }
 0x3be   : > { %v1302_v49 = vsel %vm5853_vm5, %v4878_v46, -inf }
 0x3bf   : > { %v1000_v33 = vpop.f32.mrf.mxu1  ;;  %1303 = vmax.xlane.f32.xlu1 %v1302_v49 }
 0x3c0   : > { %v1065_v55 = vpack.c.bf16 %v1000_v33, %v1000_v33  ;;  %v1221_v45 = vpop.f32.mrf.mxu2 }
 0x3c1   : > { %v1282_v47 = vmul.f32 0.35355338, %v1221_v45  ;;  %v4905_v45 = vsel %vm4705_vm13, -inf, %v1283_v28 }
 0x3c2   : > { %v1771_v23 = vunpack.c.l.b16 %v1065_v55  ;;  %v1171_v4 = vpop.f32.mrf.mxu0 }
 0x3c3   : > { %v1290_v55 = vsel %vm4692_vm0, -inf, %v1282_v47 }
 0x3c4   : > { %v3896_v56 = vunpack.i.l.s16 %v1771_v23  ;;  %v1308_v23 = vsel %vm5861_vm6, %v1290_v55, -inf }
 0x3c6   : > { %v1797_v27 = vrot.slane %v3896_v56, 4 }
 0x3c7   : > { %v1002_v12 = vpop.f32.mrf.mxu1  ;;  %1297 = vmax.xlane.f32.xlu1 %v1296_v9  ;;  %v1542_v9 = vunpack.c.l.b16 %v4497_v44 }
 0x3c8   : > { %v1798_v57 = vsel %vm5855_vm14, %v1797_v27, %v1796_v17  ;;  %v1223_v25 = vpop.f32.mrf.mxu2  ;;  %vm5862_vm14 = vmmov %vm5853_vm5 }
 0x3c9   : > { %v1800_v8 = vsel %vm5856_vm7, %v1799_v37, %v1798_v57  ;;  %v1311_v15 = vsel %vm5862_vm14, %v4905_v45, -inf  ;;  %vm5863_vm7 = vmmov %vm5853_vm5  ;;  %v4916_v37 = vpack.c.b16 %v1542_v9, %v1542_v9 }
 0x3ca   : > { %v1273_v50 = vpop.f32.mrf.mxu0  ;;  %v1802_v42 = vsel %vm5857_vm9, %v1801_v2, %v1800_v8  ;;  %vm5864_vm9 = vmmov %vm5853_vm5 }
 0x3cb   : > { %v1284_v53 = vmul.f32 0.35355338, %v1273_v50  ;;  %v4889_v24 = vsel %vm5858_vm10, %v1803_v18, %v1802_v42  ;;  %vm5865_vm10 = vmmov %vm5853_vm5 }
 0x3cc   : > { %vm5869_vm14 = vmmov %vm5861_vm6 }
 0x3cd   : > { %v4893_v20 = vsel %vm4681_vm4, -inf, %v1284_v53 }
 0x3ce   : > { %v1314_v49 = vsel %vm5859_vm8, %v4893_v20, -inf  ;;  %vm5866_vm8 = vmmov %vm5853_vm5 }
 0x3cf   : > { %1315 = vmax.xlane.f32.xlu0 %v1314_v49  ;;  %v1091_v17 = vpop.f32.mrf.mxu1 }
 0x3d0   : > { %v1277_v5 = vmul.f32 0.35355338, %v1091_v17 }
 0x3d2   : > { %v1275_v33 = vpop.f32.mrf.mxu0  ;;  %v1285_v51 = vsel %vm5860_vm11, -inf, %v1277_v5  ;;  %v1566_v5 = vunpack.c.l.b16 %v4505_v54  ;;  %vm5867_vm11 = vmmov %vm5853_vm5 }
 0x3d3   : > { %v1293_v22 = vsel %vm5853_vm5, %v1285_v51, -inf  ;;  %vm5868_vm5 = vcmask 1043456  }
 0x3d4   : > { %1294 = vmax.xlane.f32.xlu2 %v1293_v22  ;;  %v4931_v33 = vpack.c.b16 %v1566_v5, %v1566_v5 }
 0x3d7   : > { %1309 = vmax.xlane.f32.xlu0 %v1308_v23  ;;  %v1093_v4 = vpop.f32.mrf.mxu1 }
 0x3dc   : > { %1312 = vmax.xlane.f32.xlu2 %v1311_v15 }
 0x3df   : > { %v1195_v61 = vpop.f32.mrf.mxu1 }
 0x3e0   : > { %v1281_v56 = vmul.f32 0.35355338, %v1195_v61 }
 0x3e2   : > { %v4911_v21 = vsel %vm4685_vm12, -inf, %v1281_v56 }
 0x3e3   : > { %v1305_v60 = vsel %vm5863_vm7, %v4911_v21, -inf  ;;  %vm5870_vm7 = vmmov %vm5861_vm6 }
 0x3e4   : > { %1306 = vmax.xlane.f32.xlu1 %v1305_v60  ;;  %v1518_v60 = vunpack.c.l.b16 %v4489_v36 }
 0x3e6   : > { %v4949_v9 = vpack.c.b16 %v1518_v60, %v1518_v60 }
 0x3e7   : > { %v1197_v27 = vpop.f32.mrf.mxu1 }
 0x3fd   : > { %1544 = vrot.lane.b32.xlu1 %v4916_v37, %s4196_s16 }
 0x41d   : > { %v1301_v12 = vpop.xlane.xlu0 %1300 }
 0x41e   : > { %v1319_v2 = vsub.f32 %v4872_v29, %v1301_v12 }
 0x420   : > { %v1329_v57 = vmul.f32 1.442695, %v1319_v2 }
 0x422   : > { %4042 = vpow2.f32 %v1329_v57 }
 0x428   : > { %v4921_v25 = vpop.eup %4042 }
 0x429   : > { %v1347_v18 = vsel %vm5864_vm9, %v4921_v25, 0.0 }
 0x42a   : > { %1348 = vadd.xlane.f32.xlu1 %v1347_v18 }
 0x432   : > { %v1304_v8 = vpop.xlane.xlu1 %1303 }
 0x433   : > { %v1320_v50 = vsub.f32 %v4878_v46, %v1304_v8 }
 0x435   : > { %v1331_v42 = vmul.f32 1.442695, %v1320_v50 }
 0x437   : > { %4044 = vpow2.f32 %v1331_v42 }
 0x43a   : > { %v1298_v53 = vpop.xlane.xlu1 %1297 }
 0x43b   : > { %v1318_v49 = vsub.f32 %v1286_v62, %v1298_v53  ;;  %v1638_v62 = vunpack.c.l.b16 %v4537_v52 }
 0x43d   : > { %v4926_v47 = vpop.eup %4044  ;;  %v1327_v17 = vmul.f32 1.442695, %v1318_v49  ;;  %v4940_v15 = vpack.c.b16 %v1638_v62, %v1638_v62 }
 0x43e   : > { %v1350_v29 = vsel %vm5865_vm10, %v4926_v47, 0.0 }
 0x43f   : > { %4046 = vpow2.f32 %v1327_v17  ;;  %1351 = vadd.xlane.f32.xlu2 %v1350_v29 }
 0x442   : > { %v1316_v27 = vpop.xlane.xlu0 %1315 }
 0x443   : > { %1568 = vrot.lane.b32.xlu1 %v4931_v33, %s4196_s16  ;;  %v1324_v49 = vsub.f32 %v4893_v20, %v1316_v27 }
 0x445   : > { %v4933_v22 = vpop.eup %4046  ;;  %v1339_v29 = vmul.f32 1.442695, %v1324_v49 }
 0x446   : > { %v1344_v46 = vsel %vm5866_vm8, %v4933_v22, 0.0 }
 0x447   : > { %v1295_v28 = vpop.xlane.xlu2 %1294  ;;  %1345 = vadd.xlane.f32.xlu2 %v1344_v46 }
 0x448   : > { %v1317_v23 = vsub.f32 %v1285_v51, %v1295_v28  ;;  %v1494_v51 = vunpack.c.l.b16 %v5799_v26  ;;  %v1662_v28 = vunpack.c.l.b16 %v5800_v16 }
 0x44a   : > { %v1325_v4 = vmul.f32 1.442695, %v1317_v23  ;;  %v1310_v12 = vpop.xlane.xlu0 %1309  ;;  %v4954_v2 = vpack.c.b16 %v1494_v51, %v1494_v51  ;;  %v4970_v23 = vpack.c.b16 %v1662_v28, %v1662_v28 }
 0x44b   : > { %1640 = vrot.lane.b32.xlu1 %v4940_v15, %s4196_s16  ;;  %v1322_v57 = vsub.f32 %v1290_v55, %v1310_v12 }
 0x44c   : > { %4048 = vpow2.f32 %v1325_v4  ;;  %v1614_v4 = vunpack.c.l.b16 %v4528_v48 }
 0x44d   : > { %v1335_v18 = vmul.f32 1.442695, %v1322_v57 }
 0x44e   : > { %v4985_v60 = vpack.c.b16 %v1614_v4, %v1614_v4 }
 0x44f   : > { %4050 = vpow2.f32 %v1335_v18  ;;  %v1313_v12 = vpop.xlane.xlu2 %1312 }
 0x450   : > { %4052 = vpow2.f32 %v1339_v29 }
 0x452   : > { %v4944_v61 = vpop.eup %4048 }
 0x453   : > { %v1341_v56 = vsel %vm5867_vm11, %v4944_v61, 0.0 }
 0x454   : > { %1342 = vadd.xlane.f32.xlu0 %v1341_v56 }
 0x455   : > { %v4959_v53 = vpop.eup %4050 }
 0x456   : > { %v1356_v17 = vsel %vm5861_vm6, %v4959_v53, 0.0  ;;  %v4965_v5 = vpop.eup %4052 }
 0x457   : > { %v1307_v8 = vpop.xlane.xlu1 %1306  ;;  %v1362_v62 = vsel %vm5869_vm14, %v4965_v5, 0.0 }
 0x458   : > { %v1321_v55 = vsub.f32 %v4911_v21, %v1307_v8 }
 0x45a   : > { %v1333_v46 = vmul.f32 1.442695, %v1321_v55 }
 0x45c   : > { %4054 = vpow2.f32 %v1333_v46 }
 0x45f   : > { %1520 = vrot.lane.b32.xlu2 %v4949_v9, %s4196_s16 }
 0x462   : > { %v4972_v20 = vpop.eup %4054 }
 0x463   : > { %v1353_v21 = vsel %vm5870_vm7, %v4972_v20, 0.0 }
 0x468   : > { %1496 = vrot.lane.b32.xlu0 %v4954_v2, %s4196_s16 }
 0x46f   : > { %v1545_v50 = vpop.permute.xlu1 %1544 }
 0x470   : > { %v1550_v42 = vsel %vm5868_vm5, %v1545_v50, 0 }
 0x471   : > { %1559 = vmatpush.bf16.msra.mxu3 %v1550_v42 }
 0x475   : > { %1357 = vadd.xlane.f32.xlu1 %v1356_v17 }
 0x488   : > { %1363 = vadd.xlane.f32.xlu2 %v1362_v62 }
 0x48e   : > { %1664 = vrot.lane.b32.xlu1 %v4970_v23, %s4196_s16 }
 0x492   : > { %1354 = vadd.xlane.f32.xlu0 %v1353_v21 }
 0x496   : > { %1911 = vrot.lane.b32.xlu1 %v4753_v30, %s4198_s17 }
 0x49d   : > { %v1349_v56 = vpop.xlane.xlu1 %1348 }
 0x49e   : > { %4056 = vrcp.f32 %v1349_v56  ;;  %1909 = vrot.lane.b32.xlu1 %v4628_v40, %s4198_s17  ;;  %v1406_v18 = vand.u32 2147483648, %v1349_v56  ;;  %v1404_v50 = vand.u32 2147483647, %v1349_v56  ;;  %vm1400_vm10 = vweird.f32 %v1349_v56 }
 0x4a0   : > { %1888 = vrot.lane.b32.xlu2 %v4609_v38, %s4198_s17  ;;  %v1407_v49 = vor.u32 1.1754944e-38, %v1406_v18  ;;  %vm1405_vm11 = vcmp.eq.f32.partialorder %v1404_v50, 8.507059e+37 }
 0x4a4   : > { %v4057_v27 = vpop.eup %4056 }
 0x4a5   : > { %v1396_v51 = vmul.f32 %v4057_v27, %v1349_v56  ;;  %vm1401_vm9 = vweird.f32 %v4057_v27 }
 0x4a6   : > { %1616 = vrot.lane.b32.xlu0 %v4985_v60, %s4196_s16  ;;  %1934 = vrot.lane.b32.xlu1 %v4799_v19, %s4198_s17  ;;  %vm1402_vm8 = vmor %vm1400_vm10, %vm1401_vm9 }
 0x4a7   : > { %v1397_v57 = vsub.f32 1.0, %v1396_v51  ;;  %vm5871_vm9 = vmmov %vm5868_vm5 }
 0x4a8   : > { %1957 = vrot.lane.b32.xlu2 %v4786_v1, %s4198_s17 }
 0x4a9   : > { %v1398_v8 = vmul.f32 %v4057_v27, %v1397_v57  ;;  %v1323_v57 = vsub.f32 %v4905_v45, %v1313_v12 }
 0x4ab   : > { %v1399_v42 = vadd.f32 %v4057_v27, %v1398_v8 }
 0x4ad   : > { %v1403_v17 = vsel %vm1402_vm8, %v4057_v27, %v1399_v42  ;;  %vm5872_vm8 = vmmov %vm5868_vm5 }
 0x4ae   : > { %1863 = vrot.lane.b32.xlu1 %v4619_v39, %s4198_s17  ;;  %v1408_v29 = vsel %vm1405_vm11, %v1407_v49, %v1403_v17  ;;  %v1337_v17 = vmul.f32 1.442695, %v1323_v57 }
 0x4af   : > { %v1409_v46 = vmul.f32 %v4921_v25, %v1408_v29 }
 0x4b0   : > { %1978 = vrot.lane.b32.xlu2 %v4639_v58, %s4198_s17 }
 0x4b1   : > { %v1487_v62 = vpack.c.bf16 %v1409_v46, %v1409_v46 }
 0x4b2   : > { %v1352_v55 = vpop.xlane.xlu2 %1351 }
 0x4b3   : > { %4058 = vrcp.f32 %v1352_v55  ;;  %3877 = vmatmul.msk.bf16.vlgmr.msra.gmra.mxu3 %vm345_vm1, %v1487_v62  ;;  %v1421_v18 = vand.u32 2147483648, %v1352_v55  ;;  %v1419_v8 = vand.u32 2147483647, %v1352_v55  ;;  %vm1415_vm14 = vweird.f32 %v1352_v55 }
 0x4b5   : > { %v1569_v28 = vpop.permute.xlu1 %1568  ;;  %v1422_v29 = vor.u32 1.1754944e-38, %v1421_v18  ;;  %vm1420_vm10 = vcmp.eq.f32.partialorder %v1419_v8, 8.507059e+37 }
 0x4b6   : > { %1932 = vrot.lane.b32.xlu1 %v4633_v43, %s4198_s17  ;;  %v1574_v4 = vsel %vm5868_vm5, %v1569_v28, 0 }
 0x4b7   : > { %1583 = vmatpush.bf16.msrb.mxu0 %v1574_v4 }
 0x4b9   : > { %v4059_v21 = vpop.eup %4058 }
 0x4ba   : > { %v1411_v56 = vmul.f32 %v4059_v21, %v1352_v55  ;;  %v1346_v27 = vpop.xlane.xlu2 %1345  ;;  %vm1416_vm6 = vweird.f32 %v4059_v21 }
 0x4bb   : > { %4060 = vrcp.f32 %v1346_v27  ;;  %vm1417_vm7 = vmor %vm1415_vm14, %vm1416_vm6  ;;  %v1389_v18 = vand.u32 2147483647, %v1346_v27  ;;  %vm1385_vm5 = vweird.f32 %v1346_v27 }
 0x4bc   : > { %v1412_v51 = vsub.f32 1.0, %v1411_v56  ;;  %4062 = vpow2.f32 %v1337_v17 }
 0x4bd   : > { %v1641_v42 = vpop.permute.xlu1 %1640  ;;  %vm1390_vm14 = vcmp.eq.f32.partialorder %v1389_v18, 8.507059e+37  ;;  %v1590_v18 = vunpack.c.l.b16 %v5798_v31 }
 0x4be   : > { %v1413_v25 = vmul.f32 %v4059_v21, %v1412_v51  ;;  %v1646_v46 = vsel %vm5871_vm9, %v1641_v42, 0  ;;  %1980 = vrot.lane.b32.xlu1 %v4765_v11, %s4198_s17  ;;  %v1391_v51 = vand.u32 2147483648, %v1346_v27 }
 0x4bf   : > { %1655 = vmatpush.bf16.msrb.mxu3 %v1646_v46 }
 0x4c0   : > { %v1414_v50 = vadd.f32 %v4059_v21, %v1413_v25 }
 0x4c1   : > { %v4061_v49 = vpop.eup %4060 }
 0x4c2   : > { %v1381_v62 = vmul.f32 %v4061_v49, %v1346_v27  ;;  %v1418_v28 = vsel %vm1417_vm7, %v4059_v21, %v1414_v50  ;;  %v1521_v45 = vpop.permute.xlu2 %1520  ;;  %vm1386_vm11 = vweird.f32 %v4061_v49  ;;  %v1392_v21 = vor.u32 1.1754944e-38, %v1391_v51  ;;  %v5009_v50 = vpop.eup %4062 }
 0x4c3   : > { %v1423_v12 = vsel %vm1420_vm10, %v1422_v29, %v1418_v28  ;;  %v1526_v4 = vsel %vm5872_vm8, %v1521_v45, 0  ;;  %vm1387_vm6 = vmor %vm1385_vm5, %vm1386_vm11  ;;  %vm5873_vm7 = vcmask 57344   ;;  %vm5874_vm5 = vcmask 1043456  }
 0x4c4   : > { %v1382_v56 = vsub.f32 1.0, %v1381_v62  ;;  %v1424_v55 = vmul.f32 %v4926_v47, %v1423_v12  ;;  %1535 = vmatpush.bf16.msra.mxu2 %v1526_v4  ;;  %v1359_v28 = vsel %vm5873_vm7, %v5009_v50, 0.0 }
 0x4c6   : > { %v1383_v57 = vmul.f32 %v4061_v49, %v1382_v56  ;;  %v1488_v25 = vpack.c.bf16 %v1424_v55, %v1424_v55 }
 0x4c7   : > { %v1343_v42 = vpop.xlane.xlu0 %1342 }
 0x4c8   : > { %v1384_v16 = vadd.f32 %v4061_v49, %v1383_v57  ;;  %4064 = vrcp.f32 %v1343_v42  ;;  %3878 = vmatmul.msk.bf16.vlgmr.msrb.gmra.mxu0 %vm345_vm1, %v1488_v25  ;;  %v1376_v45 = vand.u32 2147483648, %v1343_v42  ;;  %v1374_v4 = vand.u32 2147483647, %v1343_v42 }
 0x4c9   : > { %vm1370_vm10 = vweird.f32 %v1343_v42 }
 0x4ca   : > { %v1388_v8 = vsel %vm1387_vm6, %v4061_v49, %v1384_v16  ;;  %v1377_v49 = vor.u32 1.1754944e-38, %v1376_v45  ;;  %vm1375_vm11 = vcmp.eq.f32.partialorder %v1374_v4, 8.507059e+37  ;;  %vm5875_vm6 = vmmov %vm5874_vm5 }
 0x4cb   : > { %v1393_v47 = vsel %vm1390_vm14, %v1392_v21, %v1388_v8  ;;  %v5019_v21 = vpack.c.b16 %v1590_v18, %v1590_v18 }
 0x4cc   : > { %v1394_v17 = vmul.f32 %v4933_v22, %v1393_v47 }
 0x4ce   : > { %v4065_v29 = vpop.eup %4064  ;;  %v1486_v46 = vpack.c.bf16 %v1394_v17, %v1394_v17 }
 0x4cf   : > { %v1366_v62 = vmul.f32 %v4065_v29, %v1343_v42  ;;  %vm1371_vm9 = vweird.f32 %v4065_v29 }
 0x4d0   : > { %3876 = vmatmul.msk.bf16.vlgmr.msra.gmra.mxu2 %vm345_vm1, %v1486_v46  ;;  %1360 = vadd.xlane.f32.xlu0 %v1359_v28  ;;  %vm1372_vm8 = vmor %vm1370_vm10, %vm1371_vm9 }
 0x4d1   : > { %v1367_v27 = vsub.f32 1.0, %v1366_v62 }
 0x4d3   : > { %v1368_v12 = vmul.f32 %v4065_v29, %v1367_v27 }
 0x4d5   : > { %v1369_v16 = vadd.f32 %v4065_v29, %v1368_v12 }
 0x4d7   : > { %v1373_v22 = vsel %vm1372_vm8, %v4065_v29, %v1369_v16 }
 0x4d8   : > { %v1378_v56 = vsel %vm1375_vm11, %v1377_v49, %v1373_v22 }
 0x4d9   : > { %v1379_v55 = vmul.f32 %v4944_v61, %v1378_v56 }
 0x4da   : > { %v1497_v51 = vpop.permute.xlu0 %1496 }
 0x4db   : > { %v1502_v57 = vsel %vm5874_vm5, %v1497_v51, 0  ;;  %v1485_v25 = vpack.c.bf16 %v1379_v55, %v1379_v55 }
 0x4dc   : > { %1511 = vmatpush.bf16.msra.mxu1 %v1502_v57 }
 0x4df   : > { %3875 = vmatmul.msk.bf16.vlgmr.msra.gmra.mxu1 %vm345_vm1, %v1485_v25 }
 0x4e4   : > { %1592 = vrot.lane.b32.xlu0 %v5019_v21, %s4196_s16 }
 0x4e8   : > { %v1358_v61 = vpop.xlane.xlu1 %1357 }
 0x4e9   : > { %4066 = vrcp.f32 %v1358_v61  ;;  %v1451_v18 = vand.u32 2147483648, %v1358_v61  ;;  %vm1445_vm11 = vweird.f32 %v1358_v61  ;;  %v1449_v25 = vand.u32 2147483647, %v1358_v61 }
 0x4ec   : > { %1842 = vrot.lane.b32.xlu0 %v4758_v13, %s4198_s17 }
 0x4ef   : > { %v4067_v8 = vpop.eup %4066 }
 0x4f0   : > { %v1441_v47 = vmul.f32 %v4067_v8, %v1358_v61  ;;  %vm1446_vm8 = vweird.f32 %v4067_v8 }
 0x4f1   : > { %vm1447_vm5 = vmor %vm1445_vm11, %vm1446_vm8 }
 0x4f2   : > { %v1442_v28 = vsub.f32 1.0, %v1441_v47 }
 0x4f4   : > { %1840 = vrot.lane.b32.xlu0 %v4615_v10, %s4198_s17  ;;  %v1443_v16 = vmul.f32 %v4067_v8, %v1442_v28 }
 0x4f6   : > { %v1444_v51 = vadd.f32 %v4067_v8, %v1443_v16 }
 0x4fb   : > { %v1364_v42 = vpop.xlane.xlu2 %1363 }
 0x4fc   : > { %4068 = vrcp.f32 %v1364_v42  ;;  %1865 = vrot.lane.b32.xlu0 %v4713_v6, %s4198_s17  ;;  %v1481_v45 = vand.u32 2147483648, %v1364_v42  ;;  %v1479_v4 = vand.u32 2147483647, %v1364_v42  ;;  %vm1475_vm7 = vweird.f32 %v1364_v42 }
 0x4fe   : > { %v1482_v22 = vor.u32 1.1754944e-38, %v1481_v45  ;;  %vm1480_vm10 = vcmp.eq.f32.partialorder %v1479_v4, 8.507059e+37  ;;  %v5877_v45 = vld [vmem:[#allocation20_spill] sm:$0xff] }
 0x500   : > { %v1665_v46 = vpop.permute.xlu1 %1664 }
 0x501   : > { %v1670_v62 = vsel %vm5875_vm6, %v1665_v46, 0  ;;  %v1452_v46 = vor.u32 1.1754944e-38, %v1451_v18  ;;  %vm1450_vm6 = vcmp.eq.f32.partialorder %v1449_v25, 8.507059e+37 }
 0x502   : > { %v4069_v17 = vpop.eup %4068  ;;  %1679 = vmatpush.bf16.msra.mxu0 %v1670_v62 }
 0x503   : > { %v1471_v29 = vmul.f32 %v4069_v17, %v1364_v42  ;;  %vm1476_vm14 = vweird.f32 %v4069_v17  ;;  %v1448_v42 = vsel %vm1447_vm5, %v4067_v8, %v1444_v51  ;;  %v5880_v8 = vld [vmem:[#allocation56_spill] sm:$0xff] }
 0x504   : > { %2003 = vrot.lane.b32.xlu0 %v4779_v63, %s4198_s17  ;;  %vm1477_vm9 = vmor %vm1475_vm7, %vm1476_vm14  ;;  %v1453_v62 = vsel %vm1450_vm6, %v1452_v46, %v1448_v42  ;;  %vm5878_vm14 = vcmask 1043456  }
 0x505   : > { %v1472_v27 = vsub.f32 1.0, %v1471_v29  ;;  %v1355_v29 = vpop.xlane.xlu0 %1354  ;;  %v1454_v28 = vmul.f32 %v4959_v53, %v1453_v62  ;;  %vm5879_vm7 = vmmov %vm5878_vm14  ;;  %v1805_v53 = vpack.c.b16 %v4889_v24, %v4889_v24 }
 0x506   : > { %4070 = vrcp.f32 %v1355_v29  ;;  %v1436_v24 = vand.u32 2147483648, %v1355_v29 }
 0x507   : > { %v1473_v12 = vmul.f32 %v4069_v17, %v1472_v27  ;;  %v1490_v16 = vpack.c.bf16 %v1454_v28, %v1454_v28  ;;  %v1434_v28 = vand.u32 2147483647, %v1355_v29 }
 0x509   : > { %v1474_v49 = vadd.f32 %v4069_v17, %v1473_v12  ;;  %v1912_v12 = vpop.permute.xlu1 %1911  ;;  %vm1435_vm5 = vcmp.eq.f32.partialorder %v1434_v28, 8.507059e+37 }
 0x50a   : > { %v1917_v4 = vsel %vm345_vm1, %v1912_v12, 0 }
 0x50b   : > { %v1478_v56 = vsel %vm1477_vm9, %v4069_v17, %v1474_v49  ;;  %v5876_v17 = vld [vmem:[#allocation57_spill] sm:$0xff] }
 0x50c   : > { %1886 = vrot.lane.b32.xlu0 %v4621_v3, %s4198_s17  ;;  %v1483_v55 = vsel %vm1480_vm10, %v1482_v22, %v1478_v56  ;;  %v4071_v22 = vpop.eup %4070  ;;  %vm1430_vm10 = vweird.f32 %v1355_v29 }
 0x50d   : > { %v1484_v57 = vmul.f32 %v4965_v5, %v1483_v55  ;;  %v1810_v5 = vsel %vm5878_vm14, %v5877_v45, 0  ;;  %v1426_v55 = vmul.f32 %v4071_v22, %v1355_v29  ;;  %vm1431_vm9 = vweird.f32 %v4071_v22 }
 0x50e   : > { %vm1432_vm8 = vmor %vm1430_vm10, %vm1431_vm9  ;;  %vm5881_vm9 = vcmask 1043456   ;;  %vm5882_vm10 = vcmask 1041409  }
 0x50f   : > { %v1492_v47 = vpack.c.bf16 %v1484_v57, %v1484_v57  ;;  %v1427_v57 = vsub.f32 1.0, %v1426_v55 }
 0x511   : > { %3882 = vmatmul.msk.bf16.vlgmr.msra.gmra.mxu0 %vm345_vm1, %v1492_v47  ;;  %v1910_v56 = vpop.permute.xlu1 %1909  ;;  %v1428_v47 = vmul.f32 %v4071_v22, %v1427_v57 }
 0x513   : > { %v1429_v46 = vadd.f32 %v4071_v22, %v1428_v47 }
 0x514   : > { %2001 = vrot.lane.b32.xlu0 %v5876_v17, %s4198_s17 }
 0x518   : > { %v1617_v27 = vpop.permute.xlu0 %1616 }
 0x519   : > { %v1622_v61 = vsel %vm5879_vm7, %v1617_v27, 0 }
 0x51a   : > { %1631 = vmatpush.bf16.msrb.mxu2 %v1622_v61 }
 0x51c   : > { %1955 = vrot.lane.b32.xlu0 %v5880_v8, %s4198_s17 }
 0x51d   : > { %3880 = vmatmul.msk.bf16.vlgmr.msrb.gmra.mxu2 %vm345_vm1, %v1490_v16  ;;  %v1437_v16 = vor.u32 1.1754944e-38, %v1436_v24 }
 0x51e   : > { %1819 = vmatpush.bf16.msra.mxu2 %v1810_v5 }
 0x522   : > { %1926 = vmatpush.bf16.xpose.msrb.mxu2 %v1917_v4  ;;  %v1433_v4 = vsel %vm1432_vm8, %v4071_v22, %v1429_v46  ;;  %vm5883_vm8 = vcmask 1042434  }
 0x523   : > { %v1438_v55 = vsel %vm1435_vm5, %v1437_v16, %v1433_v4  ;;  %vm5885_vm5 = vcmask 57344  }
 0x52d   : > { %3900 = vmatmul.msk.bf16.vlgmr.msra.gmra.mxu2 %vm345_vm1, %v1805_v53 }
 0x536   : > { %v1561_v49 = vpop.f32.mrf.mxu3 }
 0x53d   : > { %3904 = vmatmul.msk.bf16.vlgmr.msrb.gmra.mxu2 %vm345_vm1, %v1910_v56 }
 0x53e   : > { %v1563_v51 = vpop.f32.mrf.mxu3 }
 0x543   : > { %v1361_v18 = vpop.xlane.xlu0 %1360 }
 0x544   : > { %4072 = vrcp.f32 %v1361_v18  ;;  %v1466_v5 = vand.u32 2147483648, %v1361_v18  ;;  %v1464_v12 = vand.u32 2147483647, %v1361_v18  ;;  %vm1460_vm6 = vweird.f32 %v1361_v18 }
 0x545   : > { %v1585_v25 = vpop.f32.mrf.mxu0 }
 0x546   : > { %v1467_v56 = vor.u32 1.1754944e-38, %v1466_v5  ;;  %vm1465_vm7 = vcmp.eq.f32.partialorder %v1464_v12, 8.507059e+37  ;;  %v1688_v31 = vpack.c.bf16 %v1585_v25, %v1585_v25 }
 0x548   : > { %v1704_v5 = vunpack.c.l.b16 %v1688_v31 }
 0x54a   : > { %v4073_v42 = vpop.eup %4072 }
 0x54b   : > { %v1456_v62 = vmul.f32 %v4073_v42, %v1361_v18  ;;  %vm1461_vm11 = vweird.f32 %v4073_v42 }
 0x54c   : > { %vm1462_vm14 = vmor %vm1460_vm6, %vm1461_vm11  ;;  %vm5884_vm11 = vcmask 1043459  }
 0x54d   : > { %v1457_v27 = vsub.f32 1.0, %v1456_v62  ;;  %v1587_v45 = vpop.f32.mrf.mxu0  ;;  %vm5887_vm6 = vmmov %vm5881_vm9 }
 0x54e   : > { %v1439_v45 = vmul.f32 %v4972_v20, %v1438_v55 }
 0x54f   : > { %v1458_v61 = vmul.f32 %v4073_v42, %v1457_v27  ;;  %v1687_v27 = vpack.c.bf16 %v1561_v49, %v1561_v49 }
 0x550   : > { %v1489_v24 = vpack.c.bf16 %v1439_v45, %v1439_v45 }
 0x551   : > { %v1459_v53 = vadd.f32 %v4073_v42, %v1458_v61  ;;  %v1703_v28 = vunpack.c.l.b16 %v1687_v27 }
 0x553   : > { %v1537_v51 = vpop.f32.mrf.mxu2  ;;  %v1463_v57 = vsel %vm1462_vm14, %v4073_v42, %v1459_v53  ;;  %v3885_v25 = vunpack.i.l.s16 %v1703_v28  ;;  %vm5888_vm14 = vcmask 1044484  }
 0x554   : > { %v1468_v47 = vsel %vm1465_vm7, %v1467_v56, %v1463_v57  ;;  %v1686_v29 = vpack.c.bf16 %v1537_v51, %v1537_v51  ;;  %v1889_v51 = vpop.permute.xlu2 %1888  ;;  %vm5889_vm7 = vcmask 1045509  }
 0x555   : > { %v1469_v62 = vmul.f32 %v5009_v50, %v1468_v47  ;;  %v1935_v50 = vpop.permute.xlu1 %1934  ;;  %v1727_v31 = vrot.slane %v3885_v25, 6 }
 0x556   : > { %v1593_v26 = vpop.permute.xlu0 %1592  ;;  %v1702_v18 = vunpack.c.l.b16 %v1686_v29  ;;  %v1940_v49 = vsel %vm345_vm1, %v1935_v50, 0 }
 0x557   : > { %v1598_v22 = vsel %vm5881_vm9, %v1593_v26, 0  ;;  %v1491_v46 = vpack.c.bf16 %v1469_v62, %v1469_v62  ;;  %v3886_v26 = vunpack.i.l.s16 %v1704_v5  ;;  %vm5890_vm9 = vcmask 1046534  }
 0x558   : > { %1607 = vmatpush.bf16.msrb.mxu1 %v1598_v22  ;;  %v3884_v12 = vunpack.i.l.s16 %v1702_v18 }
 0x559   : > { %3881 = vmatmul.msk.bf16.vlgmr.msrb.gmra.mxu3 %vm345_vm1, %v1491_v46  ;;  %v1729_v57 = vrot.slane %v3886_v26, 5 }
 0x55a   : > { %v1725_v56 = vrot.slane %v3884_v12, 7 }
 0x55b   : > { %v1539_v42 = vpop.f32.mrf.mxu2  ;;  %3879 = vmatmul.msk.bf16.vlgmr.msrb.gmra.mxu1 %vm345_vm1, %v1489_v24 }
 0x55c   : > { %v1513_v61 = vpop.f32.mrf.mxu1  ;;  %v1958_v22 = vpop.permute.xlu2 %1957 }
 0x55d   : > { %v1685_v20 = vpack.c.bf16 %v1513_v61, %v1513_v61  ;;  %v1963_v46 = vsel %vm345_vm1, %v1958_v22, 0  ;;  %v1864_v18 = vpop.permute.xlu1 %1863 }
 0x55e   : > { %v1843_v4 = vpop.permute.xlu0 %1842 }
 0x55f   : > { %v1701_v16 = vunpack.c.l.b16 %v1685_v20  ;;  %v1848_v53 = vsel %vm345_vm1, %v1843_v4, 0 }
 0x560   : > { %1857 = vmatpush.bf16.xpose.msra.mxu3 %v1848_v53 }
 0x561   : > { %v3883_v55 = vunpack.i.l.s16 %v1701_v16 }
 0x563   : > { %v1726_v47 = vsel %vm5882_vm10, %v1725_v56, %v3883_v55  ;;  %vm5891_vm10 = vcmask 1047559  }
 0x564   : > { %v1728_v29 = vsel %vm5883_vm8, %v1727_v31, %v1726_v47  ;;  %v1515_v62 = vpop.f32.mrf.mxu1  ;;  %vm5892_vm8 = vcmp.gt.f32.partialorder %v4649_v7, 0.5 }
 0x565   : > { %v1730_v45 = vsel %vm5884_vm11, %v1729_v57, %v1728_v29  ;;  %v1933_v61 = vpop.permute.xlu1 %1932  ;;  %v1894_v57 = vsel %vm345_vm1, %v1889_v51, 0  ;;  %v5886_v29 = vld [vmem:[#allocation21_spill] sm:$0xff]  ;;  %vm5893_vm11 = vmmov %vm5885_vm5 }
 0x566   : > { %v1841_v27 = vpop.permute.xlu0 %1840  ;;  %v1744_v62 = vsel %vm5887_vm6, %v5886_v29, 0  ;;  %vm5894_vm6 = vmmov %vm5885_vm5 }
 0x567   : > { %1753 = vmatpush.bf16.msra.mxu1 %v1744_v62 }
 0x568   : > { %1949 = vmatpush.bf16.xpose.msrb.mxu3 %v1940_v49 }
 0x569   : > { %3901 = vmatmul.msk.bf16.vlgmr.msra.gmra.mxu3 %vm345_vm1, %v1841_v27 }
 0x56b   : > { %1903 = vmatpush.bf16.xpose.msrb.mxu1 %v1894_v57 }
 0x56e   : > { %v1866_v24 = vpop.permute.xlu0 %1865 }
 0x56f   : > { %v1871_v28 = vsel %vm345_vm1, %v1866_v24, 0 }
 0x570   : > { %1880 = vmatpush.bf16.xpose.msrb.mxu0 %v1871_v28 }
 0x576   : > { %v2004_v5 = vpop.permute.xlu0 %2003 }
 0x577   : > { %v2009_v42 = vsel %vm345_vm1, %v2004_v5, 0  ;;  %3902 = vmatmul.msk.bf16.vlgmr.msrb.gmra.mxu0 %vm345_vm1, %v1864_v18 }
 0x578   : > { %1972 = vmatpush.bf16.xpose.msra.mxu0 %v1963_v46  ;;  %2018 = vmatpush.bf16.xpose.msra.mxu2 %v2009_v42 }
 0x579   : > { %3905 = vmatmul.msk.bf16.vlgmr.msrb.gmra.mxu3 %vm345_vm1, %v1933_v61 }
 0x57e   : > { %v1887_v50 = vpop.permute.xlu0 %1886 }
 0x586   : > { %v2002_v12 = vpop.permute.xlu0 %2001 }
 0x587   : > { %3908 = vmatmul.msk.bf16.vlgmr.msra.gmra.mxu2 %vm345_vm1, %v2002_v12 }
 0x58e   : > { %v1681_v20 = vpop.f32.mrf.mxu0  ;;  %v1956_v49 = vpop.permute.xlu0 %1955 }
 0x58f   : > { %3906 = vmatmul.msk.bf16.vlgmr.msra.gmra.mxu0 %vm345_vm1, %v1956_v49  ;;  %v1692_v46 = vpack.c.bf16 %v1681_v20, %v1681_v20 }
 0x591   : > { %v1708_v42 = vunpack.c.l.b16 %v1692_v46 }
 0x596   : > { %v1683_v25 = vpop.f32.mrf.mxu0 }
 0x5a0   : > { %v1633_v4 = vpop.f32.mrf.mxu2 }
 0x5a1   : > { %v1690_v22 = vpack.c.bf16 %v1633_v4, %v1633_v4 }
 0x5a3   : > { %v1706_v28 = vunpack.c.l.b16 %v1690_v22 }
 0x5a5   : > { %v3888_v49 = vunpack.i.l.s16 %v1706_v28 }
 0x5a7   : > { %v1733_v57 = vrot.slane %v3888_v49, 3 }
 0x5a8   : > { %v1635_v26 = vpop.f32.mrf.mxu2 }
 0x5b0   : > { %v5068_v16 = vpop.f32.mrf.mxu2 }
 0x5b8   : > { %v1823_v53 = vpop.f32.mrf.mxu2 }
 0x5b9   : > { %v3890_v53 = vunpack.i.l.s16 %v1708_v42 }
 0x5bb   : > { %v1737_v4 = vrot.slane %v3890_v53, 1 }
 0x5c0   : > { %v1928_v56 = vpop.f32.mrf.mxu2 }
 0x5c1   : > { %v2027_v55 = vmul.f32 0.35355338, %v1928_v56 }
 0x5c3   : > { %v5072_v31 = vsel %vm4660_vm15, -inf, %v2027_v55 }
 0x5c4   : > { %v2049_v47 = vsel %vm5885_vm5, %v5072_v31, -inf }
 0x5c5   : > { %2050 = vmax.xlane.f32.xlu0 %v2049_v47 }
 0x5c8   : > { %v1930_v27 = vpop.f32.mrf.mxu2 }
 0x5c9   : > { %v1981_v27 = vpop.permute.xlu1 %1980 }
 0x5d8   : > { %v1609_v18 = vpop.f32.mrf.mxu1 }
 0x5d9   : > { %v1689_v24 = vpack.c.bf16 %v1609_v18, %v1609_v18 }
 0x5db   : > { %v1705_v5 = vunpack.c.l.b16 %v1689_v24  ;;  %v1986_v24 = vsel %vm345_vm1, %v1981_v27, 0 }
 0x5dc   : > { %v1657_v61 = vpop.f32.mrf.mxu3 }
 0x5dd   : > { %v3887_v12 = vunpack.i.l.s16 %v1705_v5  ;;  %v1691_v51 = vpack.c.bf16 %v1657_v61, %v1657_v61 }
 0x5df   : > { %v1731_v25 = vrot.slane %v3887_v12, 4  ;;  %v1707_v26 = vunpack.c.l.b16 %v1691_v51 }
 0x5e0   : > { %v1611_v56 = vpop.f32.mrf.mxu1 }
 0x5e1   : > { %v1732_v55 = vsel %vm5888_vm14, %v1731_v25, %v1730_v45  ;;  %v3889_v47 = vunpack.i.l.s16 %v1707_v26  ;;  %vm5895_vm14 = vmmov %vm5885_vm5 }
 0x5e2   : > { %v1734_v20 = vsel %vm5889_vm7, %v1733_v57, %v1732_v55  ;;  %vm5896_vm7 = vmmov %vm5885_vm5 }
 0x5e3   : > { %v1735_v29 = vrot.slane %v3889_v47, 2 }
 0x5e4   : > { %v1659_v62 = vpop.f32.mrf.mxu3 }
 0x5e5   : > { %v1736_v22 = vsel %vm5890_vm9, %v1735_v29, %v1734_v20  ;;  %v1979_v29 = vpop.permute.xlu2 %1978  ;;  %vm5897_vm9 = vmmov %vm5885_vm5 }
 0x5e6   : > { %v1738_v46 = vsel %vm5891_vm10, %v1737_v4, %v1736_v22  ;;  %vm5898_vm10 = vmmov %vm5885_vm5 }
 0x5e7   : > { %v1739_v18 = vpack.c.b16 %v1738_v46, %v1738_v46 }
 0x5e9   : > { %3891 = vmatmul.msk.bf16.vlgmr.msra.gmra.mxu1 %vm345_vm1, %v1739_v18 }
 0x5ea   : > { %1995 = vmatpush.bf16.xpose.msra.mxu1 %v1986_v24 }
 0x5ec   : > { %v1859_v28 = vpop.f32.mrf.mxu3 }
 0x5ed   : > { %v2024_v45 = vmul.f32 0.35355338, %v1859_v28 }
 0x5ef   : > { %v2032_v5 = vsel %vm5892_vm8, -inf, %v2024_v45  ;;  %vm5899_vm8 = vmmov %vm5885_vm5 }
 0x5f0   : > { %v2040_v42 = vsel %vm5893_vm11, %v2032_v5, -inf  ;;  %vm5900_vm11 = vmmov %vm5885_vm5 }
 0x5f1   : > { %2041 = vmax.xlane.f32.xlu1 %v2040_v42 }
 0x5f4   : > { %v1861_v61 = vpop.f32.mrf.mxu3  ;;  %v1882_v12 = vpop.f32.mrf.mxu0 }
 0x5f5   : > { %v2025_v51 = vmul.f32 0.35355338, %v1882_v12 }
 0x5f7   : > { %v2033_v49 = vsel %vm4664_vm2, -inf, %v2025_v51 }
 0x5f8   : > { %v2043_v25 = vsel %vm5885_vm5, %v2033_v49, -inf }
 0x5f9   : > { %2044 = vmax.xlane.f32.xlu2 %v2043_v25  ;;  %3903 = vmatmul.msk.bf16.vlgmr.msrb.gmra.mxu1 %vm345_vm1, %v1887_v50 }
 0x5fc   : > { %v1884_v26 = vpop.f32.mrf.mxu0  ;;  %v1951_v53 = vpop.f32.mrf.mxu3 }
 0x5fd   : > { %v2028_v56 = vmul.f32 0.35355338, %v1951_v53 }
 0x5ff   : > { %v2036_v55 = vsel %vm4685_vm12, -inf, %v2028_v56 }
 0x600   : > { %v2052_v47 = vsel %vm5894_vm6, %v2036_v55, -inf  ;;  %vm5901_vm6 = vmmov %vm5885_vm5 }
 0x601   : > { %2053 = vmax.xlane.f32.xlu2 %v2052_v47 }
 0x604   : > { %v1953_v57 = vpop.f32.mrf.mxu3 }
 0x609   : > { %3907 = vmatmul.msk.bf16.vlgmr.msra.gmra.mxu1 %vm345_vm1, %v1979_v29 }
 0x60a   : > { %v2020_v4 = vpop.f32.mrf.mxu2 }
 0x60b   : > { %v2031_v20 = vmul.f32 0.35355338, %v2020_v4 }
 0x60c   : > { %v1974_v62 = vpop.f32.mrf.mxu0 }
 0x60d   : > { %v5098_v27 = vsel %vm4681_vm4, -inf, %v2031_v20  ;;  %v2029_v57 = vmul.f32 0.35355338, %v1974_v62 }
 0x60e   : > { %v2061_v50 = vsel %vm5895_vm14, %v5098_v27, -inf  ;;  %vm5902_vm14 = vmmov %vm5885_vm5 }
 0x60f   : > { %2062 = vmax.xlane.f32.xlu0 %v2061_v50  ;;  %v2037_v50 = vsel %vm4692_vm0, -inf, %v2029_v57 }
 0x612   : > { %v2022_v22 = vpop.f32.mrf.mxu2 }
 0x614   : > { %v1976_v46 = vpop.f32.mrf.mxu0 }
 0x638   : > { %v2051_v25 = vpop.xlane.xlu0 %2050 }
 0x639   : > { %v2067_v56 = vsub.f32 %v5072_v31, %v2051_v25  ;;  %v2055_v31 = vsel %vm5898_vm10, %v2037_v50, -inf }
 0x63b   : > { %v2078_v29 = vmul.f32 1.442695, %v2067_v56 }
 0x664   : > { %v2042_v18 = vpop.xlane.xlu1 %2041 }
 0x665   : > { %v2064_v24 = vsub.f32 %v2032_v5, %v2042_v18 }
 0x666   : > { %v5102_v28 = vpop.f32.mrf.mxu1 }
 0x667   : > { %v2072_v45 = vmul.f32 1.442695, %v2064_v24  ;;  %v1822_v34 = vadd.f32 %v5068_v16, %v5102_v28 }
 0x669   : > { %4074 = vpow2.f32 %v2072_v45  ;;  %v1827_v35 = vrot.slane %v1822_v34, 2  ;;  %v1832_v28 = vrot.slane %v1822_v34, 7 }
 0x66a   : > { %4076 = vpow2.f32 %v2078_v29 }
 0x66c   : > { %v2045_v51 = vpop.xlane.xlu2 %2044 }
 0x66d   : > { %v2065_v22 = vsub.f32 %v2033_v49, %v2045_v51 }
 0x66e   : > { %v1757_v42 = vpop.f32.mrf.mxu1 }
 0x66f   : > { %v5104_v61 = vpop.eup %4074  ;;  %v2074_v18 = vmul.f32 1.442695, %v2065_v22 }
 0x670   : > { %v2088_v12 = vsel %vm5896_vm7, %v5104_v61, 0.0  ;;  %v5118_v42 = vpop.eup %4076 }
 0x671   : > { %2089 = vadd.xlane.f32.xlu0 %v2088_v12  ;;  %4078 = vpow2.f32 %v2074_v18 }
 0x674   : > { %v2054_v4 = vpop.xlane.xlu2 %2053 }
 0x675   : > { %v2068_v46 = vsub.f32 %v2036_v55, %v2054_v4  ;;  %v2097_v55 = vsel %vm5900_vm11, %v5118_v42, 0.0  ;;  %vm5903_vm11 = vmmov %vm5885_vm5 }
 0x676   : > { %v1905_v26 = vpop.f32.mrf.mxu1 }
 0x677   : > { %v2026_v53 = vmul.f32 0.35355338, %v1905_v26  ;;  %v2080_v24 = vmul.f32 1.442695, %v2068_v46  ;;  %v5128_v51 = vpop.eup %4078 }
 0x679   : > { %v5111_v5 = vsel %vm4674_vm3, -inf, %v2026_v53  ;;  %4080 = vpow2.f32 %v2080_v24  ;;  %v2091_v53 = vsel %vm5885_vm5, %v5128_v51, 0.0  ;;  %vm5904_vm5 = vcmask 1043456  }
 0x67a   : > { %v2046_v47 = vsel %vm5897_vm9, %v5111_v5, -inf }
 0x67b   : > { %2047 = vmax.xlane.f32.xlu1 %v2046_v47 }
 0x67e   : > { %v1907_v20 = vpop.f32.mrf.mxu1 }
 0x67f   : > { %v5130_v26 = vpop.eup %4080 }
 0x680   : > { %v2100_v56 = vsel %vm5901_vm6, %v5130_v26, 0.0 }
 0x682   : > { %v2063_v47 = vpop.xlane.xlu0 %2062 }
 0x683   : > { %2056 = vmax.xlane.f32.xlu1 %v2055_v31 }
 0x686   : > { %v1997_v45 = vpop.f32.mrf.mxu1 }
 0x687   : > { %v2030_v12 = vmul.f32 0.35355338, %v1997_v45 }
 0x689   : > { %v5122_v62 = vsel %vm4705_vm13, -inf, %v2030_v12 }
 0x68a   : > { %v2058_v49 = vsel %vm5899_vm8, %v5122_v62, -inf }
 0x68b   : > { %2059 = vmax.xlane.f32.xlu2 %v2058_v49  ;;  %2098 = vadd.xlane.f32.xlu1 %v2097_v55 }
 0x68e   : > { %v1999_v25 = vpop.f32.mrf.mxu1 }
 0x693   : > { %2092 = vadd.xlane.f32.xlu2 %v2091_v53  ;;  %2101 = vadd.xlane.f32.xlu1 %v2100_v56 }
 0x6ab   : > { %2240 = vrot.lane.b32.xlu2 %v4954_v2, %s4198_s17 }
 0x6ac   : > { %2303 = vrot.lane.b32.xlu1 %v4931_v33, %s4198_s17 }
 0x6b3   : > { %2261 = vrot.lane.b32.xlu2 %v4949_v9, %s4198_s17 }
 0x6b4   : > { %2324 = vrot.lane.b32.xlu1 %v5019_v21, %s4198_s17 }
 0x6bb   : > { %2387 = vrot.lane.b32.xlu2 %v4970_v23, %s4198_s17 }
 0x6bc   : > { %2345 = vrot.lane.b32.xlu1 %v4985_v60, %s4198_s17 }
 0x6c3   : > { %2366 = vrot.lane.b32.xlu2 %v4940_v15, %s4198_s17 }
 0x6c4   : > { %2553 = vrot.lane.b32.xlu1 %v4609_v38, %s4199_s8 }
 0x6cb   : > { %2551 = vrot.lane.b32.xlu2 %v4621_v3, %s4199_s8 }
 0x6cc   : > { %2574 = vrot.lane.b32.xlu1 %v4628_v40, %s4199_s8 }
 0x6d3   : > { %2530 = vrot.lane.b32.xlu2 %v4713_v6, %s4199_s8 }
 0x6d4   : > { %2645 = vrot.lane.b32.xlu1 %v4765_v11, %s4199_s8  ;;  %v2071_v11 = vsub.f32 %v5098_v27, %v2063_v47 }
 0x6d6   : > { %v2086_v29 = vmul.f32 1.442695, %v2071_v11 }
 0x6db   : > { %2505 = vrot.lane.b32.xlu2 %v4615_v10, %s4199_s8 }
 0x6dc   : > { %2528 = vrot.lane.b32.xlu1 %v4619_v39, %s4199_s8 }
 0x6e3   : > { %2666 = vrot.lane.b32.xlu2 %v5876_v17, %s4199_s8 }
 0x6e4   : > { %2599 = vrot.lane.b32.xlu1 %v4799_v19, %s4199_s8  ;;  %v2090_v38 = vpop.xlane.xlu0 %2089 }
 0x6e5   : > { %4082 = vrcp.f32 %v2090_v38  ;;  %v2123_v27 = vand.u32 2147483648, %v2090_v38  ;;  %vm2117_vm9 = vweird.f32 %v2090_v38  ;;  %v2121_v31 = vand.u32 2147483647, %v2090_v38 }
 0x6e7   : > { %v2124_v55 = vor.u32 1.1754944e-38, %v2123_v27  ;;  %vm2122_vm8 = vcmp.eq.f32.partialorder %v2121_v31, 8.507059e+37 }
 0x6eb   : > { %2597 = vrot.lane.b32.xlu2 %v4633_v43, %s4199_s8  ;;  %v4083_v10 = vpop.eup %4082 }
 0x6ec   : > { %2620 = vrot.lane.b32.xlu1 %v5880_v8, %s4199_s8  ;;  %v2113_v40 = vmul.f32 %v4083_v10, %v2090_v38  ;;  %vm2118_vm7 = vweird.f32 %v4083_v10 }
 0x6ed   : > { %vm2119_vm10 = vmor %vm2117_vm9, %vm2118_vm7 }
 0x6ee   : > { %v2048_v6 = vpop.xlane.xlu1 %2047  ;;  %v2114_v17 = vsub.f32 1.0, %v2113_v40 }
 0x6ef   : > { %v2066_v8 = vsub.f32 %v5111_v5, %v2048_v6 }
 0x6f0   : > { %v2115_v20 = vmul.f32 %v4083_v10, %v2114_v17 }
 0x6f1   : > { %v2076_v18 = vmul.f32 1.442695, %v2066_v8 }
 0x6f2   : > { %v2116_v22 = vadd.f32 %v4083_v10, %v2115_v20 }
 0x6f4   : > { %v2120_v49 = vsel %vm2119_vm10, %v4083_v10, %v2116_v22 }
 0x6f5   : > { %v2125_v56 = vsel %vm2122_vm8, %v2124_v55, %v2120_v49 }
 0x6f6   : > { %v2057_v3 = vpop.xlane.xlu1 %2056 }
 0x6f7   : > { %v2069_v39 = vsub.f32 %v2037_v50, %v2057_v3  ;;  %v2126_v3 = vmul.f32 %v5104_v61, %v2125_v56 }
 0x6f9   : > { %v2082_v57 = vmul.f32 1.442695, %v2069_v39  ;;  %v2232_v20 = vpack.c.bf16 %v2126_v3, %v2126_v3 }
 0x6fb   : > { %4084 = vpow2.f32 %v2082_v57 }
 0x6fe   : > { %v2060_v19 = vpop.xlane.xlu2 %2059  ;;  %v5173_v4 = vpop.xlane.xlu1 %2098 }
 0x6ff   : > { %4086 = vrcp.f32 %v5173_v4  ;;  %v2070_v25 = vsub.f32 %v5122_v62, %v2060_v19  ;;  %v2168_v31 = vand.u32 2147483648, %v5173_v4  ;;  %vm2162_vm10 = vweird.f32 %v5173_v4 }
 0x700   : > { %4088 = vpow2.f32 %v2086_v29 }
 0x701   : > { %v5176_v43 = vpop.eup %4084  ;;  %v2084_v6 = vmul.f32 1.442695, %v2070_v25  ;;  %v2169_v3 = vor.u32 1.1754944e-38, %v2168_v31 }
 0x702   : > { %v2103_v50 = vsel %vm5902_vm14, %v5176_v43, 0.0  ;;  %vm5905_vm14 = vmmov %vm5903_vm11 }
 0x703   : > { %2104 = vadd.xlane.f32.xlu0 %v2103_v50 }
 0x705   : > { %v5181_v46 = vpop.eup %4086 }
 0x706   : > { %v2093_v24 = vpop.xlane.xlu2 %2092  ;;  %v5183_v45 = vpop.xlane.xlu1 %2101  ;;  %v2158_v5 = vmul.f32 %v5181_v46, %v5173_v4  ;;  %vm2163_vm7 = vweird.f32 %v5181_v46 }
 0x707   : > { %v5185_v12 = vpop.eup %4088  ;;  %4090 = vrcp.f32 %v2093_v24  ;;  %v2138_v19 = vand.u32 2147483648, %v2093_v24  ;;  %v2136_v61 = vand.u32 2147483647, %v2093_v24  ;;  %vm2132_vm9 = vweird.f32 %v2093_v24 }
 0x708   : > { %4092 = vrcp.f32 %v5183_v45  ;;  %v2109_v53 = vsel %vm5903_vm11, %v5185_v12, 0.0  ;;  %v2159_v47 = vsub.f32 1.0, %v2158_v5  ;;  %v2166_v5 = vand.u32 2147483647, %v5173_v4  ;;  %vm5210_vm11 = vmor %vm2162_vm10, %vm2163_vm7 }
 0x709   : > { %4094 = vpow2.f32 %v2076_v18  ;;  %v2139_v49 = vor.u32 1.1754944e-38, %v2138_v19  ;;  %vm5909_vm7 = vcmask 57344   ;;  %vm2177_vm10 = vweird.f32 %v5183_v45 }
 0x70a   : > { %v2160_v57 = vmul.f32 %v5181_v46, %v2159_v47  ;;  %4096 = vpow2.f32 %v2084_v6 }
 0x70b   : > { %2110 = vadd.xlane.f32.xlu0 %v2109_v53 }
 0x70c   : > { %v2161_v22 = vadd.f32 %v5181_v46, %v2160_v57 }
 0x70d   : > { %v4091_v38 = vpop.eup %4090 }
 0x70e   : > { %v5194_v40 = vpop.eup %4092  ;;  %v2128_v10 = vmul.f32 %v4091_v38, %v2093_v24  ;;  %v2241_v39 = vpop.permute.xlu2 %2240  ;;  %vm2133_vm6 = vweird.f32 %v4091_v38  ;;  %v2165_v4 = vsel %vm5210_vm11, %v5181_v46, %v2161_v22  ;;  %v2181_v46 = vand.u32 2147483647, %v5183_v45 }
 0x70f   : > { %v5196_v11 = vpop.eup %4094  ;;  %v2173_v62 = vmul.f32 %v5194_v40, %v5183_v45  ;;  %v2246_v17 = vsel %vm5904_vm5, %v2241_v39, 0  ;;  %vm2134_vm8 = vmor %vm2132_vm9, %vm2133_vm6  ;;  %vm2137_vm5 = vcmp.eq.f32.partialorder %v2136_v61, 8.507059e+37  ;;  %vm2167_vm6 = vcmp.eq.f32.partialorder %v2166_v5, 8.507059e+37 }
 0x710   : > { %v2129_v29 = vsub.f32 1.0, %v2128_v10  ;;  %2255 = vmatpush.bf16.msra.mxu3 %v2246_v17  ;;  %v2094_v50 = vsel %vm5905_vm14, %v5196_v11, 0.0  ;;  %v5214_v56 = vpop.eup %4096  ;;  %vm5908_vm14 = vcmask 1043456   ;;  %v2170_v57 = vsel %vm2167_vm6, %v2169_v3, %v2165_v4 }
 0x711   : > { %v2174_v27 = vsub.f32 1.0, %v2173_v62  ;;  %v2106_v39 = vsel %vm5909_vm7, %v5214_v56, 0.0  ;;  %vm2178_vm9 = vweird.f32 %v5194_v40  ;;  %v2183_v17 = vand.u32 2147483648, %v5183_v45  ;;  %vm5910_vm11 = vmmov %vm5908_vm14 }
 0x712   : > { %v2130_v8 = vmul.f32 %v4091_v38, %v2129_v29 }
 0x713   : > { %2095 = vadd.xlane.f32.xlu0 %v2094_v50  ;;  %3909 = vmatmul.msk.bf16.vlgmr.msra.gmra.mxu3 %vm345_vm1, %v2232_v20  ;;  %v2175_v47 = vmul.f32 %v5194_v40, %v2174_v27  ;;  %v2184_v50 = vor.u32 1.1754944e-38, %v2183_v17 }
 0x714   : > { %v2131_v18 = vadd.f32 %v4091_v38, %v2130_v8 }
 0x715   : > { %v2176_v62 = vadd.f32 %v5194_v40, %v2175_v47 }
 0x716   : > { %v2262_v25 = vpop.permute.xlu2 %2261  ;;  %v2135_v53 = vsel %vm2134_vm8, %v4091_v38, %v2131_v18  ;;  %vm2179_vm8 = vmor %vm2177_vm10, %vm2178_vm9 }
 0x717   : > { %v2267_v6 = vsel %vm5908_vm14, %v2262_v25, 0  ;;  %v2140_v24 = vsel %vm2137_vm5, %v2139_v49, %v2135_v53  ;;  %vm5911_vm5 = vmmov %vm5910_vm11  ;;  %v2180_v61 = vsel %vm2179_vm8, %v5194_v40, %v2176_v62  ;;  %vm2182_vm14 = vcmp.eq.f32.partialorder %v2181_v46, 8.507059e+37 }
 0x718   : > { %2276 = vmatpush.bf16.msrb.mxu0 %v2267_v6  ;;  %v2141_v10 = vmul.f32 %v5128_v51, %v2140_v24  ;;  %v2171_v51 = vmul.f32 %v5118_v42, %v2170_v57  ;;  %v2185_v27 = vsel %vm2182_vm14, %v2184_v50, %v2180_v61  ;;  %vm5912_vm6 = vmmov %vm5911_vm5 }
 0x719   : > { %v2186_v45 = vmul.f32 %v5130_v26, %v2185_v27  ;;  %vm5913_vm7 = vmmov %vm5911_vm5 }
 0x71a   : > { %v2233_v38 = vpack.c.bf16 %v2141_v10, %v2141_v10  ;;  %v2235_v22 = vpack.c.bf16 %v2171_v51, %v2171_v51 }
 0x71b   : > { %2107 = vadd.xlane.f32.xlu0 %v2106_v39  ;;  %v2236_v18 = vpack.c.bf16 %v2186_v45, %v2186_v45 }
 0x71c   : > { %3910 = vmatmul.msk.bf16.vlgmr.msrb.gmra.mxu0 %vm345_vm1, %v2233_v38 }
 0x71e   : > { %v2388_v29 = vpop.permute.xlu2 %2387  ;;  %v2304_v19 = vpop.permute.xlu1 %2303 }
 0x71f   : > { %v2393_v20 = vsel %vm5910_vm11, %v2388_v29, 0  ;;  %v2309_v8 = vsel %vm5911_vm5, %v2304_v19, 0 }
 0x720   : > { %2318 = vmatpush.bf16.msrb.mxu2 %v2309_v8 }
 0x723   : > { %3912 = vmatmul.msk.bf16.vlgmr.msrb.gmra.mxu2 %vm345_vm1, %v2235_v22 }
 0x724   : > { %2402 = vmatpush.bf16.msra.mxu2 %v2393_v20 }
 0x726   : > { %v2325_v42 = vpop.permute.xlu1 %2324  ;;  %v2367_v27 = vpop.permute.xlu2 %2366 }
 0x727   : > { %v2330_v31 = vsel %vm5912_vm6, %v2325_v42, 0 }
 0x728   : > { %2339 = vmatpush.bf16.msrb.mxu3 %v2330_v31 }
 0x72b   : > { %3913 = vmatmul.msk.bf16.vlgmr.msrb.gmra.mxu3 %vm345_vm1, %v2236_v18 }
 0x72e   : > { %v2346_v5 = vpop.permute.xlu1 %2345 }
 0x72f   : > { %v2351_v40 = vsel %vm5913_vm7, %v2346_v5, 0  ;;  %2282 = vrot.lane.b32.xlu0 %v4916_v37, %s4198_s17 }
 0x730   : > { %2360 = vmatpush.bf16.msra.mxu0 %v2351_v40 }
 0x736   : > { %v2554_v49 = vpop.permute.xlu1 %2553 }
 0x737   : > { %v2559_v55 = vsel %vm345_vm1, %v2554_v49, 0  ;;  %2576 = vrot.lane.b32.xlu0 %v4753_v30, %s4199_s8 }
 0x738   : > { %2568 = vmatpush.bf16.xpose.msrb.mxu2 %v2559_v55 }
 0x73e   : > { %v5252_v39 = vpop.permute.xlu1 %2574 }
 0x73f   : > { %2507 = vrot.lane.b32.xlu0 %v4758_v13, %s4199_s8 }
 0x746   : > { %v2646_v31 = vpop.permute.xlu1 %2645 }
 0x747   : > { %2668 = vrot.lane.b32.xlu0 %v4779_v63, %s4199_s8  ;;  %v2651_v18 = vsel %vm345_vm1, %v2646_v31, 0 }
 0x74f   : > { %2643 = vrot.lane.b32.xlu0 %v4639_v58, %s4199_s8 }
 0x757   : > { %2622 = vrot.lane.b32.xlu0 %v4786_v1, %s4199_s8 }
 0x776   : > { %v2105_v26 = vpop.xlane.xlu0 %2104 }
 0x777   : > { %4098 = vrcp.f32 %v2105_v26  ;;  %v2198_v6 = vand.u32 2147483648, %v2105_v26  ;;  %v2196_v13 = vand.u32 2147483647, %v2105_v26  ;;  %vm2192_vm10 = vweird.f32 %v2105_v26 }
 0x779   : > { %v2199_v3 = vor.u32 1.1754944e-38, %v2198_v6  ;;  %vm2197_vm11 = vcmp.eq.f32.partialorder %v2196_v13, 8.507059e+37 }
 0x77d   : > { %v4099_v25 = vpop.eup %4098 }
 0x77e   : > { %v2188_v53 = vmul.f32 %v4099_v25, %v2105_v26  ;;  %v2111_v47 = vpop.xlane.xlu0 %2110  ;;  %vm2193_vm9 = vweird.f32 %v4099_v25 }
 0x77f   : > { %4100 = vrcp.f32 %v2111_v47  ;;  %vm2194_vm8 = vmor %vm2192_vm10, %vm2193_vm9  ;;  %v2228_v17 = vand.u32 2147483648, %v2111_v47  ;;  %v2226_v51 = vand.u32 2147483647, %v2111_v47  ;;  %vm2222_vm14 = vweird.f32 %v2111_v47 }
 0x780   : > { %v2189_v30 = vsub.f32 1.0, %v2188_v53 }
 0x781   : > { %v2229_v8 = vor.u32 1.1754944e-38, %v2228_v17  ;;  %vm2227_vm7 = vcmp.eq.f32.partialorder %v2226_v51, 8.507059e+37 }
 0x782   : > { %v2190_v24 = vmul.f32 %v4099_v25, %v2189_v30  ;;  %v2552_v30 = vpop.permute.xlu2 %2551 }
 0x784   : > { %v2191_v4 = vadd.f32 %v4099_v25, %v2190_v24 }
 0x785   : > { %v4101_v63 = vpop.eup %4100 }
 0x786   : > { %v2195_v58 = vsel %vm2194_vm8, %v4099_v25, %v2191_v4  ;;  %v2218_v10 = vmul.f32 %v4101_v63, %v2111_v47  ;;  %v2096_v1 = vpop.xlane.xlu0 %2095  ;;  %vm2223_vm5 = vweird.f32 %v4101_v63 }
 0x787   : > { %v2200_v38 = vsel %vm2197_vm11, %v2199_v3, %v2195_v58  ;;  %4102 = vrcp.f32 %v2096_v1  ;;  %vm2224_vm6 = vmor %vm2222_vm14, %vm2223_vm5  ;;  %v2153_v25 = vand.u32 2147483648, %v2096_v1  ;;  %vm2147_vm10 = vweird.f32 %v2096_v1 }
 0x788   : > { %v2201_v57 = vmul.f32 %v5176_v43, %v2200_v38  ;;  %v2219_v62 = vsub.f32 1.0, %v2218_v10  ;;  %v2151_v53 = vand.u32 2147483647, %v2096_v1  ;;  %vm5914_vm5 = vcmask 1043456  }
 0x789   : > { %v2154_v4 = vor.u32 1.1754944e-38, %v2153_v25  ;;  %vm5915_vm14 = vcmask 1041409  }
 0x78a   : > { %v2220_v46 = vmul.f32 %v4101_v63, %v2219_v62  ;;  %v2237_v29 = vpack.c.bf16 %v2201_v57, %v2201_v57  ;;  %vm2152_vm11 = vcmp.eq.f32.partialorder %v2151_v53, 8.507059e+37 }
 0x78c   : > { %v2221_v19 = vadd.f32 %v4101_v63, %v2220_v46  ;;  %3914 = vmatmul.msk.bf16.vlgmr.msra.gmra.mxu0 %vm345_vm1, %v2237_v29 }
 0x78d   : > { %v4103_v20 = vpop.eup %4102 }
 0x78e   : > { %v2225_v61 = vsel %vm2224_vm6, %v4101_v63, %v2221_v19  ;;  %v2143_v50 = vmul.f32 %v4103_v20, %v2096_v1  ;;  %v2108_v22 = vpop.xlane.xlu0 %2107  ;;  %vm2148_vm9 = vweird.f32 %v4103_v20  ;;  %v2372_v1 = vsel %vm5914_vm5, %v2367_v27, 0  ;;  %vm5916_vm6 = vmmov %vm5914_vm5 }
 0x78f   : > { %v2230_v45 = vsel %vm2227_vm7, %v2229_v8, %v2225_v61  ;;  %4104 = vrcp.f32 %v2108_v22  ;;  %vm2149_vm8 = vmor %vm2147_vm10, %vm2148_vm9  ;;  %v2531_v61 = vpop.permute.xlu2 %2530  ;;  %vm2207_vm9 = vweird.f32 %v2108_v22  ;;  %v2211_v31 = vand.u32 2147483647, %v2108_v22 }
 0x790   : > { %v2231_v43 = vmul.f32 %v5185_v12, %v2230_v45  ;;  %v2144_v42 = vsub.f32 1.0, %v2143_v50  ;;  %v2536_v50 = vsel %vm345_vm1, %v2531_v61, 0 }
 0x792   : > { %v2145_v5 = vmul.f32 %v4103_v20, %v2144_v42  ;;  %v2239_v40 = vpack.c.bf16 %v2231_v43, %v2231_v43  ;;  %v2529_v43 = vpop.permute.xlu1 %2528  ;;  %v2213_v42 = vand.u32 2147483648, %v2108_v22 }
 0x794   : > { %3916 = vmatmul.msk.bf16.vlgmr.msra.gmra.mxu2 %vm345_vm1, %v2239_v40  ;;  %v2146_v49 = vadd.f32 %v4103_v20, %v2145_v5  ;;  %v2214_v40 = vor.u32 1.1754944e-38, %v2213_v42 }
 0x795   : > { %2660 = vmatpush.bf16.xpose.msra.mxu2 %v2651_v18  ;;  %v4105_v26 = vpop.eup %4104 }
 0x796   : > { %v2257_v55 = vpop.f32.mrf.mxu3  ;;  %v2203_v6 = vmul.f32 %v4105_v26, %v2108_v22  ;;  %v2150_v13 = vsel %vm2149_vm8, %v4103_v20, %v2146_v49  ;;  %vm2208_vm7 = vweird.f32 %v4105_v26  ;;  %vm2212_vm8 = vcmp.eq.f32.partialorder %v2211_v31, 8.507059e+37 }
 0x797   : > { %v2408_v47 = vpack.c.bf16 %v2257_v55, %v2257_v55  ;;  %v2155_v58 = vsel %vm2152_vm11, %v2154_v4, %v2150_v13  ;;  %vm2209_vm10 = vmor %vm2207_vm9, %vm2208_vm7  ;;  %v2506_v22 = vpop.permute.xlu2 %2505  ;;  %v5917_v4 = vld [vmem:[#allocation22_spill] sm:$0xff]  ;;  %vm5922_vm7 = vcmp.gt.f32.partialorder %v4649_v7, 0.5  ;;  %vm5923_vm9 = vcmask 1045509  }
 0x798   : > { %v2204_v10 = vsub.f32 1.0, %v2203_v6  ;;  %v2156_v46 = vmul.f32 %v5196_v11, %v2155_v58  ;;  %vm5918_vm11 = vmmov %vm5914_vm5  ;;  %vm5919_vm5 = vcmask 1042434  }
 0x799   : > { %v2278_v12 = vpop.f32.mrf.mxu0  ;;  %v2424_v63 = vunpack.c.l.b16 %v2408_v47 }
 0x79a   : > { %v2409_v24 = vpack.c.bf16 %v2278_v12, %v2278_v12  ;;  %v2205_v19 = vmul.f32 %v4105_v26, %v2204_v10  ;;  %v2234_v45 = vpack.c.bf16 %v2156_v46, %v2156_v46  ;;  %v2600_v53 = vpop.permute.xlu1 %2599 }
 0x79b   : > { %v3917_v62 = vunpack.i.l.s16 %v2424_v63  ;;  %v2467_v63 = vsel %vm5918_vm11, %v5917_v4, 0  ;;  %vm5926_vm11 = vcmask 1047559  }
 0x79c   : > { %v2425_v3 = vunpack.c.l.b16 %v2409_v24  ;;  %v2206_v11 = vadd.f32 %v4105_v26, %v2205_v19  ;;  %2476 = vmatpush.bf16.msra.mxu3 %v2467_v63 }
 0x79e   : > { %v3918_v38 = vunpack.i.l.s16 %v2425_v3  ;;  %v2259_v57 = vpop.f32.mrf.mxu3  ;;  %v2210_v5 = vsel %vm2209_vm10, %v4105_v26, %v2206_v11  ;;  %vm5924_vm10 = vcmask 57344  }
 0x79f   : > { %v2215_v49 = vsel %vm2212_vm8, %v2214_v40, %v2210_v5  ;;  %v5276_v3 = vpop.permute.xlu2 %2666  ;;  %vm5925_vm8 = vcmask 1046534  }
 0x7a0   : > { %v2448_v17 = vrot.slane %v3918_v38, 7  ;;  %v2216_v47 = vmul.f32 %v5214_v56, %v2215_v49 }
 0x7a1   : > { %v2280_v51 = vpop.f32.mrf.mxu0  ;;  %v2283_v29 = vpop.permute.xlu0 %2282 }
 0x7a2   : > { %v5262_v8 = vsel %vm5915_vm14, %v2448_v17, %v3917_v62  ;;  %v2288_v20 = vsel %vm5916_vm6, %v2283_v29, 0  ;;  %v2238_v24 = vpack.c.bf16 %v2216_v47, %v2216_v47  ;;  %v2621_v62 = vpop.permute.xlu1 %2620  ;;  %vm5920_vm14 = vcmask 1043459  }
 0x7a3   : > { %2297 = vmatpush.bf16.msrb.mxu1 %v2288_v20  ;;  %vm5921_vm6 = vcmask 1044484  }
 0x7a4   : > { %3928 = vmatmul.msk.bf16.vlgmr.msrb.gmra.mxu2 %vm345_vm1, %v2552_v30  ;;  %v2605_v30 = vsel %vm345_vm1, %v2600_v53, 0 }
 0x7a6   : > { %3911 = vmatmul.msk.bf16.vlgmr.msrb.gmra.mxu1 %vm345_vm1, %v2234_v45  ;;  %v2320_v27 = vpop.f32.mrf.mxu2 }
 0x7a7   : > { %2381 = vmatpush.bf16.msra.mxu1 %v2372_v1  ;;  %v2598_v10 = vpop.permute.xlu2 %2597  ;;  %v2411_v51 = vpack.c.bf16 %v2320_v27, %v2320_v27 }
 0x7a9   : > { %v2577_v18 = vpop.permute.xlu0 %2576  ;;  %v2427_v20 = vunpack.c.l.b16 %v2411_v51 }
 0x7aa   : > { %v2582_v13 = vsel %vm345_vm1, %v2577_v18, 0 }
 0x7ab   : > { %2545 = vmatpush.bf16.xpose.msrb.mxu1 %v2536_v50  ;;  %2591 = vmatpush.bf16.xpose.msrb.mxu3 %v2582_v13  ;;  %v3920_v11 = vunpack.i.l.s16 %v2427_v20 }
 0x7ad   : > { %v2452_v40 = vrot.slane %v3920_v11, 5 }
 0x7ae   : > { %v2322_v55 = vpop.f32.mrf.mxu2  ;;  %v2341_v25 = vpop.f32.mrf.mxu3 }
 0x7af   : > { %v2412_v19 = vpack.c.bf16 %v2341_v25, %v2341_v25 }
 0x7b1   : > { %v2508_v12 = vpop.permute.xlu0 %2507  ;;  %v2428_v50 = vunpack.c.l.b16 %v2412_v19 }
 0x7b2   : > { %v2513_v6 = vsel %vm345_vm1, %v2508_v12, 0 }
 0x7b3   : > { %2522 = vmatpush.bf16.xpose.msrb.mxu0 %v2513_v6  ;;  %v3921_v31 = vunpack.i.l.s16 %v2428_v50 }
 0x7b5   : > { %v2454_v55 = vrot.slane %v3921_v31, 4 }
 0x7b6   : > { %v2343_v26 = vpop.f32.mrf.mxu3  ;;  %3915 = vmatmul.msk.bf16.vlgmr.msra.gmra.mxu1 %vm345_vm1, %v2238_v24 }
 0x7b9   : > { %v2669_v56 = vpop.permute.xlu0 %2668 }
 0x7ba   : > { %3926 = vmatmul.msk.bf16.vlgmr.msrb.gmra.mxu0 %vm345_vm1, %v2506_v22  ;;  %v2674_v50 = vsel %vm345_vm1, %v2669_v56, 0 }
 0x7bb   : > { %2614 = vmatpush.bf16.xpose.msra.mxu0 %v2605_v30 }
 0x7c1   : > { %v2644_v58 = vpop.permute.xlu0 %2643 }
 0x7c2   : > { %3932 = vmatmul.msk.bf16.vlgmr.msra.gmra.mxu2 %vm345_vm1, %v2644_v58 }
 0x7c6   : > { %3927 = vmatmul.msk.bf16.vlgmr.msrb.gmra.mxu1 %vm345_vm1, %v2529_v43 }
 0x7c9   : > { %v2623_v38 = vpop.permute.xlu0 %2622 }
 0x7ca   : > { %3930 = vmatmul.msk.bf16.vlgmr.msra.gmra.mxu0 %vm345_vm1, %v2598_v10  ;;  %v2628_v57 = vsel %vm345_vm1, %v2623_v38, 0 }
 0x7cb   : > { %2637 = vmatpush.bf16.xpose.msra.mxu1 %v2628_v57 }
 0x7d6   : > { %3931 = vmatmul.msk.bf16.vlgmr.msra.gmra.mxu1 %vm345_vm1, %v2621_v62 }
 0x809   : > { %v2362_v17 = vpop.f32.mrf.mxu0 }
 0x80a   : > { %v2413_v47 = vpack.c.bf16 %v2362_v17, %v2362_v17 }
 0x80c   : > { %v2429_v6 = vunpack.c.l.b16 %v2413_v47 }
 0x80e   : > { %v3922_v26 = vunpack.i.l.s16 %v2429_v6 }
 0x810   : > { %v2456_v57 = vrot.slane %v3922_v26, 3 }
 0x811   : > { %v2364_v46 = vpop.f32.mrf.mxu0 }
 0x817   : > { %v2404_v1 = vpop.f32.mrf.mxu2 }
 0x818   : > { %v2415_v30 = vpack.c.bf16 %v2404_v1, %v2404_v1 }
 0x81a   : > { %v2431_v24 = vunpack.c.l.b16 %v2415_v30 }
 0x81c   : > { %v3924_v63 = vunpack.i.l.s16 %v2431_v24 }
 0x81e   : > { %v2460_v17 = vrot.slane %v3924_v63, 1 }
 0x81f   : > { %v2406_v29 = vpop.f32.mrf.mxu2 }
 0x823   : > { %v2299_v61 = vpop.f32.mrf.mxu1 }
 0x824   : > { %v2410_v45 = vpack.c.bf16 %v2299_v61, %v2299_v61 }
 0x826   : > { %v2426_v43 = vunpack.c.l.b16 %v2410_v45 }
 0x827   : > { %v2570_v42 = vpop.f32.mrf.mxu2 }
 0x828   : > { %v3919_v18 = vunpack.i.l.s16 %v2426_v43 }
 0x82a   : > { %v2450_v5 = vrot.slane %v3919_v18, 6 }
 0x82b   : > { %v2301_v49 = vpop.f32.mrf.mxu1 }
 0x82c   : > { %v2451_v53 = vsel %vm5919_vm5, %v2450_v5, %v5262_v8  ;;  %vm5927_vm5 = vmmov %vm5924_vm10 }
 0x82d   : > { %v2453_v27 = vsel %vm5920_vm14, %v2452_v40, %v2451_v53  ;;  %vm5928_vm14 = vmmov %vm5927_vm5  ;;  %v2691_v53 = vmul.f32 0.35355338, %v2570_v42 }
 0x82e   : > { %v2455_v25 = vsel %vm5921_vm6, %v2454_v55, %v2453_v27 }
 0x82f   : > { %v2572_v12 = vpop.f32.mrf.mxu2  ;;  %v2457_v46 = vsel %vm5923_vm9, %v2456_v57, %v2455_v25  ;;  %v5311_v32 = vsel %vm4674_vm3, -inf, %v2691_v53  ;;  %vm5931_vm3 = vmmov %vm5927_vm5 }
 0x833   : > { %v2383_v22 = vpop.f32.mrf.mxu1 }
 0x834   : > { %v2414_v13 = vpack.c.bf16 %v2383_v22, %v2383_v22 }
 0x836   : > { %v2430_v4 = vunpack.c.l.b16 %v2414_v13 }
 0x837   : > { %v2524_v58 = vpop.f32.mrf.mxu0 }
 0x838   : > { %v3923_v10 = vunpack.i.l.s16 %v2430_v4  ;;  %v2689_v38 = vmul.f32 0.35355338, %v2524_v58  ;;  %v1826_v4 = vrot.slane %v1822_v34, 1  ;;  %v1828_v58 = vrot.slane %v1822_v34, 3 }
 0x83a   : > { %v2458_v62 = vrot.slane %v3923_v10, 2  ;;  %v5289_v8 = vsel %vm5922_vm7, -inf, %v2689_v38  ;;  %v1829_v10 = vrot.slane %v1822_v34, 4  ;;  %v1830_v38 = vrot.slane %v1822_v34, 5 }
 0x83b   : > { %v2385_v1 = vpop.f32.mrf.mxu1  ;;  %v2705_v51 = vsel %vm5924_vm10, %v5289_v8, -inf }
 0x83c   : > { %v2459_v29 = vsel %vm5925_vm8, %v2458_v62, %v2457_v46  ;;  %2706 = vmax.xlane.f32.xlu1 %v2705_v51  ;;  %v1831_v46 = vrot.slane %v1822_v34, 6 }
 0x83d   : > { %v2461_v19 = vsel %vm5926_vm11, %v2460_v17, %v2459_v29 }
 0x83e   : > { %v2462_v20 = vpack.c.b16 %v2461_v19, %v2461_v19 }
 0x83f   : > { %v2526_v61 = vpop.f32.mrf.mxu0 }
 0x840   : > { %3925 = vmatmul.msk.bf16.vlgmr.msra.gmra.mxu3 %vm345_vm1, %v2462_v20 }
 0x841   : > { %2683 = vmatpush.bf16.xpose.msra.mxu3 %v2674_v50 }
 0x843   : > { %v2547_v45 = vpop.f32.mrf.mxu1 }
 0x844   : > { %v2690_v30 = vmul.f32 0.35355338, %v2547_v45 }
 0x845   : > { %v2662_v43 = vpop.f32.mrf.mxu2 }
 0x846   : > { %v2695_v11 = vmul.f32 0.35355338, %v2662_v43  ;;  %v5323_v41 = vsel %vm4664_vm2, -inf, %v2690_v30 }
 0x847   : > { %v2616_v31 = vpop.f32.mrf.mxu0  ;;  %v2708_v24 = vsel %vm5931_vm3, %v5323_v41, -inf }
 0x848   : > { %v2693_v18 = vmul.f32 0.35355338, %v2616_v31  ;;  %v2703_v5 = vsel %vm4705_vm13, -inf, %v2695_v11  ;;  %vm5929_vm13 = vmmov %vm5927_vm5 }
 0x849   : > { %v2723_v40 = vsel %vm5927_vm5, %v2703_v5, -inf  ;;  %v2711_v0 = vsel %vm5929_vm13, %v5311_v32, -inf }
 0x84a   : > { %2724 = vmax.xlane.f32.xlu2 %v2723_v40  ;;  %v5303_v49 = vsel %vm4685_vm12, -inf, %v2693_v18  ;;  %vm5930_vm12 = vmmov %vm5927_vm5 }
 0x84b   : > { %v2549_v55 = vpop.f32.mrf.mxu1  ;;  %v2717_v56 = vsel %vm5928_vm14, %v5303_v49, -inf  ;;  %vm5942_vm14 = vcmask 1043456  }
 0x84c   : > { %2718 = vmax.xlane.f32.xlu0 %v2717_v56 }
 0x84d   : > { %v2664_v47 = vpop.f32.mrf.mxu2 }
 0x84f   : > { %v2618_v27 = vpop.f32.mrf.mxu0 }
 0x850   : > { %3929 = vmatmul.msk.bf16.vlgmr.msrb.gmra.mxu3 %vm345_vm1, %v5252_v39 }
 0x853   : > { %v2639_v25 = vpop.f32.mrf.mxu1 }
 0x854   : > { %v2694_v12 = vmul.f32 0.35355338, %v2639_v25  ;;  %2712 = vmax.xlane.f32.xlu0 %v2711_v0 }
 0x856   : > { %v5317_v42 = vsel %vm4692_vm0, -inf, %v2694_v12  ;;  %vm5932_vm0 = vmmov %vm5931_vm3 }
 0x857   : > { %v2720_v6 = vsel %vm5930_vm12, %v5317_v42, -inf  ;;  %vm5933_vm2 = vmmov %vm5932_vm0 }
 0x858   : > { %2721 = vmax.xlane.f32.xlu2 %v2720_v6  ;;  %vm5934_vm6 = vmmov %vm5932_vm0 }
 0x859   : > { %vm5936_vm7 = vmmov %vm5932_vm0 }
 0x85a   : > { %vm5937_vm9 = vmmov %vm5932_vm0 }
 0x85b   : > { %v2641_v39 = vpop.f32.mrf.mxu1  ;;  %vm5938_vm10 = vmmov %vm5932_vm0 }
 0x85c   : > { %2709 = vmax.xlane.f32.xlu0 %v2708_v24  ;;  %vm5940_vm8 = vmmov %vm5932_vm0 }
 0x85d   : > { %vm5941_vm11 = vmmov %vm5932_vm0 }
 0x860   : > { %3933 = vmatmul.msk.bf16.vlgmr.msra.gmra.mxu3 %vm345_vm1, %v5276_v3 }
 0x8bd   : > { %v2725_v22 = vpop.xlane.xlu2 %2724 }
 0x8be   : > { %v2735_v13 = vsub.f32 %v2703_v5, %v2725_v22  ;;  %v2707_v5 = vpop.xlane.xlu1 %2706 }
 0x8bf   : > { %v2729_v55 = vsub.f32 %v5289_v8, %v2707_v5  ;;  %v2719_v56 = vpop.xlane.xlu0 %2718 }
 0x8c0   : > { %v2749_v26 = vmul.f32 1.442695, %v2735_v13  ;;  %v2733_v25 = vsub.f32 %v5303_v49, %v2719_v56 }
 0x8c1   : > { %v2737_v53 = vmul.f32 1.442695, %v2729_v55 }
 0x8c2   : > { %4106 = vpow2.f32 %v2749_v26  ;;  %v2745_v6 = vmul.f32 1.442695, %v2733_v25 }
 0x8c3   : > { %v2478_v63 = vpop.f32.mrf.mxu3  ;;  %4108 = vpow2.f32 %v2737_v53 }
 0x8c4   : > { %v5331_v57 = vadd.f32 %v2478_v63, %v1822_v34  ;;  %v2483_v62 = vrot.slane %v2478_v63, 1  ;;  %v2484_v17 = vrot.slane %v2478_v63, 2  ;;  %v2485_v1 = vrot.slane %v2478_v63, 3 }
 0x8c5   : > { %v2486_v3 = vrot.slane %v2478_v63, 4  ;;  %v2487_v51 = vrot.slane %v2478_v63, 5  ;;  %v2488_v29 = vrot.slane %v2478_v63, 6  ;;  %v2489_v20 = vrot.slane %v2478_v63, 7 }
 0x8c6   : > { %v5333_v19 = vadd.f32 %v2483_v62, %v1826_v4  ;;  %v5335_v16 = vadd.f32 %v2484_v17, %v1827_v35  ;;  %v5337_v61 = vadd.f32 %v2485_v1, %v1828_v58  ;;  %4110 = vpow2.f32 %v2745_v6 }
 0x8c7   : > { %v5339_v50 = vadd.f32 %v2486_v3, %v1829_v10  ;;  %v5341_v45 = vadd.f32 %v2487_v51, %v1830_v38  ;;  %v5343_v43 = vadd.f32 %v2488_v29, %v1831_v46  ;;  %v5347_v31 = vadd.f32 %v2489_v20, %v1832_v28  ;;  %v2713_v12 = vpop.xlane.xlu0 %2712 }
 0x8c8   : > { %v5345_v11 = vpop.eup %4106  ;;  %v2731_v8 = vsub.f32 %v5311_v32, %v2713_v12 }
 0x8c9   : > { %v2771_v18 = vsel %vm5932_vm0, %v5345_v11, 0.0  ;;  %v5356_v22 = vpop.eup %4108 }
 0x8ca   : > { %2772 = vadd.xlane.f32.xlu0 %v2771_v18  ;;  %v2753_v59 = vsel %vm5934_vm6, %v5356_v22, 0.0  ;;  %v2741_v49 = vmul.f32 1.442695, %v2731_v8 }
 0x8cb   : > { %v2480_v40 = vpop.f32.mrf.mxu3  ;;  %v2722_v39 = vpop.xlane.xlu2 %2721 }
 0x8cc   : > { %v2734_v34 = vsub.f32 %v5317_v42, %v2722_v39  ;;  %v5364_v63 = vpop.eup %4110  ;;  %4112 = vpow2.f32 %v2741_v49 }
 0x8cd   : > { %v2765_v58 = vsel %vm5936_vm7, %v5364_v63, 0.0 }
 0x8ce   : > { %v2747_v13 = vmul.f32 1.442695, %v2734_v34 }
 0x8cf   : > { %v2710_v26 = vpop.xlane.xlu0 %2709 }
 0x8d0   : > { %4114 = vpow2.f32 %v2747_v13  ;;  %v2730_v32 = vsub.f32 %v5323_v41, %v2710_v26 }
 0x8d2   : > { %v2739_v10 = vmul.f32 1.442695, %v2730_v32  ;;  %v4113_v38 = vpop.eup %4112 }
 0x8d3   : > { %v2593_v47 = vpop.f32.mrf.mxu3  ;;  %v2759_v41 = vsel %vm5938_vm10, %v4113_v38, 0.0 }
 0x8d4   : > { %v2692_v27 = vmul.f32 0.35355338, %v2593_v47  ;;  %4116 = vpow2.f32 %v2739_v10 }
 0x8d6   : > { %v2700_v0 = vsel %vm4660_vm15, -inf, %v2692_v27  ;;  %vm5935_vm15 = vmmov %vm5932_vm0  ;;  %v5372_v17 = vpop.eup %4114 }
 0x8d7   : > { %v2714_v30 = vsel %vm5933_vm2, %v2700_v0, -inf  ;;  %v2768_v46 = vsel %vm5937_vm9, %v5372_v17, 0.0 }
 0x8d8   : > { %2715 = vmax.xlane.f32.xlu2 %v2714_v30 }
 0x8da   : > { %v5377_v14 = vpop.eup %4116 }
 0x8db   : > { %v2595_v24 = vpop.f32.mrf.mxu3 }
 0x8de   : > { %2968 = vrot.lane.b32.xlu0 %v4931_v33, %s4199_s8 }
 0x8e0   : > { %2754 = vadd.xlane.f32.xlu2 %v2753_v59 }
 0x8e3   : > { %v2685_v4 = vpop.f32.mrf.mxu3 }
 0x8e4   : > { %v2696_v35 = vmul.f32 0.35355338, %v2685_v4 }
 0x8e6   : > { %v2704_v42 = vsel %vm4681_vm4, -inf, %v2696_v35  ;;  %vm5939_vm4 = vmmov %vm5932_vm0 }
 0x8e7   : > { %v2726_v33 = vsel %vm5935_vm15, %v2704_v42, -inf  ;;  %v2756_v1 = vsel %vm5939_vm4, %v5377_v14, 0.0  ;;  %vm5943_vm0 = vmmov %vm5942_vm14 }
 0x8e8   : > { %2727 = vmax.xlane.f32.xlu1 %v2726_v33  ;;  %2766 = vadd.xlane.f32.xlu2 %v2765_v58  ;;  %vm5944_vm7 = vmmov %vm5943_vm0 }
 0x8eb   : > { %v2687_v62 = vpop.f32.mrf.mxu3 }
 0x8f0   : > { %2769 = vadd.xlane.f32.xlu2 %v2768_v46  ;;  %2760 = vadd.xlane.f32.xlu1 %v2759_v41 }
 0x8f8   : > { %2757 = vadd.xlane.f32.xlu1 %v2756_v1 }
 0x911   : > { %2947 = vrot.lane.b32.xlu1 %v4916_v37, %s4199_s8 }
 0x919   : > { %3031 = vrot.lane.b32.xlu1 %v4940_v15, %s4199_s8 }
 0x921   : > { %2989 = vrot.lane.b32.xlu1 %v5019_v21, %s4199_s8 }
 0x93d   : > { %v2773_v53 = vpop.xlane.xlu0 %2772 }
 0x93e   : > { %vm2872_vm6 = vweird.f32 %v2773_v53 }
 0x94b   : > { %v2716_v3 = vpop.xlane.xlu2 %2715 }
 0x94c   : > { %v2732_v51 = vsub.f32 %v2700_v0, %v2716_v3 }
 0x94e   : > { %v2743_v29 = vmul.f32 1.442695, %v2732_v51 }
 0x950   : > { %4118 = vpow2.f32 %v2743_v29  ;;  %v2969_v0 = vpop.permute.xlu0 %2968 }
 0x951   : > { %v2974_v6 = vsel %vm5942_vm14, %v2969_v0, 0 }
 0x952   : > { %2983 = vmatpush.bf16.msrb.mxu3 %v2974_v6 }
 0x953   : > { %v2755_v41 = vpop.xlane.xlu2 %2754 }
 0x956   : > { %v5387_v28 = vpop.eup %4118 }
 0x957   : > { %v2762_v20 = vsel %vm5940_vm8, %v5387_v28, 0.0 }
 0x958   : > { %2763 = vadd.xlane.f32.xlu0 %v2762_v20 }
 0x95b   : > { %v2728_v18 = vpop.xlane.xlu1 %2727  ;;  %v5412_v1 = vpop.xlane.xlu2 %2766 }
 0x95c   : > { %v2736_v5 = vsub.f32 %v2704_v42, %v2728_v18  ;;  %v2878_v42 = vand.u32 2147483648, %v2773_v53 }
 0x95e   : > { %v2751_v40 = vmul.f32 1.442695, %v2736_v5 }
 0x960   : > { %4120 = vpow2.f32 %v2751_v40 }
 0x963   : > { %v2761_v37 = vpop.xlane.xlu1 %2760  ;;  %v5415_v20 = vpop.xlane.xlu2 %2769 }
 0x964   : > { %4122 = vrcp.f32 %v2761_v37  ;;  %v2818_v12 = vand.u32 2147483648, %v2761_v37  ;;  %vm2812_vm13 = vweird.f32 %v2761_v37  ;;  %v2816_v39 = vand.u32 2147483647, %v2761_v37 }
 0x965   : > { %4124 = vrcp.f32 %v2773_v53 }
 0x966   : > { %v5391_v15 = vpop.eup %4120  ;;  %v2819_v34 = vor.u32 1.1754944e-38, %v2818_v12  ;;  %vm2817_vm3 = vcmp.eq.f32.partialorder %v2816_v39, 8.507059e+37 }
 0x967   : > { %v2774_v21 = vsel %vm5941_vm11, %v5391_v15, 0.0 }
 0x968   : > { %2775 = vadd.xlane.f32.xlu2 %v2774_v21 }
 0x96a   : > { %v4123_v55 = vpop.eup %4122 }
 0x96b   : > { %v2808_v56 = vmul.f32 %v4123_v55, %v2761_v37  ;;  %vm2813_vm5 = vweird.f32 %v4123_v55  ;;  %v4125_v30 = vpop.eup %4124  ;;  %v5400_v24 = vpop.xlane.xlu1 %2757 }
 0x96c   : > { %2926 = vrot.lane.b32.xlu0 %v4949_v9, %s4199_s8  ;;  %vm2814_vm12 = vmor %vm2812_vm13, %vm2813_vm5  ;;  %v2868_v9 = vmul.f32 %v4125_v30, %v2773_v53  ;;  %vm2873_vm2 = vweird.f32 %v4125_v30  ;;  %4126 = vrcp.f32 %v5400_v24  ;;  %vm2797_vm4 = vweird.f32 %v5400_v24 }
 0x96d   : > { %v2809_v47 = vsub.f32 1.0, %v2808_v56  ;;  %vm2874_vm15 = vmor %vm2872_vm6, %vm2873_vm2  ;;  %4128 = vrcp.f32 %v2755_v41  ;;  %vm2782_vm5 = vweird.f32 %v2755_v41 }
 0x96e   : > { %v2869_v59 = vsub.f32 1.0, %v2868_v9 }
 0x96f   : > { %v2810_v27 = vmul.f32 %v4123_v55, %v2809_v47 }
 0x970   : > { %v2870_v26 = vmul.f32 %v4125_v30, %v2869_v59  ;;  %v2788_v59 = vand.u32 2147483648, %v2755_v41 }
 0x971   : > { %v2811_v25 = vadd.f32 %v4123_v55, %v2810_v27  ;;  %v2803_v27 = vand.u32 2147483648, %v5400_v24 }
 0x972   : > { %v2871_v32 = vadd.f32 %v4125_v30, %v2870_v26  ;;  %v4127_v3 = vpop.eup %4126 }
 0x973   : > { %v2815_v8 = vsel %vm2814_vm12, %v4123_v55, %v2811_v25  ;;  %v2793_v51 = vmul.f32 %v4127_v3, %v5400_v24  ;;  %v4129_v29 = vpop.eup %4128  ;;  %vm2798_vm10 = vweird.f32 %v4127_v3  ;;  %v2801_v25 = vand.u32 2147483647, %v5400_v24 }
 0x974   : > { %3052 = vrot.lane.b32.xlu0 %v4970_v23, %s4199_s8  ;;  %v2820_v23 = vsel %vm2817_vm3, %v2819_v34, %v2815_v8  ;;  %v2875_v58 = vsel %vm2874_vm15, %v4125_v30, %v2871_v32  ;;  %v2778_v40 = vmul.f32 %v4129_v29, %v2755_v41  ;;  %vm5426_vm8 = vmor %vm2797_vm4, %vm2798_vm10  ;;  %vm2783_vm14 = vweird.f32 %v4129_v29 }
 0x975   : > { %v2821_v49 = vmul.f32 %v4113_v38, %v2820_v23  ;;  %v2794_v18 = vsub.f32 1.0, %v2793_v51  ;;  %v2804_v23 = vor.u32 1.1754944e-38, %v2803_v27  ;;  %vm2802_vm13 = vcmp.eq.f32.partialorder %v2801_v25, 8.507059e+37  ;;  %vm5947_vm15 = vmmov %vm5944_vm7 }
 0x976   : > { %v2779_v37 = vsub.f32 1.0, %v2778_v40  ;;  %vm2857_vm10 = vweird.f32 %v5415_v20  ;;  %v2861_v27 = vand.u32 2147483647, %v5415_v20 }
 0x977   : > { %v2899_v35 = vpack.c.bf16 %v2821_v49, %v2821_v49 }
 0x978   : > { %v2780_v47 = vmul.f32 %v4129_v29, %v2779_v37 }
 0x97a   : > { %v2781_v34 = vadd.f32 %v4129_v29, %v2780_v47 }
 0x97c   : > { %3010 = vrot.lane.b32.xlu0 %v4985_v60, %s4199_s8  ;;  %v2876_v60 = vand.u32 2147483647, %v2773_v53 }
 0x97e   : > { %vm2877_vm9 = vcmp.eq.f32.partialorder %v2876_v60, 8.507059e+37 }
 0x980   : > { %2905 = vrot.lane.b32.xlu2 %v4954_v2, %s4199_s8  ;;  %v2879_v2 = vor.u32 1.1754944e-38, %v2878_v42 }
 0x982   : > { %v2880_v38 = vsel %vm2877_vm9, %v2879_v2, %v2875_v58  ;;  %vm5948_vm9 = vmmov %vm5947_vm15 }
 0x983   : > { %v2948_v13 = vpop.permute.xlu1 %2947  ;;  %v2881_v62 = vmul.f32 %v5345_v11, %v2880_v38  ;;  %v2795_v11 = vmul.f32 %v4127_v3, %v2794_v18  ;;  %vm5949_vm4 = vmmov %vm5948_vm9 }
 0x984   : > { %v2953_v4 = vsel %vm5943_vm0, %v2948_v13, 0  ;;  %v2786_v13 = vand.u32 2147483647, %v2755_v41  ;;  %vm2784_vm0 = vmor %vm2782_vm5, %vm2783_vm14 }
 0x985   : > { %2962 = vmatpush.bf16.msrb.mxu2 %v2953_v4  ;;  %v2903_v46 = vpack.c.bf16 %v2881_v62, %v2881_v62  ;;  %v2796_v56 = vadd.f32 %v4127_v3, %v2795_v11  ;;  %v2785_v60 = vsel %vm2784_vm0, %v4129_v29, %v2781_v34  ;;  %vm5952_vm5 = vmmov %vm5949_vm4 }
 0x986   : > { %vm2787_vm6 = vcmp.eq.f32.partialorder %v2786_v13, 8.507059e+37 }
 0x987   : > { %v2800_v39 = vsel %vm5426_vm8, %v4127_v3, %v2796_v56 }
 0x988   : > { %3936 = vmatmul.msk.bf16.vlgmr.msrb.gmra.mxu2 %vm345_vm1, %v2899_v35  ;;  %v2805_v4 = vsel %vm2802_vm13, %v2804_v23, %v2800_v39  ;;  %v2848_v23 = vand.u32 2147483648, %v5412_v1  ;;  %vm2862_vm13 = vcmp.eq.f32.partialorder %v2861_v27, 8.507059e+37 }
 0x989   : > { %v2806_v2 = vmul.f32 %v5377_v14, %v2805_v4 }
 0x98b   : > { %v3032_v33 = vpop.permute.xlu1 %3031 }
 0x98c   : > { %v3037_v10 = vsel %vm5944_vm7, %v3032_v33, 0 }
 0x98d   : > { %3046 = vmatpush.bf16.msra.mxu2 %v3037_v10  ;;  %v2789_v10 = vor.u32 1.1754944e-38, %v2788_v59  ;;  %v2846_v59 = vand.u32 2147483647, %v5412_v1 }
 0x98f   : > { %v2790_v41 = vsel %vm2787_vm6, %v2789_v10, %v2785_v60 }
 0x990   : > { %v2791_v11 = vmul.f32 %v5356_v22, %v2790_v41 }
 0x993   : > { %v2990_v29 = vpop.permute.xlu1 %2989 }
 0x998   : > { %3940 = vmatmul.msk.bf16.vlgmr.msra.gmra.mxu2 %vm345_vm1, %v2903_v46 }
 0x9cb   : > { %v2764_v5 = vpop.xlane.xlu0 %2763 }
 0x9cc   : > { %4130 = vrcp.f32 %v2764_v5  ;;  %v2833_v6 = vand.u32 2147483648, %v2764_v5  ;;  %v2831_v8 = vand.u32 2147483647, %v2764_v5  ;;  %vm2827_vm12 = vweird.f32 %v2764_v5 }
 0x9cd   : > { %4132 = vrcp.f32 %v5415_v20 }
 0x9ce   : > { %4134 = vrcp.f32 %v5412_v1  ;;  %v2834_v35 = vor.u32 1.1754944e-38, %v2833_v6  ;;  %vm2832_vm2 = vcmp.eq.f32.partialorder %v2831_v8, 8.507059e+37  ;;  %v2897_v6 = vpack.c.bf16 %v2791_v11, %v2791_v11 }
 0x9d2   : > { %v4131_v21 = vpop.eup %4130 }
 0x9d3   : > { %v5418_v55 = vpop.eup %4132  ;;  %v2823_v53 = vmul.f32 %v4131_v21, %v2764_v5  ;;  %vm2828_vm11 = vweird.f32 %v4131_v21  ;;  %v2898_v5 = vpack.c.bf16 %v2806_v2, %v2806_v2 }
 0x9d4   : > { %v2853_v30 = vmul.f32 %v5418_v55, %v5415_v20  ;;  %v5432_v24 = vpop.eup %4134  ;;  %vm2829_vm3 = vmor %vm2827_vm12, %vm2828_vm11  ;;  %vm2858_vm7 = vweird.f32 %v5418_v55 }
 0x9d5   : > { %v2824_v0 = vsub.f32 1.0, %v2823_v53  ;;  %v2838_v33 = vmul.f32 %v5432_v24, %v5412_v1  ;;  %v2863_v53 = vand.u32 2147483648, %v5415_v20  ;;  %vm5450_vm8 = vmor %vm2857_vm10, %vm2858_vm7  ;;  %vm2843_vm14 = vweird.f32 %v5432_v24 }
 0x9d6   : > { %v2854_v26 = vsub.f32 1.0, %v2853_v30  ;;  %vm5953_vm7 = vmmov %vm5949_vm4  ;;  %vm5958_vm10 = vcmask 261120  }
 0x9d7   : > { %v2825_v9 = vmul.f32 %v4131_v21, %v2824_v0  ;;  %v2839_v18 = vsub.f32 1.0, %v2838_v33  ;;  %v2864_v20 = vor.u32 1.1754944e-38, %v2863_v53 }
 0x9d8   : > { %v2855_v62 = vmul.f32 %v5418_v55, %v2854_v26 }
 0x9d9   : > { %v2826_v49 = vadd.f32 %v4131_v21, %v2825_v9  ;;  %v2840_v56 = vmul.f32 %v5432_v24, %v2839_v18 }
 0x9da   : > { %v2856_v14 = vadd.f32 %v5418_v55, %v2855_v62 }
 0x9db   : > { %v2830_v32 = vsel %vm2829_vm3, %v4131_v21, %v2826_v49  ;;  %v2776_v42 = vpop.xlane.xlu2 %2775  ;;  %v2995_v21 = vsel %vm5948_vm9, %v2990_v29, 0  ;;  %v2841_v34 = vadd.f32 %v5432_v24, %v2840_v56  ;;  %vm2842_vm3 = vweird.f32 %v5412_v1  ;;  %vm5955_vm9 = vmmov %vm5949_vm4  ;;  %v5956_v29 = vld [vmem:[#allocation39_spill] sm:$0xff] }
 0x9dc   : > { %v2835_v58 = vsel %vm2832_vm2, %v2834_v35, %v2830_v32  ;;  %4136 = vrcp.f32 %v2776_v42  ;;  %v2860_v0 = vsel %vm5450_vm8, %v5418_v55, %v2856_v14  ;;  %v2893_v30 = vand.u32 2147483648, %v2776_v42  ;;  %vm2844_vm2 = vmor %vm2842_vm3, %vm2843_vm14 }
 0x9dd   : > { %v2836_v38 = vmul.f32 %v5387_v28, %v2835_v58  ;;  %v2891_v9 = vand.u32 2147483647, %v2776_v42  ;;  %vm2887_vm12 = vweird.f32 %v2776_v42  ;;  %v2865_v49 = vsel %vm2862_vm13, %v2864_v20, %v2860_v0  ;;  %vm5968_vm3 = vmmov %vm5958_vm10 }
 0x9de   : > { %v2927_v46 = vpop.permute.xlu0 %2926  ;;  %v2894_v13 = vor.u32 1.1754944e-38, %v2893_v30  ;;  %v2845_v4 = vsel %vm2844_vm2, %v5432_v24, %v2841_v34  ;;  %v2849_v32 = vor.u32 1.1754944e-38, %v2848_v23  ;;  %v2866_v60 = vmul.f32 %v5372_v17, %v2865_v49 }
 0x9df   : > { %v2932_v3 = vsel %vm5947_vm15, %v2927_v46, 0  ;;  %v2900_v51 = vpack.c.bf16 %v2836_v38, %v2836_v38  ;;  %vm2892_vm6 = vcmp.eq.f32.partialorder %v2891_v9, 8.507059e+37  ;;  %vm2847_vm15 = vcmp.eq.f32.partialorder %v2846_v59, 8.507059e+37 }
 0x9e0   : > { %2941 = vmatpush.bf16.msrb.mxu1 %v2932_v3  ;;  %v2850_v58 = vsel %vm2847_vm15, %v2849_v32, %v2845_v4  ;;  %v2902_v2 = vpack.c.bf16 %v2866_v60, %v2866_v60  ;;  %v5954_v3 = vld [vmem:[#allocation23_spill] sm:$0xff]  ;;  %vm5960_vm8 = vcmask 1042434   ;;  %vm5963_vm14 = vcmask 1045509  }
 0x9e1   : > { %3937 = vmatmul.msk.bf16.vlgmr.msrb.gmra.mxu3 %vm345_vm1, %v2900_v51  ;;  %v2851_v38 = vmul.f32 %v5364_v63, %v2850_v58  ;;  %v3132_v51 = vsel %vm5955_vm9, %v5954_v3, 0  ;;  %vm5964_vm13 = vcmask 1046534  }
 0x9e2   : > { %v4137_v40 = vpop.eup %4136 }
 0x9e3   : > { %v2883_v28 = vmul.f32 %v4137_v40, %v2776_v42  ;;  %v2906_v37 = vpop.permute.xlu2 %2905  ;;  %3935 = vmatmul.msk.bf16.vlgmr.msrb.gmra.mxu1 %vm345_vm1, %v2898_v5  ;;  %vm2888_vm11 = vweird.f32 %v4137_v40  ;;  %v2901_v24 = vpack.c.bf16 %v2851_v38, %v2851_v38  ;;  %v5957_v5 = vpack.c.bf16 %v5956_v29, %v5956_v29 }
 0x9e4   : > { %v2911_v47 = vsel %vm5949_vm4, %v2906_v37, 0  ;;  %vm2889_vm0 = vmor %vm2887_vm12, %vm2888_vm11  ;;  %vm5959_vm4 = vcmask 1041409   ;;  %vm5961_vm11 = vcmask 1043459   ;;  %vm5965_vm12 = vcmask 1047559  }
 0x9e5   : > { %v2884_v25 = vsub.f32 1.0, %v2883_v28  ;;  %2920 = vmatpush.bf16.msrb.mxu0 %v2911_v47  ;;  %v3182_v63 = vsel %vm5958_vm10, %v5957_v5, 0 }
 0x9e6   : > { %v3053_v12 = vpop.permute.xlu0 %3052 }
 0x9e7   : > { %v2885_v39 = vmul.f32 %v4137_v40, %v2884_v25  ;;  %v3058_v8 = vsel %vm5952_vm5, %v3053_v12, 0  ;;  %vm5962_vm5 = vcmask 1044484  }
 0x9e8   : > { %3934 = vmatmul.msk.bf16.vlgmr.msrb.gmra.mxu0 %vm345_vm1, %v2897_v6  ;;  %3067 = vmatpush.bf16.msra.mxu3 %v3058_v8 }
 0x9e9   : > { %3004 = vmatpush.bf16.msra.mxu0 %v2995_v21  ;;  %v2886_v55 = vadd.f32 %v4137_v40, %v2885_v39 }
 0x9eb   : > { %v2890_v26 = vsel %vm2889_vm0, %v4137_v40, %v2886_v55  ;;  %vm5971_vm0 = vmmov %vm5968_vm3 }
 0x9ec   : > { %v2895_v35 = vsel %vm2892_vm6, %v2894_v13, %v2890_v26  ;;  %vm5974_vm2 = vmmov %vm5971_vm0 }
 0x9ed   : > { %v2896_v33 = vmul.f32 %v5391_v15, %v2895_v35  ;;  %3141 = vmatpush.bf16.msrb.mxu0 %v3132_v51  ;;  %vm5977_vm6 = vmmov %vm5971_vm0 }
 0x9ee   : > { %v3011_v42 = vpop.permute.xlu0 %3010  ;;  %vm5980_vm15 = vmmov %vm5971_vm0 }
 0x9ef   : > { %v3016_v1 = vsel %vm5953_vm7, %v3011_v42, 0  ;;  %v2904_v10 = vpack.c.bf16 %v2896_v33, %v2896_v33  ;;  %vm5983_vm7 = vmmov %vm5971_vm0 }
 0x9f0   : > { %3025 = vmatpush.bf16.msra.mxu1 %v3016_v1  ;;  %vm5986_vm9 = vmmov %vm5971_vm0 }
 0x9f1   : > { %3941 = vmatmul.msk.bf16.vlgmr.msra.gmra.mxu3 %vm345_vm1, %v2904_v10  ;;  %vm5987_vm10 = vmmov %vm5971_vm0 }
 0x9f3   : > { %3939 = vmatmul.msk.bf16.vlgmr.msra.gmra.mxu1 %vm345_vm1, %v2902_v2 }
 0x9f4   : > { %3191 = vmatpush.bf16.xpose.msrb.mxu1 %v3182_v63 }
 0x9f8   : > { %3938 = vmatmul.msk.bf16.vlgmr.msra.gmra.mxu0 %vm345_vm1, %v2901_v24 }
 0xa0b   : > { %v2964_v17 = vpop.f32.mrf.mxu2 }
 0xa0c   : > { %v3075_v37 = vpack.c.bf16 %v2964_v17, %v2964_v17 }
 0xa0e   : > { %v3091_v27 = vunpack.c.l.b16 %v3075_v37 }
 0xa10   : > { %v3944_v9 = vunpack.i.l.s16 %v3091_v27 }
 0xa12   : > { %v3115_v35 = vrot.slane %v3944_v9, 6 }
 0xa13   : > { %v2966_v62 = vpop.f32.mrf.mxu2 }
 0xa1b   : > { %v3048_v15 = vpop.f32.mrf.mxu2 }
 0xa1c   : > { %v3079_v6 = vpack.c.bf16 %v3048_v15, %v3048_v15 }
 0xa1e   : > { %v3095_v49 = vunpack.c.l.b16 %v3079_v6  ;;  %v5981_v6 = vld [vmem:[#allocation52_spill] sm:$0xff] }
 0xa20   : > { %v3948_v58 = vunpack.i.l.s16 %v3095_v49 }
 0xa23   : > { %v3050_v46 = vpop.f32.mrf.mxu2 }
 0xa24   : > { %v3123_v46 = vrot.slane %v3948_v58, 2 }
 0xa60   : > { %v2943_v41 = vpop.f32.mrf.mxu1 }
 0xa61   : > { %v3074_v14 = vpack.c.bf16 %v2943_v41, %v2943_v41 }
 0xa63   : > { %v3090_v56 = vunpack.c.l.b16 %v3074_v14 }
 0xa64   : > { %v2985_v18 = vpop.f32.mrf.mxu3 }
 0xa65   : > { %v2922_v40 = vpop.f32.mrf.mxu0  ;;  %v3076_v53 = vpack.c.bf16 %v2985_v18, %v2985_v18  ;;  %v3943_v0 = vunpack.i.l.s16 %v3090_v56  ;;  %v5972_v56 = vld [vmem:[#allocation45_spill] sm:$0xff] }
 0xa66   : > { %v3073_v28 = vpack.c.bf16 %v2922_v40, %v2922_v40  ;;  %v5966_v40 = vld [vmem:[#allocation41_spill] sm:$0xff] }
 0xa67   : > { %v3092_v30 = vunpack.c.l.b16 %v3076_v53  ;;  %v3113_v34 = vrot.slane %v3943_v0, 7  ;;  %v5973_v53 = vpack.c.bf16 %v5972_v56, %v5972_v56  ;;  %v5978_v0 = vld [vmem:[#allocation50_spill] sm:$0xff] }
 0xa68   : > { %v2945_v11 = vpop.f32.mrf.mxu1  ;;  %v3089_v22 = vunpack.c.l.b16 %v3073_v28  ;;  %v5969_v28 = vld [vmem:[#allocation43_spill] sm:$0xff] }
 0xa69   : > { %v3945_v20 = vunpack.i.l.s16 %v3092_v30  ;;  %v5967_v11 = vpack.c.bf16 %v5966_v40, %v5966_v40  ;;  %v5970_v37 = vpack.c.bf16 %v5969_v28, %v5969_v28  ;;  %v5979_v30 = vpack.c.bf16 %v5978_v0, %v5978_v0 }
 0xa6a   : > { %v3942_v39 = vunpack.i.l.s16 %v3089_v22  ;;  %v5975_v22 = vld [vmem:[#allocation48_spill] sm:$0xff] }
 0xa6b   : > { %v3117_v33 = vrot.slane %v3945_v20, 5  ;;  %v3201_v14 = vsel %vm5968_vm3, %v5967_v11, 0  ;;  %v5976_v27 = vpack.c.bf16 %v5975_v22, %v5975_v22  ;;  %vm5995_vm3 = vcmask 57344  }
 0xa6c   : > { %v2987_v21 = vpop.f32.mrf.mxu3  ;;  %v3114_v26 = vsel %vm5959_vm4, %v3113_v34, %v3942_v39  ;;  %3210 = vmatpush.bf16.xpose.msrb.mxu2 %v3201_v14  ;;  %v5982_v39 = vpack.c.bf16 %v5981_v6, %v5981_v6  ;;  %vm5988_vm4 = vmmov %vm5971_vm0 }
 0xa6d   : > { %v2924_v47 = vpop.f32.mrf.mxu0  ;;  %v3116_v1 = vsel %vm5960_vm8, %v3115_v35, %v3114_v26  ;;  %v3220_v21 = vsel %vm5971_vm0, %v5970_v37, 0  ;;  %vm5989_vm8 = vmmov %vm5971_vm0 }
 0xa6e   : > { %v3118_v62 = vsel %vm5961_vm11, %v3117_v33, %v3116_v1  ;;  %v3239_v47 = vsel %vm5974_vm2, %v5973_v53, 0  ;;  %3229 = vmatpush.bf16.xpose.msrb.mxu3 %v3220_v21  ;;  %v3296_v9 = vsel %vm5983_vm7, %v5982_v39, 0  ;;  %vm5990_vm11 = vmmov %vm5971_vm0  ;;  %v3389_v21 = vld [vmem:[%s5542_s22 + $0x8] sm:$0x1]  ;;  %vm6000_vm7 = vcmask 1042434  }
 0xa6f   : > { %3248 = vmatpush.bf16.xpose.msra.mxu0 %v3239_v47  ;;  %v3404_v39 = vrot.slane %v3389_v21, 7 }
 0xa70   : > { %v3027_v25 = vpop.f32.mrf.mxu1 }
 0xa71   : > { %v3078_v12 = vpack.c.bf16 %v3027_v25, %v3027_v25  ;;  %v3258_v25 = vsel %vm5977_vm6, %v5976_v27, 0 }
 0xa72   : > { %3267 = vmatpush.bf16.xpose.msra.mxu1 %v3258_v25 }
 0xa73   : > { %v3094_v23 = vunpack.c.l.b16 %v3078_v12  ;;  %v3277_v12 = vsel %vm5980_vm15, %v5979_v30, 0  ;;  %vm5999_vm15 = vcmask 1041409  }
 0xa74   : > { %v3069_v8 = vpop.f32.mrf.mxu3  ;;  %3286 = vmatpush.bf16.xpose.msra.mxu2 %v3277_v12  ;;  %v3390_v12 = vld [vmem:[%s5542_s22 + $0x10] sm:$0x1] }
 0xa75   : > { %v3080_v55 = vpack.c.bf16 %v3069_v8, %v3069_v8  ;;  %v3006_v59 = vpop.f32.mrf.mxu0  ;;  %v3947_v42 = vunpack.i.l.s16 %v3094_v23  ;;  %v5984_v8 = vld [vmem:[#allocation55_spill] sm:$0xff] }
 0xa76   : > { %v3077_v13 = vpack.c.bf16 %v3006_v59, %v3006_v59  ;;  %v5985_v34 = vpack.c.bf16 %v5984_v8, %v5984_v8  ;;  %3305 = vmatpush.bf16.xpose.msra.mxu3 %v3296_v9 }
 0xa77   : > { %v3096_v4 = vunpack.c.l.b16 %v3080_v55  ;;  %v3121_v17 = vrot.slane %v3947_v42, 3 }
 0xa78   : > { %v3093_v32 = vunpack.c.l.b16 %v3077_v13  ;;  %v3029_v60 = vpop.f32.mrf.mxu1  ;;  %v3315_v20 = vsel %vm5986_vm9, %v5985_v34, 0  ;;  %vm6001_vm9 = vcmask 1043459  }
 0xa79   : > { %v3949_v2 = vunpack.i.l.s16 %v3096_v4 }
 0xa7a   : > { %v3946_v10 = vunpack.i.l.s16 %v3093_v32 }
 0xa7b   : > { %v3125_v3 = vrot.slane %v3949_v2, 1 }
 0xa7c   : > { %v3119_v38 = vrot.slane %v3946_v10, 4  ;;  %v3071_v24 = vpop.f32.mrf.mxu3 }
 0xa7d   : > { %v3008_v15 = vpop.f32.mrf.mxu0 }
 0xa7e   : > { %v3120_v41 = vsel %vm5962_vm5, %v3119_v38, %v3118_v62  ;;  %vm5991_vm5 = vmmov %vm5971_vm0 }
 0xa7f   : > { %v3122_v51 = vsel %vm5963_vm14, %v3121_v17, %v3120_v41  ;;  %vm5992_vm14 = vmmov %vm5971_vm0 }
 0xa80   : > { %v3124_v18 = vsel %vm5964_vm13, %v3123_v46, %v3122_v51  ;;  %vm5993_vm13 = vmmov %vm5971_vm0 }
 0xa81   : > { %v3126_v5 = vsel %vm5965_vm12, %v3125_v3, %v3124_v18  ;;  %vm5994_vm12 = vmmov %vm5971_vm0 }
 0xa82   : > { %v3127_v63 = vpack.c.b16 %v3126_v5, %v3126_v5  ;;  %vm5996_vm0 = vmmov %vm5995_vm3 }
 0xa83   : > { %vm5997_vm2 = vmmov %vm5996_vm0 }
 0xa84   : > { %3950 = vmatmul.msk.bf16.vlgmr.msrb.gmra.mxu0 %vm345_vm1, %v3127_v63  ;;  %vm5998_vm6 = vmmov %vm5996_vm0 }
 0xa85   : > { %3324 = vmatpush.bf16.xpose.msrb.mxu0 %v3315_v20  ;;  %v3388_v20 = vld [vmem:[%s5542_s22] sm:$0x1] }
 0xb01   : > { %v3143_v23 = vpop.f32.mrf.mxu0 }
 0xb02   : > { %v3162_v55 = vadd.f32 %v3143_v23, %v5331_v57  ;;  %v3148_v59 = vrot.slane %v3143_v23, 1  ;;  %v3149_v49 = vrot.slane %v3143_v23, 2  ;;  %v3150_v13 = vrot.slane %v3143_v23, 3 }
 0xb03   : > { %v3151_v58 = vrot.slane %v3143_v23, 4  ;;  %v3152_v1 = vrot.slane %v3143_v23, 5  ;;  %v3153_v10 = vrot.slane %v3143_v23, 6 }
 0xb04   : > { %v3170_v26 = vpack.c.bf16 %v3162_v55, %v3162_v55  ;;  %v3163_v4 = vadd.f32 %v3148_v59, %v5333_v19  ;;  %v3164_v35 = vadd.f32 %v3149_v49, %v5335_v16  ;;  %v3165_v32 = vadd.f32 %v3150_v13, %v5337_v61  ;;  %v3391_v59 = vld [vmem:[%s5542_s22 + $0x18] sm:$0x1] }
 0xb05   : > { %v3154_v19 = vrot.slane %v3143_v23, 7  ;;  %v3166_v16 = vadd.f32 %v3151_v58, %v5339_v50  ;;  %v3167_v61 = vadd.f32 %v3152_v1, %v5341_v45  ;;  %v3168_v2 = vadd.f32 %v3153_v10, %v5343_v43  ;;  %v3393_v1 = vld [vmem:[%s5542_s22 + $0x28] sm:$0x1] }
 0xb06   : > { %3951 = vmatmul.msk.bf16.vlgmr.msrb.gmra.mxu1 %vm5987_vm10, %v3170_v26  ;;  %v3171_v60 = vpack.c.bf16 %v3163_v4, %v3163_v4  ;;  %v3172_v33 = vpack.c.bf16 %v3164_v35, %v3164_v35  ;;  %v3173_v42 = vpack.c.bf16 %v3165_v32, %v3165_v32  ;;  %v3406_v13 = vrot.slane %v3390_v12, 6  ;;  %v3392_v4 = vld [vmem:[%s5542_s22 + $0x20] sm:$0x1]  ;;  %vm6002_vm10 = vmmov %vm5996_vm0 }
 0xb07   : > { %v3169_v38 = vadd.f32 %v3154_v19, %v5347_v31  ;;  %v3174_v24 = vpack.c.bf16 %v3166_v16, %v3166_v16  ;;  %v3175_v17 = vpack.c.bf16 %v3167_v61, %v3167_v61  ;;  %v3176_v62 = vpack.c.bf16 %v3168_v2, %v3168_v2 }
 0xb08   : > { %3952 = vmatmul.msk.bf16.vlgmr.msrb.gmra.mxu2 %vm5988_vm4, %v3171_v60  ;;  %3953 = vmatmul.msk.bf16.vlgmr.msrb.gmra.mxu3 %vm5989_vm8, %v3172_v33  ;;  %v3405_v26 = vsel %vm5999_vm15, %v3404_v39, %v3388_v20  ;;  %v3408_v35 = vrot.slane %v3391_v59, 5  ;;  %v3410_v61 = vrot.slane %v3392_v4, 4  ;;  %vm6003_vm4 = vmmov %vm5999_vm15  ;;  %vm6004_vm8 = vcmask 1044484   ;;  %v6017_v4 = vld [vmem:[#allocation24_spill] sm:$0xff] }
 0xb09   : > { %3954 = vmatmul.msk.bf16.vlgmr.msra.gmra.mxu0 %vm5990_vm11, %v3173_v42  ;;  %v3145_v57 = vpop.f32.mrf.mxu0  ;;  %v3177_v15 = vpack.c.bf16 %v3169_v38, %v3169_v38  ;;  %v3407_v33 = vsel %vm6000_vm7, %v3406_v13, %v3405_v26  ;;  %vm6005_vm11 = vmmov %vm5996_vm0 }
 0xb0a   : > { %v3409_v38 = vsel %vm6001_vm9, %v3408_v35, %v3407_v33 }
 0xb16   : > { %3955 = vmatmul.msk.bf16.vlgmr.msra.gmra.mxu1 %vm5991_vm5, %v3174_v24  ;;  %vm6006_vm5 = vmmov %vm6000_vm7  ;;  %vm6014_vm7 = vcmask 1047559  }
 0xb18   : > { %3956 = vmatmul.msk.bf16.vlgmr.msra.gmra.mxu2 %vm5992_vm14, %v3175_v17  ;;  %3957 = vmatmul.msk.bf16.vlgmr.msra.gmra.mxu3 %vm5993_vm13, %v3176_v62  ;;  %vm6007_vm14 = vcmask 1045509   ;;  %vm6008_vm13 = vmmov %vm6001_vm9 }
 0xb19   : > { %3958 = vmatmul.msk.bf16.vlgmr.msrb.gmra.mxu0 %vm5994_vm12, %v3177_v15  ;;  %v3394_v15 = vld [vmem:[%s5542_s22 + $0x30] sm:$0x1]  ;;  %vm6009_vm12 = vmmov %vm5996_vm0 }
 0xb1a   : > { %vm6015_vm9 = vmmov %vm6014_vm7 }
 0xb83   : > { %v3193_v50 = vpop.f32.mrf.mxu1 }
 0xb84   : > { %v3330_v45 = vmul.f32 0.17677669, %v3193_v50  ;;  %v3412_v50 = vrot.slane %v3393_v1, 3 }
 0xb86   : > { %4138 = vtanh.f32 %v3330_v45  ;;  %v3250_v43 = vpop.f32.mrf.mxu0 }
 0xb87   : > { %v3333_v46 = vmul.f32 0.17677669, %v3250_v43  ;;  %v3411_v43 = vsel %vm6004_vm8, %v3410_v61, %v3409_v38 }
 0xb89   : > { %4140 = vtanh.f32 %v3333_v46 }
 0xb8b   : > { %v3195_v31 = vpop.f32.mrf.mxu1  ;;  %v3212_v41 = vpop.f32.mrf.mxu2 }
 0xb8c   : > { %v4139_v3 = vpop.eup %4138  ;;  %v3331_v51 = vmul.f32 0.17677669, %v3212_v41  ;;  %v3231_v18 = vpop.f32.mrf.mxu3  ;;  %v3395_v31 = vld [vmem:[%s5542_s22 + $0x38] sm:$0x1]  ;;  %v3414_v41 = vrot.slane %v3394_v15, 2 }
 0xb8d   : > { %v3346_v5 = vmul.f32 10.0, %v4139_v3  ;;  %v3332_v63 = vmul.f32 0.17677669, %v3231_v18 }
 0xb8e   : > { %4142 = vtanh.f32 %v3331_v51  ;;  %v3252_v11 = vpop.f32.mrf.mxu0 }
 0xb8f   : > { %v4141_v14 = vpop.eup %4140  ;;  %3355 = vst.msk [vmem:[%s5536_s20] sm:$0x1] %vm5995_vm3, %v3346_v5  ;;  %4144 = vtanh.f32 %v3332_v63  ;;  %v3413_v11 = vsel %vm6007_vm14, %v3412_v50, %v3411_v43  ;;  %vm6010_vm3 = vcmask 1046534   ;;  %v6024_v50 = vld [vmem:[#allocation11_spill] sm:$0xff]  ;;  %v6026_v43 = vld [vmem:[#allocation12_spill] sm:$0xff] }
 0xb90   : > { %v5546_v37 = vmul.f32 10.0, %v4141_v14  ;;  %vm6013_vm15 = vmmov %vm6010_vm3 }
 0xb92   : > { %3358 = vst.msk [vmem:[%s5536_s20 + $0x18] sm:$0x1] %vm5996_vm0, %v5546_v37  ;;  %v3375_v21 = vrot.slane %v5546_v37, 5  ;;  %vm6011_vm0 = vmmov %vm6004_vm8 }
 0xb93   : > { %v3214_v53 = vpop.f32.mrf.mxu2  ;;  %v3269_v47 = vpop.f32.mrf.mxu1 }
 0xb94   : > { %v4143_v27 = vpop.eup %4142  ;;  %v3233_v25 = vpop.f32.mrf.mxu3  ;;  %v3334_v30 = vmul.f32 0.17677669, %v3269_v47  ;;  %v3416_v47 = vrot.slane %v3395_v31, 1  ;;  %v6028_v31 = vld [vmem:[#allocation13_spill] sm:$0xff] }
 0xb95   : > { %v4145_v9 = vpop.eup %4144  ;;  %v3347_v34 = vmul.f32 10.0, %v4143_v27 }
 0xb96   : > { %v3348_v23 = vmul.f32 10.0, %v4145_v9  ;;  %4146 = vtanh.f32 %v3334_v30  ;;  %v3326_v55 = vpop.f32.mrf.mxu0  ;;  %v3415_v30 = vsel %vm6010_vm3, %v3414_v41, %v3413_v11 }
 0xb97   : > { %3356 = vst.msk [vmem:[%s5536_s20 + $0x8] sm:$0x1] %vm5997_vm2, %v3347_v34  ;;  %v3337_v49 = vmul.f32 0.17677669, %v3326_v55  ;;  %v3371_v10 = vrot.slane %v3347_v34, 7  ;;  %v3417_v20 = vsel %vm6014_vm7, %v3416_v47, %v3415_v30  ;;  %v3463_v47 = vld [vmem:[#allocation5] sm:$0xff] }
 0xb98   : > { %3357 = vst.msk [vmem:[%s5536_s20 + $0x10] sm:$0x1] %vm5998_vm6, %v3348_v23  ;;  %v3373_v17 = vrot.slane %v3348_v23, 6  ;;  %vm6012_vm6 = vmmov %vm6007_vm14  ;;  %vm6034_vm7 = vcmask 1040384  }
 0xb99   : > { %4148 = vtanh.f32 %v3337_v49  ;;  %v3372_v45 = vsel %vm6003_vm4, %v3371_v10, %v3346_v5 }
 0xb9a   : > { %v3374_v51 = vsel %vm6006_vm5, %v3373_v17, %v3372_v45 }
 0xb9b   : > { %v3271_v32 = vpop.f32.mrf.mxu1  ;;  %v3288_v60 = vpop.f32.mrf.mxu2  ;;  %v3376_v27 = vsel %vm6008_vm13, %v3375_v21, %v3374_v51 }
 0xb9c   : > { %v4147_v42 = vpop.eup %4146  ;;  %v3335_v57 = vmul.f32 0.17677669, %v3288_v60  ;;  %v3307_v58 = vpop.f32.mrf.mxu3 }
 0xb9d   : > { %v3350_v19 = vmul.f32 10.0, %v4147_v42  ;;  %v3336_v16 = vmul.f32 0.17677669, %v3307_v58 }
 0xb9e   : > { %4150 = vtanh.f32 %v3335_v57  ;;  %v3328_v2 = vpop.f32.mrf.mxu0 }
 0xb9f   : > { %v4149_v24 = vpop.eup %4148  ;;  %3359 = vst.msk [vmem:[%s5536_s20 + $0x20] sm:$0x1] %vm6002_vm10, %v3350_v19  ;;  %4152 = vtanh.f32 %v3336_v16  ;;  %v3377_v18 = vrot.slane %v3350_v19, 4  ;;  %vm6016_vm10 = vcmp.gt.f32.partialorder %v4649_v7, 0.5  ;;  %v6018_v2 = vld [vmem:[#allocation8_spill] sm:$0xff] }
 0xba0   : > { %v3353_v62 = vmul.f32 10.0, %v4149_v24  ;;  %v6020_v24 = vld [vmem:[#allocation9_spill] sm:$0xff] }
 0xba1   : > { %v3378_v12 = vsel %vm6011_vm0, %v3377_v18, %v3376_v27 }
 0xba2   : > { %3362 = vst.msk [vmem:[%s5536_s20 + $0x38] sm:$0x1] %vm6005_vm11, %v3353_v62  ;;  %v3383_v9 = vrot.slane %v3353_v62, 1  ;;  %vm6019_vm11 = vcmask 1043456   ;;  %v6022_v62 = vld [vmem:[#allocation10_spill] sm:$0xff] }
 0xba3   : > { %v3290_v46 = vpop.f32.mrf.mxu2  ;;  %v3500_v38 = vsel %vm6019_vm11, %v6018_v2, 0  ;;  %vm6021_vm5 = vmmov %vm6019_vm11  ;;  %v6039_v2 = vld [vmem:[#allocation26_spill] sm:$0xff] }
 0xba4   : > { %v4151_v3 = vpop.eup %4150  ;;  %v3309_v63 = vpop.f32.mrf.mxu3  ;;  %v3521_v17 = vsel %vm6021_vm5, %v6020_v24, 0  ;;  %vm6023_vm14 = vmmov %vm6021_vm5  ;;  %3509 = vmatpush.bf16.msrb.mxu1 %v3500_v38 }
 0xba5   : > { %v4153_v14 = vpop.eup %4152  ;;  %v3351_v5 = vmul.f32 10.0, %v4151_v3  ;;  %v3542_v15 = vsel %vm6023_vm14, %v6022_v62, 0  ;;  %3530 = vmatpush.bf16.msrb.mxu2 %v3521_v17  ;;  %vm6025_vm13 = vmmov %vm6021_vm5  ;;  %v6030_v3 = vld [vmem:[#allocation14_spill] sm:$0xff]  ;;  %v3461_v63 = vstv %s5611_s15 }
 0xba6   : > { %v3352_v53 = vmul.f32 10.0, %v4153_v14  ;;  %3551 = vmatpush.bf16.msrb.mxu3 %v3542_v15  ;;  %v3563_v45 = vsel %vm6025_vm13, %v6024_v50, 0  ;;  %vm6029_vm3 = vmmov %vm6021_vm5  ;;  %v6032_v14 = vld [vmem:[#allocation15_spill] sm:$0xff]  ;;  %vm6044_vm13 = vcmask 1044484  }
 0xba7   : > { %3360 = vst.msk [vmem:[%s5536_s20 + $0x28] sm:$0x1] %vm6009_vm12, %v3351_v5  ;;  %v3379_v25 = vrot.slane %v3351_v5, 3  ;;  %3572 = vmatpush.bf16.msra.mxu0 %v3563_v45  ;;  %vm6027_vm12 = vmmov %vm6021_vm5  ;;  %v3605_v41 = vsel %vm6029_vm3, %v6028_v31, 0 }
 0xba8   : > { %3361 = vst.msk [vmem:[%s5536_s20 + $0x30] sm:$0x1] %vm5997_vm2, %v3352_v53  ;;  %v3381_v39 = vrot.slane %v3352_v53, 2  ;;  %v3584_v46 = vsel %vm6027_vm12, %v6026_v43, 0  ;;  %vm6031_vm0 = vmmov %vm6029_vm3  ;;  %vm6045_vm12 = vcmask 1045509   ;;  %vm6046_vm3 = vcmask 1046534  }
 0xba9   : > { %v3380_v34 = vsel %vm6012_vm6, %v3379_v25, %v3378_v12  ;;  %v3626_v51 = vsel %vm6031_vm0, %v6030_v3, 0  ;;  %3593 = vmatpush.bf16.msra.mxu1 %v3584_v46  ;;  %3614 = vmatpush.bf16.msra.mxu2 %v3605_v41  ;;  %vm6033_vm2 = vmmov %vm6031_vm0  ;;  %vm3462_vm6 = vcmp.eq.s32.totalorder %v6017_v4, %v3461_v63  ;;  %v4158_v12 = vld [vmem:[#allocation2] sm:$0xff]  ;;  %vm6047_vm0 = vcmask 1047559  }
 0xbaa   : > { %v3382_v37 = vsel %vm6013_vm15, %v3381_v39, %v3380_v34  ;;  %3635 = vmatpush.bf16.msra.mxu3 %v3626_v51  ;;  %v3647_v21 = vsel %vm6033_vm2, %v6032_v14, 0  ;;  %vm6048_vm2 = vcmask 261120  }
 0xbab   : > { %v3384_v23 = vsel %vm6015_vm9, %v3383_v9, %v3382_v37  ;;  %3656 = vmatpush.bf16.msrb.mxu0 %v3647_v21  ;;  %v4200_v9 = vmov 0.0   ;;  %vm6035_vm9 = vcmask 1041409  }
 0xbac   : > { %v3386_v55 = vsel %vm6016_vm10, -inf, %v3384_v23  ;;  %vm6036_vm10 = vcmask 1042434   ;;  %vm6041_vm11 = vmmov %vm6035_vm9 }
 0xbad   : > { %v3419_v59 = vadd.f32 %v3417_v20, %v3386_v55  ;;  %v3440_v13 = vsel %vm345_vm1, %v3386_v55, -inf  ;;  %vm6042_vm5 = vmmov %vm6036_vm10 }
 0xbaf   : > { %v3420_v49 = vsel %vm345_vm1, %v3419_v59, -inf }
 0xbb0   : > { %3421 = vmax.xlane.f32.xlu1 %v3420_v49 }
 0xbb8   : > { %3441 = vmax.xlane.f32.xlu1 %v3440_v13 }
 0xc23   : > { %v3422_v26 = vpop.xlane.xlu1 %3421 }
 0xc24   : > { %vm3423_vm4 = vcmp.ge.f32.partialorder %v3419_v59, %v3422_v26 }
 0xc25   : > { %v3424_v35 = vsel %vm3423_vm4, %v6017_v4, 8  ;;  %vm6038_vm4 = vcmask 1043459  }
 0xc26   : > { %v3425_v32 = vsel %vm345_vm1, %v3424_v35, 2147483647  ;;  %vm6043_vm14 = vmmov %vm6038_vm4 }
 0xc27   : > { %v3427_v60 = vshra.s32 %v3425_v32, 16  ;;  %v3426_v10 = vand.u32 65535, %v3425_v32 }
 0xc29   : > { %v3429_v33 = vcvt.s32.f32 %v3427_v60  ;;  %v3428_v19 = vcvt.s32.f32 %v3426_v10  ;;  %v6037_v10 = vld [vmem:[#allocation25_spill] sm:$0xff] }
 0xc2b   : > { %3430 = vmin.xlane.f32.xlu2 %v3429_v33  ;;  %v5592_v42 = vpop.xlane.xlu1 %3441 }
 0xc2c   : > { %v3443_v7 = vsub.f32 %v3386_v55, %v5592_v42 }
 0xc2e   : > { %v3444_v57 = vmul.f32 1.442695, %v3443_v7 }
 0xc30   : > { %4154 = vpow2.f32 %v3444_v57 }
 0xc36   : > { %v4155_v58 = vpop.eup %4154 }
 0xc37   : > { %v3446_v1 = vsel %vm345_vm1, %v4155_v58, 0.0 }
 0xc38   : > { %3447 = vadd.xlane.f32.xlu2 %v3446_v1 }
 0xc9e   : > { %v3431_v16 = vpop.xlane.xlu2 %3430 }
 0xc9f   : > { %vm3432_vm8 = vcmp.eq.f32.partialorder %v3429_v33, %v3431_v16  ;;  %v3437_v18 = vcvt.f32.s32 %v3431_v16 }
 0xca0   : > { %v3433_v61 = vsel %vm3432_vm8, %v3428_v19, inf  ;;  %vm6040_vm8 = vcmask 7168  }
 0xca1   : > { %3434 = vmin.xlane.f32.xlu0 %v3433_v61  ;;  %v3438_v5 = vshll.u32 %v3437_v18, 16 }
 0xcab   : > { %v3448_v3 = vpop.xlane.xlu2 %3447 }
 0xcac   : > { %4156 = vlog2.f32 %v3448_v3 }
 0xcb2   : > { %v4157_v51 = vpop.eup %4156 }
 0xcb3   : > { %v3450_v18 = vmul.f32 0.6931472, %v4157_v51 }
 0xcb5   : > { %v3451_v63 = vadd.f32 %v3450_v18, %v5592_v42 }
 0xd14   : > { %v3435_v11 = vpop.xlane.xlu0 %3434 }
 0xd15   : > { %v3436_v53 = vcvt.f32.s32 %v3435_v11  ;;  %v3457_v11 = vld [vmem:[%s5674_s10] sm:$0xff] }
 0xd17   : > { %v3439_v27 = vadd.s32 %v3438_v5, %v3436_v53 }
 0xd19   : > { %v3464_v25 = vsel %vm3462_vm6, %v3439_v27, %v3463_v47  ;;  %vm3452_vm15 = vcmp.eq.s32.totalorder %v6017_v4, %v3439_v27  ;;  %vm6049_vm6 = vmmov %vm6048_vm2 }
 0xd1a   : > { %3465 = vst.msk [vmem:[#allocation5] sm:$0xff] %vm345_vm1, %v3464_v25  ;;  %v3453_v30 = vsel %vm3452_vm15, %v3386_v55, 0.0  ;;  %v3466_v39 = vsel %vm3452_vm15, 1.0, %v4158_v12  ;;  %v3959_v34 = vsel %vm3452_vm15, 1.0, %v4200_v9 }
 0xd1b   : > { %v3454_v37 = vsel %vm345_vm1, %v3453_v30, 0.0  ;;  %3467 = vst.msk [vmem:[#allocation2] sm:$0xff] %vm345_vm1, %v3466_v39  ;;  %v3470_v20 = vpack.c.bf16 %v3959_v34, %v3959_v34 }
 0xd1c   : > { %3455 = vadd.xlane.f32.xlu0 %v3454_v37 }
 0xd1d   : > { %v3472_v23 = vrot.slane %v3470_v20, 3 }
 0xd1f   : > { %v3475_v59 = vsel %vm6034_vm7, %v3470_v20, %v3472_v23  ;;  %v3477_v49 = vsel %vm6035_vm9, %v3470_v20, %v3472_v23  ;;  %v3480_v1 = vsel %vm6036_vm10, %v3470_v20, %v3472_v23  ;;  %v3483_v16 = vsel %vm6038_vm4, %v3470_v20, %v3472_v23 }
 0xd20   : > { %v3960_v13 = vpack.i.b16 %v3475_v59, %v3475_v59  ;;  %v3487_v26 = vunpack.i.h.s16 %v3475_v59  ;;  %v3479_v35 = vrot.slane %v3477_v49, 1  ;;  %v3482_v61 = vrot.slane %v3480_v1, 2 }
 0xd21   : > { %v3485_v38 = vrot.slane %v3483_v16, 3 }
 0xd22   : > { %v3495_v32 = vperm.slane %v3960_v13, 0  ;;  %v3515_v55 = vpack.i.b16 %v3487_v26, %v3487_v26  ;;  %v3963_v60 = vpack.i.b16 %v3479_v35, %v3479_v35  ;;  %v3489_v33 = vunpack.i.h.s16 %v3479_v35 }
 0xd23   : > { %v3491_v24 = vunpack.i.h.s16 %v3482_v61  ;;  %v3966_v17 = vpack.i.b16 %v3482_v61, %v3482_v61  ;;  %v3493_v62 = vunpack.i.h.s16 %v3485_v38  ;;  %v3969_v50 = vpack.i.b16 %v3485_v38, %v3485_v38 }
 0xd24   : > { %3961 = vmatmul.msk.bf16.vlgmr.msrb.gmra.mxu1 %vm345_vm1, %v3495_v32  ;;  %v3516_v7 = vperm.slane %v3515_v55, 0  ;;  %v3537_v57 = vperm.slane %v3963_v60, 0  ;;  %v3557_v58 = vpack.i.b16 %v3489_v33, %v3489_v33 }
 0xd25   : > { %3710 = vmatpush.bf16.msrb.mxu1 %v6037_v10  ;;  %v3599_v15 = vpack.i.b16 %v3491_v24, %v3491_v24  ;;  %v3579_v45 = vperm.slane %v3966_v17, 0  ;;  %v3641_v43 = vpack.i.b16 %v3493_v62, %v3493_v62  ;;  %v3621_v31 = vperm.slane %v3969_v50, 0 }
 0xd26   : > { %3962 = vmatmul.msk.bf16.vlgmr.msrb.gmra.mxu2 %vm345_vm1, %v3516_v7  ;;  %3964 = vmatmul.msk.bf16.vlgmr.msrb.gmra.mxu3 %vm345_vm1, %v3537_v57  ;;  %v3558_v19 = vperm.slane %v3557_v58, 0 }
 0xd27   : > { %v3600_v46 = vperm.slane %v3599_v15, 0  ;;  %v3642_v41 = vperm.slane %v3641_v43, 0 }
 0xd28   : > { %3965 = vmatmul.msk.bf16.vlgmr.msra.gmra.mxu0 %vm345_vm1, %v3558_v19 }
 0xd29   : > { %3711 = vmatpush.bf16.msrb.mxu1 %v6039_v2 }
 0xd34   : > { %3967 = vmatmul.msk.bf16.vlgmr.msra.gmra.mxu1 %vm345_vm1, %v3579_v45 }
 0xd36   : > { %3968 = vmatmul.msk.bf16.vlgmr.msra.gmra.mxu2 %vm345_vm1, %v3600_v46  ;;  %3970 = vmatmul.msk.bf16.vlgmr.msra.gmra.mxu3 %vm345_vm1, %v3621_v31 }
 0xd38   : > { %3971 = vmatmul.msk.bf16.vlgmr.msrb.gmra.mxu0 %vm345_vm1, %v3642_v41 }
 0xd8f   : > { %v3456_v14 = vpop.xlane.xlu0 %3455 }
 0xd90   : > { %v3458_v21 = vsub.f32 %v3451_v63, %v3456_v14 }
 0xd92   : > { %v3459_v5 = vadd.f32 %v3458_v21, %v3457_v11 }
 0xd94   : > { %3460 = vst.msk [vmem:[%s5674_s10] sm:$0xff] %vm6040_vm8, %v3459_v5 }
 0xda1   : > { %v3511_v53 = vpop.f32.mrf.mxu1 }
 0xda2   : > { %v3662_v20 = vpack.c.bf16 %v3511_v53, %v3511_v53 }
 0xda4   : > { %v3678_v32 = vunpack.c.l.b16 %v3662_v20 }
 0xda5   : > { %v3574_v47 = vpop.f32.mrf.mxu0 }
 0xda6   : > { %v3665_v13 = vpack.c.bf16 %v3574_v47, %v3574_v47 }
 0xda8   : > { %v3681_v33 = vunpack.c.l.b16 %v3665_v13 }
 0xda9   : > { %v3513_v27 = vpop.f32.mrf.mxu1  ;;  %v3532_v25 = vpop.f32.mrf.mxu2 }
 0xdaa   : > { %v3553_v30 = vpop.f32.mrf.mxu3  ;;  %v3663_v12 = vpack.c.bf16 %v3532_v25, %v3532_v25  ;;  %v3690_v38 = vrot.slane %v3681_v33, 5 }
 0xdab   : > { %v3664_v42 = vpack.c.bf16 %v3553_v30, %v3553_v30 }
 0xdac   : > { %v3679_v9 = vunpack.c.l.b16 %v3663_v12 }
 0xdad   : > { %v3576_v39 = vpop.f32.mrf.mxu0  ;;  %v3680_v59 = vunpack.c.l.b16 %v3664_v42 }
 0xdae   : > { %v3686_v26 = vrot.slane %v3679_v9, 7 }
 0xdaf   : > { %v3688_v55 = vrot.slane %v3680_v59, 6 }
 0xdb0   : > { %v3687_v7 = vsel %vm6041_vm11, %v3686_v26, %v3678_v32 }
 0xdb1   : > { %v3534_v34 = vpop.f32.mrf.mxu2  ;;  %v3595_v37 = vpop.f32.mrf.mxu1  ;;  %v3689_v16 = vsel %vm6042_vm5, %v3688_v55, %v3687_v7 }
 0xdb2   : > { %v3555_v23 = vpop.f32.mrf.mxu3  ;;  %v3666_v49 = vpack.c.bf16 %v3595_v37, %v3595_v37  ;;  %v3691_v50 = vsel %vm6043_vm14, %v3690_v38, %v3689_v16 }
 0xdb4   : > { %v3682_v60 = vunpack.c.l.b16 %v3666_v49 }
 0xdb5   : > { %v3658_v35 = vpop.f32.mrf.mxu0 }
 0xdb6   : > { %v3669_v57 = vpack.c.bf16 %v3658_v35, %v3658_v35  ;;  %v3692_v61 = vrot.slane %v3682_v60, 4 }
 0xdb8   : > { %v3685_v24 = vunpack.c.l.b16 %v3669_v57  ;;  %v3693_v43 = vsel %vm6044_vm13, %v3692_v61, %v3691_v50 }
 0xdb9   : > { %v3597_v58 = vpop.f32.mrf.mxu1  ;;  %v3616_v1 = vpop.f32.mrf.mxu2 }
 0xdba   : > { %v3667_v10 = vpack.c.bf16 %v3616_v1, %v3616_v1  ;;  %v3637_v19 = vpop.f32.mrf.mxu3  ;;  %v3698_v31 = vrot.slane %v3685_v24, 1 }
 0xdbb   : > { %v3668_v2 = vpack.c.bf16 %v3637_v19, %v3637_v19 }
 0xdbc   : > { %v3683_v17 = vunpack.c.l.b16 %v3667_v10 }
 0xdbd   : > { %v3684_v62 = vunpack.c.l.b16 %v3668_v2  ;;  %v3660_v15 = vpop.f32.mrf.mxu0 }
 0xdbe   : > { %v3694_v45 = vrot.slane %v3683_v17, 3 }
 0xdbf   : > { %v3696_v46 = vrot.slane %v3684_v62, 2 }
 0xdc0   : > { %v3695_v41 = vsel %vm6045_vm12, %v3694_v45, %v3693_v43 }
 0xdc1   : > { %v3697_v3 = vsel %vm6046_vm3, %v3696_v46, %v3695_v41  ;;  %v3618_v51 = vpop.f32.mrf.mxu2 }
 0xdc2   : > { %v3699_v18 = vsel %vm6047_vm0, %v3698_v31, %v3697_v3  ;;  %v3639_v63 = vpop.f32.mrf.mxu3 }
 0xdc3   : > { %v3700_v11 = vpack.c.b16 %v3699_v18, %v3699_v18 }
 0xdc5   : > { %3972 = vmatmul.msk.bf16.vlgmr.msrb.gmra.mxu1 %vm6048_vm2, %v3700_v11 }
 0xe42   : > { %v3713_v14 = vpop.f32.mrf.mxu1 }
 0xe43   : > { %3717 = vst.msk [vmem:[#allocation3] sm:$0xff] %vm6049_vm6, %v3713_v14 }
 0xe46   : > { %3721 = sbr.rel (%p3973_p0) target bundleno = 3801 (0xed9), region = 48 }
 0xe4a   : > { %v3715_v21 = vpop.f32.mrf.mxu1 }
 0xe4b   : > { %v6050_v5 = vld [vmem:[#allocation27_spill] sm:$0xff]  ;;  %v6051_v53 = vld [vmem:[#allocation32_spill] sm:$0xff]  ;;  %vm6052_vm15 = vcmask 261120  }
 0xe4c   : > { %3728 = vmatpush.bf16.msra.mxu0 %v6050_v5  ;;  %vm6053_vm7 = vmmov %vm6052_vm15 }
 0xe50   : > { %3729 = vmatpush.bf16.msra.mxu0 %v6051_v53 }
 0xe53   : > { %3974 = vmatmul.msk.bf16.vlgmr.msra.gmra.mxu0 %vm6052_vm15, %v3700_v11 }
 0xed0   : > { %v3731_v47 = vpop.f32.mrf.mxu0 }
 0xed1   : > { %3735 = vst.msk [vmem:[#allocation4] sm:$0xff] %vm6053_vm7, %v3731_v47 }
 0xed8   : > { %v3733_v27 = vpop.f32.mrf.mxu0 }
 0xed9 PF: > { %p414_p1 = scmp.ge.s32.totalorder %s5611_s15, 7  }
 0xeda   :  { %s3747_s29 = sshll.u32 (%p414_p1), %s5675_s11, 4  ;;  %s4201_s30 = smov (%p414_p1), [#allocation5]   ;;  %s3748_s29 = int_to_ptr.hbm [resolvable:$true] %s3747_s29 }
 0xedb   :  { %416 = sbr.rel (!%p414_p1) target bundleno = 200 (0xc8), region = 85  ;;  %s3745_s12 = sshll.u32 (%p414_p1), %s4201_s30, 4  ;;  %s3746_s12 = int_to_ptr.vmem [resolvable:$true] %s3745_s12 }
 0xedc   :  { %3750 = dma.vmem_to_hbm [thread:$0]  (%p414_p1), %s3746_s12, 128, %s3748_s29, [#allocation6]  }
 0xee0   :  { %4187 = dma.done.wait [#allocation6], 128  }
 0xee1   :  { %4188 = vsyncadd [#allocation6], 4294967168 }
 0xee2   :  { %3759 = vsyncpa [#allocation6], 1 }

</bundles_post_ra>
